<compile_context>
chip_gen: v7x
topology: tpu7x:2x2x1
jax: 0.10.0
libtpu: 0.0.40
codegen_flags: <defaults>
</compile_context>

<pallas_src>
import numpy as np
import jax
import jax.numpy as jnp
from jax.experimental import pallas as pl
from jax.experimental.pallas import tpu as pltpu


# ---------------------------------------------------------------------------
# In-kernel helpers
# ---------------------------------------------------------------------------
def _conv3x3_banded(a, wb_ref, m_dn, m_up):
    """3x3 'same' conv on a flat (Ha, Wa*Cin) f32 activation.

    a      : (Ha, Wa*Cin)  f32 value
    wb_ref : (3, Wa*Cin, Wa*Cout) bf16 ref - W-banded weights per vertical tap
    m_dn   : (Ha, 1) f32 mask zeroing row 0  (top padding row)
    m_up   : (Ha, 1) f32 mask zeroing row Ha-1 (bottom padding row)
    returns: (Ha, Wa*Cout) f32
    """
    Ha = a.shape[0]
    a_dn = pltpu.roll(a, shift=1, axis=0) * m_dn          # out[h] <- a[h-1]
    a_up = pltpu.roll(a, shift=Ha - 1, axis=0) * m_up     # out[h] <- a[h+1]
    acc = jnp.dot(a_dn.astype(jnp.bfloat16), wb_ref[0],
                  preferred_element_type=jnp.float32)
    acc = acc + jnp.dot(a.astype(jnp.bfloat16), wb_ref[1],
                        preferred_element_type=jnp.float32)
    acc = acc + jnp.dot(a_up.astype(jnp.bfloat16), wb_ref[2],
                        preferred_element_type=jnp.float32)
    return acc


def _bottleneck_body(x_ref, xc_ref, ah_ref, mw_ref, wb1x_ref, wb1c_ref,
                     s1_ref, b1_ref, wb2_ref, s2_ref, b2_ref, o_ref):
    Ho = o_ref.shape[0]
    row = jax.lax.broadcasted_iota(jnp.int32, (Ho, 1), 0)
    m_dn = (row > 0).astype(jnp.float32)
    m_up = (row < Ho - 1).astype(jnp.float32)

    # Bilinear 2x upsample (align_corners=True) as two bf16 MXU matmuls:
    #   width interpolation on H rows first, then height interpolation.
    up = jnp.dot(x_ref[...], mw_ref[...],
                 preferred_element_type=jnp.float32)              # (H, Wo*Cx)
    up = jnp.dot(ah_ref[...], up.astype(jnp.bfloat16),
                 preferred_element_type=jnp.float32)              # (Ho, Wo*Cx)

    # conv1 over torch.cat([x_concat, x], dim=1), split into channel groups.
    acc = _conv3x3_banded(up, wb1x_ref, m_dn, m_up)
    if xc_ref is not None:
        acc = acc + _conv3x3_banded(xc_ref[...].astype(jnp.float32),
                                    wb1c_ref, m_dn, m_up)
    h = jnp.maximum(acc * s1_ref[...] + b1_ref[...], 0.0)         # BN + ReLU
    acc2 = _conv3x3_banded(h, wb2_ref, m_dn, m_up)
    out = jnp.maximum(acc2 * s2_ref[...] + b2_ref[...], 0.0)      # BN + ReLU
    o_ref[...] = out.astype(o_ref.dtype)


def _make_bottleneck_kernel(has_skip):
    if has_skip:
        def kernel(x_ref, xc_ref, ah_ref, mw_ref, wb1x_ref, wb1c_ref,
                   s1_ref, b1_ref, wb2_ref, s2_ref, b2_ref, o_ref):
            _bottleneck_body(x_ref, xc_ref, ah_ref, mw_ref, wb1x_ref, wb1c_ref,
                             s1_ref, b1_ref, wb2_ref, s2_ref, b2_ref, o_ref)
    else:
        def kernel(x_ref, ah_ref, mw_ref, wb1x_ref,
                   s1_ref, b1_ref, wb2_ref, s2_ref, b2_ref, o_ref):
            _bottleneck_body(x_ref, None, ah_ref, mw_ref, wb1x_ref, None,
                             s1_ref, b1_ref, wb2_ref, s2_ref, b2_ref, o_ref)
    return kernel


# ---------------------------------------------------------------------------
# BlockSpec helpers and the fused-bottleneck pallas_call wrapper
# ---------------------------------------------------------------------------
def _batched_spec(shape):
    nd = len(shape) - 1
    return pl.BlockSpec((None,) + tuple(shape[1:]),
                        lambda b, _nd=nd: (b,) + (0,) * _nd)


def _resident_spec(arr):
    nd = arr.ndim
    return pl.BlockSpec(tuple(arr.shape), lambda b, _nd=nd: (0,) * _nd)


def _nbytes(a):
    return int(np.prod(a.shape)) * a.dtype.itemsize


def fused_bottleneck(prep, x_flat, xc_flat=None):
    """One DecoderBottleneck as a single Pallas kernel.

    x_flat : (B, H, W*Cx)  bf16 (flat NHWC of the low-res input)
    xc_flat: (B, 2H, 2W*Cs) bf16 (flat NHWC of the skip), or None
    returns: (B, 2H, 2W*CoutP) bf16
    """
    B = x_flat.shape[0]
    Ho, Wo, CoutP = prep["Ho"], prep["Wo"], prep["CoutP"]
    has_skip = xc_flat is not None
    kernel = _make_bottleneck_kernel(has_skip)

    operands = [x_flat]
    in_specs = [_batched_spec(x_flat.shape)]
    if has_skip:
        operands.append(xc_flat)
        in_specs.append(_batched_spec(xc_flat.shape))
    const_names = ["ah", "mw", "wb1x"]
    if has_skip:
        const_names.append("wb1c")
    const_names += ["s1", "b1", "wb2", "s2", "b2"]
    for name in const_names:
        arr = prep[name]
        operands.append(arr)
        in_specs.append(_resident_spec(arr))

    # Explicit VMEM budget: 2x (default double-buffering) resident constants +
    # activation/output slabs + generous headroom for in-kernel f32 temporaries.
    const_bytes = sum(_nbytes(prep[n]) for n in const_names)
    act_bytes = _nbytes(x_flat) // B
    if has_skip:
        act_bytes += _nbytes(xc_flat) // B
    out_bytes = Ho * Wo * CoutP * 2
    lanes = [prep["mw"].shape[1], prep["wb1x"].shape[2], prep["wb2"].shape[2]]
    if has_skip:
        lanes.append(prep["wb1c"].shape[1])
    interm_bytes = 12 * Ho * max(lanes) * 4
    need = 2 * const_bytes + 2 * (act_bytes + out_bytes) + interm_bytes
    vmem_limit = int(min(max(2 * need, 32 * 1024 * 1024), 100 * 1024 * 1024))

    return pl.pallas_call(
        kernel,
        out_shape=jax.ShapeDtypeStruct((B, Ho, Wo * CoutP), jnp.bfloat16),
        grid=(B,),
        in_specs=in_specs,
        out_specs=_batched_spec((B, Ho, Wo * CoutP)),
        compiler_params=pltpu.CompilerParams(
            dimension_semantics=("parallel",),
            vmem_limit_bytes=vmem_limit),
    )(*operands)


# ---------------------------------------------------------------------------
# Host-side parameter preparation (pure numpy, done once outside jit)
# ---------------------------------------------------------------------------
def _interp_matrix(n_in, n_out):
    """PyTorch bilinear upsample (align_corners=True) weights, (n_out, n_in)."""
    A = np.zeros((n_out, n_in), dtype=np.float32)
    if n_in == 1:
        A[:, 0] = 1.0
        return A
    for i in range(n_out):
        src = i * (n_in - 1) / (n_out - 1)
        i0 = int(np.floor(src))
        i1 = min(i0 + 1, n_in - 1)
        f = src - i0
        A[i, i0] += 1.0 - f
        A[i, i1] += f
    return A


def _banded_conv(w, Wa):
    """(3, 3, Cin, Cout) HWIO conv weight -> (3, Wa*Cin, Wa*Cout) W-band matrix.

    wb[dy][(w+dx-1)*Cin + ci, w*Cout + co] = w[dy, dx, ci, co] ('same' pad in W).
    """
    _, _, Cin, Cout = w.shape
    wb = np.zeros((3, Wa * Cin, Wa * Cout), np.float32)
    for dy in range(3):
        for dx in range(3):
            for wcol in range(Wa):
                wi = wcol + dx - 1
                if 0 <= wi < Wa:
                    wb[dy, wi * Cin:(wi + 1) * Cin,
                       wcol * Cout:(wcol + 1) * Cout] = w[dy, dx]
    return wb


def _fold_bn(conv, eps=1e-5):
    g = np.asarray(conv["gamma"], np.float32)
    beta = np.asarray(conv["beta"], np.float32)
    mean = np.asarray(conv["mean"], np.float32)
    var = np.asarray(conv["var"], np.float32)
    cb = np.asarray(conv["b"], np.float32)
    scale = g / np.sqrt(var + eps)
    bias = (cb - mean) * scale + beta
    return scale, bias


def _prepare_bottleneck(raw, H, W, Cx, Cs):
    Ho, Wo = 2 * H, 2 * W
    w1 = np.asarray(raw["conv1"]["w"], np.float32)   # (3,3,Cs+Cx,Cout)
    w2 = np.asarray(raw["conv2"]["w"], np.float32)   # (3,3,Cout,Cout)
    Cout = w1.shape[-1]
    s1, b1 = _fold_bn(raw["conv1"])
    s2, b2 = _fold_bn(raw["conv2"])

    # Lane-dense output: pad conv2's output channels so Wo*CoutP is a multiple
    # of 128 (unmasked vst); padded channels are exactly zero and are stripped
    # in the wrapper.
    CoutP = Cout
    if (Wo * Cout) % 128 != 0:
        for p in range(1, 9):
            if (Wo * (Cout + p)) % 128 == 0:
                CoutP = Cout + p
                break
    if CoutP != Cout:
        pad = CoutP - Cout
        w2 = np.concatenate([w2, np.zeros((3, 3, Cout, pad), np.float32)], -1)
        s2 = np.concatenate([s2, np.zeros(pad, np.float32)])
        b2 = np.concatenate([b2, np.zeros(pad, np.float32)])

    ah = _interp_matrix(H, Ho)                                    # (Ho, H)
    aw = _interp_matrix(W, Wo)                                    # (Wo, W)
    mw = np.kron(aw.T, np.eye(Cx, dtype=np.float32))              # (W*Cx, Wo*Cx)

    # NOTE: bf16 interpolation coefficients introduce ~1e-3 relative rounding
    # versus the f32 PyTorch reference (accumulation stays f32 on the MXU).
    prep = {
        "ah": jnp.asarray(ah, jnp.bfloat16),
        "mw": jnp.asarray(mw, jnp.bfloat16),
        "wb1x": jnp.asarray(_banded_conv(w1[:, :, Cs:, :], Wo), jnp.bfloat16),
        "s1": jnp.asarray(np.tile(s1, Wo)[None, :]),
        "b1": jnp.asarray(np.tile(b1, Wo)[None, :]),
        "wb2": jnp.asarray(_banded_conv(w2, Wo), jnp.bfloat16),
        "s2": jnp.asarray(np.tile(s2, Wo)[None, :]),
        "b2": jnp.asarray(np.tile(b2, Wo)[None, :]),
        "Ho": Ho, "Wo": Wo, "Cout": Cout, "CoutP": CoutP,
    }
    if Cs > 0:
        prep["wb1c"] = jnp.asarray(_banded_conv(w1[:, :, :Cs, :], Wo),
                                   jnp.bfloat16)
    return prep


def prepare_decoder_params(raw, out_channels, H, W):
    """Precompute interp / banded / folded-BN matrices for input x of (H, W)."""
    C = out_channels
    return {
        "decoder1": _prepare_bottleneck(raw["decoder1"], H, W, Cx=4 * C, Cs=4 * C),
        "decoder2": _prepare_bottleneck(raw["decoder2"], 2 * H, 2 * W, Cx=2 * C, Cs=2 * C),
        "decoder3": _prepare_bottleneck(raw["decoder3"], 4 * H, 4 * W, Cx=C, Cs=C),
        "decoder4": _prepare_bottleneck(raw["decoder4"], 8 * H, 8 * W, Cx=int(C / 2), Cs=0),
    }


# ---------------------------------------------------------------------------
# Deterministic synthetic init (mirrors the PyTorch module structure)
# ---------------------------------------------------------------------------
def _init_conv_bn(key, cin, cout):
    kw, kcb, kg, kb, km, kv = jax.random.split(key, 6)
    return {
        "w": jax.random.normal(kw, (3, 3, cin, cout), jnp.float32) / np.sqrt(9 * cin),
        "b": 0.05 * jax.random.normal(kcb, (cout,), jnp.float32),
        "gamma": 1.0 + 0.1 * jax.random.normal(kg, (cout,), jnp.float32),
        "beta": 0.1 * jax.random.normal(kb, (cout,), jnp.float32),
        "mean": 0.1 * jax.random.normal(km, (cout,), jnp.float32),
        "var": 1.0 + 0.1 * jax.random.uniform(kv, (cout,), jnp.float32),
    }


def _init_bottleneck(key, cin, cout):
    k1, k2 = jax.random.split(key)
    return {"conv1": _init_conv_bn(k1, cin, cout),
            "conv2": _init_conv_bn(k2, cout, cout)}


def init_decoder_params(key, out_channels):
    assert out_channels % 8 == 0, "out_channels must be divisible by 8"
    k1, k2, k3, k4 = jax.random.split(key, 4)
    C = out_channels
    return {
        "decoder1": _init_bottleneck(k1, C * 8, C * 2),
        "decoder2": _init_bottleneck(k2, C * 4, C),
        "decoder3": _init_bottleneck(k3, C * 2, int(C / 2)),
        "decoder4": _init_bottleneck(k4, int(C / 2), int(C / 8)),
    }


# ---------------------------------------------------------------------------
# Decoder forward (NCHW in / NCHW out)
# ---------------------------------------------------------------------------
def _nchw_to_flat(t):
    B, Cc, Hh, Ww = t.shape
    return (jnp.transpose(t, (0, 2, 3, 1))
            .reshape(B, Hh, Ww * Cc).astype(jnp.bfloat16))


def _strip_pad(y, stage):
    Cout, CoutP, Wo = stage["Cout"], stage["CoutP"], stage["Wo"]
    if CoutP == Cout:
        return y
    B, Hf, _ = y.shape
    return y.reshape(B, Hf, Wo, CoutP)[..., :Cout].reshape(B, Hf, Wo * Cout)


def decoder_forward(prep, x, x1, x2, x3):
    xf, x1f, x2f, x3f = (_nchw_to_flat(t) for t in (x, x1, x2, x3))
    y = _strip_pad(fused_bottleneck(prep["decoder1"], xf, x3f), prep["decoder1"])
    y = _strip_pad(fused_bottleneck(prep["decoder2"], y, x2f), prep["decoder2"])
    y = _strip_pad(fused_bottleneck(prep["decoder3"], y, x1f), prep["decoder3"])
    y = fused_bottleneck(prep["decoder4"], y, None)
    p4 = prep["decoder4"]
    B, Hf, _ = y.shape
    y = y.reshape(B, Hf, p4["Wo"], p4["CoutP"])[..., :p4["Cout"]]
    return jnp.transpose(y, (0, 3, 1, 2)).astype(jnp.float32)    # NCHW f32


if __name__ == "__main__":
    key = jax.random.PRNGKey(0)
    kp, kx, k1, k2, k3 = jax.random.split(key, 5)
    C = 8            # Decoder(out_channels=8)
    B, H, W = 2, 4, 4
    # Channel arithmetic required by the module:
    #   decoder1 in = 8C  -> x has 4C, x3 has 4C
    #   decoder2 in = 4C  -> x2 has 2C ; decoder3 in = 2C -> x1 has C
    x  = jax.random.normal(kx, (B, 4 * C, H, W), jnp.float32)            # (2, 32, 4, 4)
    x3 = jax.random.normal(k3, (B, 4 * C, 2 * H, 2 * W), jnp.float32)    # (2, 32, 8, 8)
    x2 = jax.random.normal(k2, (B, 2 * C, 4 * H, 4 * W), jnp.float32)    # (2, 16, 16, 16)
    x1 = jax.random.normal(k1, (B, 1 * C, 8 * H, 8 * W), jnp.float32)    # (2, 8, 32, 32)

    raw = init_decoder_params(kp, C)
    prep = prepare_decoder_params(raw, C, H, W)       # host-side, outside jit

    fwd = jax.jit(lambda a, b, c, d: decoder_forward(prep, a, b, c, d))
    out = fwd(x, x1, x2, x3)
    jax.block_until_ready(out)
    assert out.shape == (B, C // 8, 16 * H, 16 * W), out.shape
    assert bool(jnp.all(jnp.isfinite(out)))
    print("KERNEL_OK")
</pallas_src>

<mosaic_0001>
module attributes {stable_mosaic.version = 11 : i64} {
  func.func @kernel(%arg0: i32, %arg1: memref<1x8x128xbf16, #tpu.memory_space<vmem>>, %arg2: memref<1x16x256xbf16, #tpu.memory_space<vmem>>, %arg3: memref<16x8xbf16, #tpu.memory_space<vmem>>, %arg4: memref<128x256xbf16, #tpu.memory_space<vmem>>, %arg5: memref<3x256x128xbf16, #tpu.memory_space<vmem>>, %arg6: memref<3x256x128xbf16, #tpu.memory_space<vmem>>, %arg7: memref<1x128xf32, #tpu.memory_space<vmem>>, %arg8: memref<1x128xf32, #tpu.memory_space<vmem>>, %arg9: memref<3x128x128xbf16, #tpu.memory_space<vmem>>, %arg10: memref<1x128xf32, #tpu.memory_space<vmem>>, %arg11: memref<1x128xf32, #tpu.memory_space<vmem>>, %arg12: memref<1x16x128xbf16, #tpu.memory_space<vmem>>) attributes {dimension_semantics = [#tpu.dimension_semantics<parallel>], iteration_bounds = array<i64: 2>, scalar_prefetch = 0 : i64, scratch_operands = 0 : i64, tpu.core_type = #tpu.core_type<tc>, window_params = [{transform_indices = @transform_0, window_bounds = array<i64: 1, 8, 128>}, {transform_indices = @transform_1, window_bounds = array<i64: 1, 16, 256>}, {pipeline_mode = #tpu.pipeline_mode<synchronous>, transform_indices = @transform_2, window_bounds = array<i64: 16, 8>}, {pipeline_mode = #tpu.pipeline_mode<synchronous>, transform_indices = @transform_3, window_bounds = array<i64: 128, 256>}, {pipeline_mode = #tpu.pipeline_mode<synchronous>, transform_indices = @transform_4, window_bounds = array<i64: 3, 256, 128>}, {pipeline_mode = #tpu.pipeline_mode<synchronous>, transform_indices = @transform_5, window_bounds = array<i64: 3, 256, 128>}, {pipeline_mode = #tpu.pipeline_mode<synchronous>, transform_indices = @transform_6, window_bounds = array<i64: 1, 128>}, {pipeline_mode = #tpu.pipeline_mode<synchronous>, transform_indices = @transform_7, window_bounds = array<i64: 1, 128>}, {pipeline_mode = #tpu.pipeline_mode<synchronous>, transform_indices = @transform_8, window_bounds = array<i64: 3, 128, 128>}, {pipeline_mode = #tpu.pipeline_mode<synchronous>, transform_indices = @transform_9, window_bounds = array<i64: 1, 128>}, {pipeline_mode = #tpu.pipeline_mode<synchronous>, transform_indices = @transform_10, window_bounds = array<i64: 1, 128>}, {transform_indices = @transform_11, window_bounds = array<i64: 1, 16, 128>}]} {
    %0 = tpu.iota {dimensions = array<i32: 0>} : vector<16x1xi32>
    %c0_i32 = arith.constant 0 : i32
    %1 = vector.broadcast %c0_i32 : i32 to vector<16x1xi32>
    %2 = arith.cmpi sgt, %0, %1 : vector<16x1xi32>
    %3 = arith.extui %2 : vector<16x1xi1> to vector<16x1xi32>
    %4 = arith.sitofp %3 : vector<16x1xi32> to vector<16x1xf32>
    %c15_i32 = arith.constant 15 : i32
    %5 = vector.broadcast %c15_i32 : i32 to vector<16x1xi32>
    %6 = arith.cmpi slt, %0, %5 : vector<16x1xi32>
    %7 = arith.extui %6 : vector<16x1xi1> to vector<16x1xi32>
    %8 = arith.sitofp %7 : vector<16x1xi32> to vector<16x1xf32>
    %c0 = arith.constant 0 : index
    %c0_0 = arith.constant 0 : index
    %c0_1 = arith.constant 0 : index
    %9 = vector.load %arg1[%c0, %c0_0, %c0_1] : memref<1x8x128xbf16, #tpu.memory_space<vmem>>, vector<1x8x128xbf16>
    %10 = vector.shape_cast %9 : vector<1x8x128xbf16> to vector<8x128xbf16>
    %c0_2 = arith.constant 0 : index
    %c0_3 = arith.constant 0 : index
    %11 = vector.load %arg4[%c0_2, %c0_3] : memref<128x256xbf16, #tpu.memory_space<vmem>>, vector<128x256xbf16>
    %cst = arith.constant dense<0.000000e+00> : vector<8x256xf32>
    %12 = tpu.matmul %10, %11, %cst {dimension_numbers = #tpu.dot_dimension_numbers<[1], [0], [0], [1], [0, 0, 1, 1], [], []>} : vector<8x128xbf16>, vector<128x256xbf16>, vector<8x256xf32> -> vector<8x256xf32>
    %c0_4 = arith.constant 0 : index
    %c0_5 = arith.constant 0 : index
    %13 = vector.load %arg3[%c0_4, %c0_5] : memref<16x8xbf16, #tpu.memory_space<vmem>>, vector<16x8xbf16>
    %14 = arith.truncf %12 : vector<8x256xf32> to vector<8x256xbf16>
    %cst_6 = arith.constant dense<0.000000e+00> : vector<16x256xf32>
    %15 = tpu.matmul %13, %14, %cst_6 {dimension_numbers = #tpu.dot_dimension_numbers<[1], [0], [0], [1], [0, 0, 1, 1], [], []>} : vector<16x8xbf16>, vector<8x256xbf16>, vector<16x256xf32> -> vector<16x256xf32>
    %c1_i32 = arith.constant 1 : i32
    %16 = tpu.dynamic_rotate %15 by %c1_i32 dim 0 : vector<16x256xf32>, i32 -> vector<16x256xf32>
    %17 = vector.broadcast %4 : vector<16x1xf32> to vector<16x256xf32>
    %18 = arith.mulf %16, %17 : vector<16x256xf32>
    %c15_i32_7 = arith.constant 15 : i32
    %19 = tpu.dynamic_rotate %15 by %c15_i32_7 dim 0 : vector<16x256xf32>, i32 -> vector<16x256xf32>
    %20 = vector.broadcast %8 : vector<16x1xf32> to vector<16x256xf32>
    %21 = arith.mulf %19, %20 : vector<16x256xf32>
    %22 = arith.truncf %18 : vector<16x256xf32> to vector<16x256xbf16>
    %c0_8 = arith.constant 0 : index
    %c0_9 = arith.constant 0 : index
    %c0_10 = arith.constant 0 : index
    %23 = vector.load %arg5[%c0_8, %c0_9, %c0_10] : memref<3x256x128xbf16, #tpu.memory_space<vmem>>, vector<1x256x128xbf16>
    %24 = vector.shape_cast %23 : vector<1x256x128xbf16> to vector<256x128xbf16>
    %cst_11 = arith.constant dense<0.000000e+00> : vector<16x128xf32>
    %25 = tpu.matmul %22, %24, %cst_11 {dimension_numbers = #tpu.dot_dimension_numbers<[1], [0], [0], [1], [0, 0, 1, 1], [], []>} : vector<16x256xbf16>, vector<256x128xbf16>, vector<16x128xf32> -> vector<16x128xf32>
    %26 = arith.truncf %15 : vector<16x256xf32> to vector<16x256xbf16>
    %c1 = arith.constant 1 : index
    %c0_12 = arith.constant 0 : index
    %c0_13 = arith.constant 0 : index
    %27 = vector.load %arg5[%c1, %c0_12, %c0_13] : memref<3x256x128xbf16, #tpu.memory_space<vmem>>, vector<1x256x128xbf16>
    %28 = vector.shape_cast %27 : vector<1x256x128xbf16> to vector<256x128xbf16>
    %cst_14 = arith.constant dense<0.000000e+00> : vector<16x128xf32>
    %29 = tpu.matmul %26, %28, %cst_14 {dimension_numbers = #tpu.dot_dimension_numbers<[1], [0], [0], [1], [0, 0, 1, 1], [], []>} : vector<16x256xbf16>, vector<256x128xbf16>, vector<16x128xf32> -> vector<16x128xf32>
    %30 = arith.addf %25, %29 : vector<16x128xf32>
    %31 = arith.truncf %21 : vector<16x256xf32> to vector<16x256xbf16>
    %c2 = arith.constant 2 : index
    %c0_15 = arith.constant 0 : index
    %c0_16 = arith.constant 0 : index
    %32 = vector.load %arg5[%c2, %c0_15, %c0_16] : memref<3x256x128xbf16, #tpu.memory_space<vmem>>, vector<1x256x128xbf16>
    %33 = vector.shape_cast %32 : vector<1x256x128xbf16> to vector<256x128xbf16>
    %cst_17 = arith.constant dense<0.000000e+00> : vector<16x128xf32>
    %34 = tpu.matmul %31, %33, %cst_17 {dimension_numbers = #tpu.dot_dimension_numbers<[1], [0], [0], [1], [0, 0, 1, 1], [], []>} : vector<16x256xbf16>, vector<256x128xbf16>, vector<16x128xf32> -> vector<16x128xf32>
    %35 = arith.addf %30, %34 : vector<16x128xf32>
    %c0_18 = arith.constant 0 : index
    %c0_19 = arith.constant 0 : index
    %c0_20 = arith.constant 0 : index
    %36 = vector.load %arg2[%c0_18, %c0_19, %c0_20] : memref<1x16x256xbf16, #tpu.memory_space<vmem>>, vector<1x16x256xbf16>
    %37 = vector.shape_cast %36 : vector<1x16x256xbf16> to vector<16x256xbf16>
    %38 = arith.extf %37 : vector<16x256xbf16> to vector<16x256xf32>
    %c1_i32_21 = arith.constant 1 : i32
    %39 = tpu.dynamic_rotate %38 by %c1_i32_21 dim 0 : vector<16x256xf32>, i32 -> vector<16x256xf32>
    %40 = vector.broadcast %4 : vector<16x1xf32> to vector<16x256xf32>
    %41 = arith.mulf %39, %40 : vector<16x256xf32>
    %c15_i32_22 = arith.constant 15 : i32
    %42 = tpu.dynamic_rotate %38 by %c15_i32_22 dim 0 : vector<16x256xf32>, i32 -> vector<16x256xf32>
    %43 = vector.broadcast %8 : vector<16x1xf32> to vector<16x256xf32>
    %44 = arith.mulf %42, %43 : vector<16x256xf32>
    %45 = arith.truncf %41 : vector<16x256xf32> to vector<16x256xbf16>
    %c0_23 = arith.constant 0 : index
    %c0_24 = arith.constant 0 : index
    %c0_25 = arith.constant 0 : index
    %46 = vector.load %arg6[%c0_23, %c0_24, %c0_25] : memref<3x256x128xbf16, #tpu.memory_space<vmem>>, vector<1x256x128xbf16>
    %47 = vector.shape_cast %46 : vector<1x256x128xbf16> to vector<256x128xbf16>
    %cst_26 = arith.constant dense<0.000000e+00> : vector<16x128xf32>
    %48 = tpu.matmul %45, %47, %cst_26 {dimension_numbers = #tpu.dot_dimension_numbers<[1], [0], [0], [1], [0, 0, 1, 1], [], []>} : vector<16x256xbf16>, vector<256x128xbf16>, vector<16x128xf32> -> vector<16x128xf32>
    %49 = arith.truncf %38 : vector<16x256xf32> to vector<16x256xbf16>
    %c1_27 = arith.constant 1 : index
    %c0_28 = arith.constant 0 : index
    %c0_29 = arith.constant 0 : index
    %50 = vector.load %arg6[%c1_27, %c0_28, %c0_29] : memref<3x256x128xbf16, #tpu.memory_space<vmem>>, vector<1x256x128xbf16>
    %51 = vector.shape_cast %50 : vector<1x256x128xbf16> to vector<256x128xbf16>
    %cst_30 = arith.constant dense<0.000000e+00> : vector<16x128xf32>
    %52 = tpu.matmul %49, %51, %cst_30 {dimension_numbers = #tpu.dot_dimension_numbers<[1], [0], [0], [1], [0, 0, 1, 1], [], []>} : vector<16x256xbf16>, vector<256x128xbf16>, vector<16x128xf32> -> vector<16x128xf32>
    %53 = arith.addf %48, %52 : vector<16x128xf32>
    %54 = arith.truncf %44 : vector<16x256xf32> to vector<16x256xbf16>
    %c2_31 = arith.constant 2 : index
    %c0_32 = arith.constant 0 : index
    %c0_33 = arith.constant 0 : index
    %55 = vector.load %arg6[%c2_31, %c0_32, %c0_33] : memref<3x256x128xbf16, #tpu.memory_space<vmem>>, vector<1x256x128xbf16>
    %56 = vector.shape_cast %55 : vector<1x256x128xbf16> to vector<256x128xbf16>
    %cst_34 = arith.constant dense<0.000000e+00> : vector<16x128xf32>
    %57 = tpu.matmul %54, %56, %cst_34 {dimension_numbers = #tpu.dot_dimension_numbers<[1], [0], [0], [1], [0, 0, 1, 1], [], []>} : vector<16x256xbf16>, vector<256x128xbf16>, vector<16x128xf32> -> vector<16x128xf32>
    %58 = arith.addf %53, %57 : vector<16x128xf32>
    %59 = arith.addf %35, %58 : vector<16x128xf32>
    %c0_35 = arith.constant 0 : index
    %c0_36 = arith.constant 0 : index
    %60 = vector.load %arg7[%c0_35, %c0_36] : memref<1x128xf32, #tpu.memory_space<vmem>>, vector<1x128xf32>
    %61 = vector.broadcast %60 : vector<1x128xf32> to vector<16x128xf32>
    %62 = arith.mulf %59, %61 : vector<16x128xf32>
    %c0_37 = arith.constant 0 : index
    %c0_38 = arith.constant 0 : index
    %63 = vector.load %arg8[%c0_37, %c0_38] : memref<1x128xf32, #tpu.memory_space<vmem>>, vector<1x128xf32>
    %64 = vector.broadcast %63 : vector<1x128xf32> to vector<16x128xf32>
    %65 = arith.addf %62, %64 : vector<16x128xf32>
    %cst_39 = arith.constant 0.000000e+00 : f32
    %66 = vector.broadcast %cst_39 : f32 to vector<16x128xf32>
    %67 = arith.maximumf %65, %66 : vector<16x128xf32>
    %c1_i32_40 = arith.constant 1 : i32
    %68 = tpu.dynamic_rotate %67 by %c1_i32_40 dim 0 : vector<16x128xf32>, i32 -> vector<16x128xf32>
    %69 = vector.broadcast %4 : vector<16x1xf32> to vector<16x128xf32>
    %70 = arith.mulf %68, %69 : vector<16x128xf32>
    %c15_i32_41 = arith.constant 15 : i32
    %71 = tpu.dynamic_rotate %67 by %c15_i32_41 dim 0 : vector<16x128xf32>, i32 -> vector<16x128xf32>
    %72 = vector.broadcast %8 : vector<16x1xf32> to vector<16x128xf32>
    %73 = arith.mulf %71, %72 : vector<16x128xf32>
    %74 = arith.truncf %70 : vector<16x128xf32> to vector<16x128xbf16>
    %c0_42 = arith.constant 0 : index
    %c0_43 = arith.constant 0 : index
    %c0_44 = arith.constant 0 : index
    %75 = vector.load %arg9[%c0_42, %c0_43, %c0_44] : memref<3x128x128xbf16, #tpu.memory_space<vmem>>, vector<1x128x128xbf16>
    %76 = vector.shape_cast %75 : vector<1x128x128xbf16> to vector<128x128xbf16>
    %cst_45 = arith.constant dense<0.000000e+00> : vector<16x128xf32>
    %77 = tpu.matmul %74, %76, %cst_45 {dimension_numbers = #tpu.dot_dimension_numbers<[1], [0], [0], [1], [0, 0, 1, 1], [], []>} : vector<16x128xbf16>, vector<128x128xbf16>, vector<16x128xf32> -> vector<16x128xf32>
    %78 = arith.truncf %67 : vector<16x128xf32> to vector<16x128xbf16>
    %c1_46 = arith.constant 1 : index
    %c0_47 = arith.constant 0 : index
    %c0_48 = arith.constant 0 : index
    %79 = vector.load %arg9[%c1_46, %c0_47, %c0_48] : memref<3x128x128xbf16, #tpu.memory_space<vmem>>, vector<1x128x128xbf16>
    %80 = vector.shape_cast %79 : vector<1x128x128xbf16> to vector<128x128xbf16>
    %cst_49 = arith.constant dense<0.000000e+00> : vector<16x128xf32>
    %81 = tpu.matmul %78, %80, %cst_49 {dimension_numbers = #tpu.dot_dimension_numbers<[1], [0], [0], [1], [0, 0, 1, 1], [], []>} : vector<16x128xbf16>, vector<128x128xbf16>, vector<16x128xf32> -> vector<16x128xf32>
    %82 = arith.addf %77, %81 : vector<16x128xf32>
    %83 = arith.truncf %73 : vector<16x128xf32> to vector<16x128xbf16>
    %c2_50 = arith.constant 2 : index
    %c0_51 = arith.constant 0 : index
    %c0_52 = arith.constant 0 : index
    %84 = vector.load %arg9[%c2_50, %c0_51, %c0_52] : memref<3x128x128xbf16, #tpu.memory_space<vmem>>, vector<1x128x128xbf16>
    %85 = vector.shape_cast %84 : vector<1x128x128xbf16> to vector<128x128xbf16>
    %cst_53 = arith.constant dense<0.000000e+00> : vector<16x128xf32>
    %86 = tpu.matmul %83, %85, %cst_53 {dimension_numbers = #tpu.dot_dimension_numbers<[1], [0], [0], [1], [0, 0, 1, 1], [], []>} : vector<16x128xbf16>, vector<128x128xbf16>, vector<16x128xf32> -> vector<16x128xf32>
    %87 = arith.addf %82, %86 : vector<16x128xf32>
    %c0_54 = arith.constant 0 : index
    %c0_55 = arith.constant 0 : index
    %88 = vector.load %arg10[%c0_54, %c0_55] : memref<1x128xf32, #tpu.memory_space<vmem>>, vector<1x128xf32>
    %89 = vector.broadcast %88 : vector<1x128xf32> to vector<16x128xf32>
    %90 = arith.mulf %87, %89 : vector<16x128xf32>
    %c0_56 = arith.constant 0 : index
    %c0_57 = arith.constant 0 : index
    %91 = vector.load %arg11[%c0_56, %c0_57] : memref<1x128xf32, #tpu.memory_space<vmem>>, vector<1x128xf32>
    %92 = vector.broadcast %91 : vector<1x128xf32> to vector<16x128xf32>
    %93 = arith.addf %90, %92 : vector<16x128xf32>
    %cst_58 = arith.constant 0.000000e+00 : f32
    %94 = vector.broadcast %cst_58 : f32 to vector<16x128xf32>
    %95 = arith.maximumf %93, %94 : vector<16x128xf32>
    %96 = arith.truncf %95 : vector<16x128xf32> to vector<16x128xbf16>
    %c0_59 = arith.constant 0 : index
    %c0_60 = arith.constant 0 : index
    %c0_61 = arith.constant 0 : index
    %97 = vector.load %arg12[%c0_59, %c0_60, %c0_61] : memref<1x16x128xbf16, #tpu.memory_space<vmem>>, vector<1x16x128xbf16>
    %98 = vector.shape_cast %97 : vector<1x16x128xbf16> to vector<16x128xbf16>
    %99 = vector.shape_cast %96 : vector<16x128xbf16> to vector<1x16x128xbf16>
    tpu.vector_store %arg12[%c0_59, %c0_60, %c0_61], %99 {strides = array<i32>} : memref<1x16x128xbf16, #tpu.memory_space<vmem>>, vector<1x16x128xbf16>,
    return
  }
  func.func @transform_0(%arg0: i32) -> (i32, i32, i32) {
    %c0_i32 = arith.constant 0 : i32
    %c0_i32_0 = arith.constant 0 : i32
    %c0_i32_1 = arith.constant 0 : i32
    return %arg0, %c0_i32, %c0_i32_0 : i32, i32, i32
  }
  func.func @transform_1(%arg0: i32) -> (i32, i32, i32) {
    %c0_i32 = arith.constant 0 : i32
    %c0_i32_0 = arith.constant 0 : i32
    %c0_i32_1 = arith.constant 0 : i32
    return %arg0, %c0_i32, %c0_i32_0 : i32, i32, i32
  }
  func.func @transform_2(%arg0: i32) -> (i32, i32) {
    %c0_i32 = arith.constant 0 : i32
    %c0_i32_0 = arith.constant 0 : i32
    %c0_i32_1 = arith.constant 0 : i32
    return %c0_i32, %c0_i32_0 : i32, i32
  }
  func.func @transform_3(%arg0: i32) -> (i32, i32) {
    %c0_i32 = arith.constant 0 : i32
    %c0_i32_0 = arith.constant 0 : i32
    %c0_i32_1 = arith.constant 0 : i32
    return %c0_i32, %c0_i32_0 : i32, i32
  }
  func.func @transform_4(%arg0: i32) -> (i32, i32, i32) {
    %c0_i32 = arith.constant 0 : i32
    %c0_i32_0 = arith.constant 0 : i32
    %c0_i32_1 = arith.constant 0 : i32
    %c0_i32_2 = arith.constant 0 : i32
    return %c0_i32, %c0_i32_0, %c0_i32_1 : i32, i32, i32
  }
  func.func @transform_5(%arg0: i32) -> (i32, i32, i32) {
    %c0_i32 = arith.constant 0 : i32
    %c0_i32_0 = arith.constant 0 : i32
    %c0_i32_1 = arith.constant 0 : i32
    %c0_i32_2 = arith.constant 0 : i32
    return %c0_i32, %c0_i32_0, %c0_i32_1 : i32, i32, i32
  }
  func.func @transform_6(%arg0: i32) -> (i32, i32) {
    %c0_i32 = arith.constant 0 : i32
    %c0_i32_0 = arith.constant 0 : i32
    %c0_i32_1 = arith.constant 0 : i32
    return %c0_i32, %c0_i32_0 : i32, i32
  }
  func.func @transform_7(%arg0: i32) -> (i32, i32) {
    %c0_i32 = arith.constant 0 : i32
    %c0_i32_0 = arith.constant 0 : i32
    %c0_i32_1 = arith.constant 0 : i32
    return %c0_i32, %c0_i32_0 : i32, i32
  }
  func.func @transform_8(%arg0: i32) -> (i32, i32, i32) {
    %c0_i32 = arith.constant 0 : i32
    %c0_i32_0 = arith.constant 0 : i32
    %c0_i32_1 = arith.constant 0 : i32
    %c0_i32_2 = arith.constant 0 : i32
    return %c0_i32, %c0_i32_0, %c0_i32_1 : i32, i32, i32
  }
  func.func @transform_9(%arg0: i32) -> (i32, i32) {
    %c0_i32 = arith.constant 0 : i32
    %c0_i32_0 = arith.constant 0 : i32
    %c0_i32_1 = arith.constant 0 : i32
    return %c0_i32, %c0_i32_0 : i32, i32
  }
  func.func @transform_10(%arg0: i32) -> (i32, i32) {
    %c0_i32 = arith.constant 0 : i32
    %c0_i32_0 = arith.constant 0 : i32
    %c0_i32_1 = arith.constant 0 : i32
    return %c0_i32, %c0_i32_0 : i32, i32
  }
  func.func @transform_11(%arg0: i32) -> (i32, i32, i32) {
    %c0_i32 = arith.constant 0 : i32
    %c0_i32_0 = arith.constant 0 : i32
    %c0_i32_1 = arith.constant 0 : i32
    return %arg0, %c0_i32, %c0_i32_0 : i32, i32, i32
  }
}

module attributes {stable_mosaic.version = 11 : i64} {
  func.func @kernel(%arg0: i32, %arg1: memref<1x4x128xbf16, #tpu.memory_space<vmem>>, %arg2: memref<1x8x256xbf16, #tpu.memory_space<vmem>>, %arg3: memref<8x4xbf16, #tpu.memory_space<vmem>>, %arg4: memref<128x256xbf16, #tpu.memory_space<vmem>>, %arg5: memref<3x256x128xbf16, #tpu.memory_space<vmem>>, %arg6: memref<3x256x128xbf16, #tpu.memory_space<vmem>>, %arg7: memref<1x128xf32, #tpu.memory_space<vmem>>, %arg8: memref<1x128xf32, #tpu.memory_space<vmem>>, %arg9: memref<3x128x128xbf16, #tpu.memory_space<vmem>>, %arg10: memref<1x128xf32, #tpu.memory_space<vmem>>, %arg11: memref<1x128xf32, #tpu.memory_space<vmem>>, %arg12: memref<1x8x128xbf16, #tpu.memory_space<vmem>>) attributes {dimension_semantics = [#tpu.dimension_semantics<parallel>], iteration_bounds = array<i64: 2>, scalar_prefetch = 0 : i64, scratch_operands = 0 : i64, tpu.core_type = #tpu.core_type<tc>, window_params = [{transform_indices = @transform_0, window_bounds = array<i64: 1, 4, 128>}, {transform_indices = @transform_1, window_bounds = array<i64: 1, 8, 256>}, {pipeline_mode = #tpu.pipeline_mode<synchronous>, transform_indices = @transform_2, window_bounds = array<i64: 8, 4>}, {pipeline_mode = #tpu.pipeline_mode<synchronous>, transform_indices = @transform_3, window_bounds = array<i64: 128, 256>}, {pipeline_mode = #tpu.pipeline_mode<synchronous>, transform_indices = @transform_4, window_bounds = array<i64: 3, 256, 128>}, {pipeline_mode = #tpu.pipeline_mode<synchronous>, transform_indices = @transform_5, window_bounds = array<i64: 3, 256, 128>}, {pipeline_mode = #tpu.pipeline_mode<synchronous>, transform_indices = @transform_6, window_bounds = array<i64: 1, 128>}, {pipeline_mode = #tpu.pipeline_mode<synchronous>, transform_indices = @transform_7, window_bounds = array<i64: 1, 128>}, {pipeline_mode = #tpu.pipeline_mode<synchronous>, transform_indices = @transform_8, window_bounds = array<i64: 3, 128, 128>}, {pipeline_mode = #tpu.pipeline_mode<synchronous>, transform_indices = @transform_9, window_bounds = array<i64: 1, 128>}, {pipeline_mode = #tpu.pipeline_mode<synchronous>, transform_indices = @transform_10, window_bounds = array<i64: 1, 128>}, {transform_indices = @transform_11, window_bounds = array<i64: 1, 8, 128>}]} {
    %0 = tpu.iota {dimensions = array<i32: 0>} : vector<8x1xi32>
    %c0_i32 = arith.constant 0 : i32
    %1 = vector.broadcast %c0_i32 : i32 to vector<8x1xi32>
    %2 = arith.cmpi sgt, %0, %1 : vector<8x1xi32>
    %3 = arith.extui %2 : vector<8x1xi1> to vector<8x1xi32>
    %4 = arith.sitofp %3 : vector<8x1xi32> to vector<8x1xf32>
    %c7_i32 = arith.constant 7 : i32
    %5 = vector.broadcast %c7_i32 : i32 to vector<8x1xi32>
    %6 = arith.cmpi slt, %0, %5 : vector<8x1xi32>
    %7 = arith.extui %6 : vector<8x1xi1> to vector<8x1xi32>
    %8 = arith.sitofp %7 : vector<8x1xi32> to vector<8x1xf32>
    %c0 = arith.constant 0 : index
    %c0_0 = arith.constant 0 : index
    %c0_1 = arith.constant 0 : index
    %9 = vector.load %arg1[%c0, %c0_0, %c0_1] : memref<1x4x128xbf16, #tpu.memory_space<vmem>>, vector<1x4x128xbf16>
    %10 = vector.shape_cast %9 : vector<1x4x128xbf16> to vector<4x128xbf16>
    %c0_2 = arith.constant 0 : index
    %c0_3 = arith.constant 0 : index
    %11 = vector.load %arg4[%c0_2, %c0_3] : memref<128x256xbf16, #tpu.memory_space<vmem>>, vector<128x256xbf16>
    %cst = arith.constant dense<0.000000e+00> : vector<4x256xf32>
    %12 = tpu.matmul %10, %11, %cst {dimension_numbers = #tpu.dot_dimension_numbers<[1], [0], [0], [1], [0, 0, 1, 1], [], []>} : vector<4x128xbf16>, vector<128x256xbf16>, vector<4x256xf32> -> vector<4x256xf32>
    %c0_4 = arith.constant 0 : index
    %c0_5 = arith.constant 0 : index
    %13 = vector.load %arg3[%c0_4, %c0_5] : memref<8x4xbf16, #tpu.memory_space<vmem>>, vector<8x4xbf16>
    %14 = arith.truncf %12 : vector<4x256xf32> to vector<4x256xbf16>
    %cst_6 = arith.constant dense<0.000000e+00> : vector<8x256xf32>
    %15 = tpu.matmul %13, %14, %cst_6 {dimension_numbers = #tpu.dot_dimension_numbers<[1], [0], [0], [1], [0, 0, 1, 1], [], []>} : vector<8x4xbf16>, vector<4x256xbf16>, vector<8x256xf32> -> vector<8x256xf32>
    %c1_i32 = arith.constant 1 : i32
    %16 = tpu.dynamic_rotate %15 by %c1_i32 dim 0 : vector<8x256xf32>, i32 -> vector<8x256xf32>
    %17 = vector.broadcast %4 : vector<8x1xf32> to vector<8x256xf32>
    %18 = arith.mulf %16, %17 : vector<8x256xf32>
    %c7_i32_7 = arith.constant 7 : i32
    %19 = tpu.dynamic_rotate %15 by %c7_i32_7 dim 0 : vector<8x256xf32>, i32 -> vector<8x256xf32>
    %20 = vector.broadcast %8 : vector<8x1xf32> to vector<8x256xf32>
    %21 = arith.mulf %19, %20 : vector<8x256xf32>
    %22 = arith.truncf %18 : vector<8x256xf32> to vector<8x256xbf16>
    %c0_8 = arith.constant 0 : index
    %c0_9 = arith.constant 0 : index
    %c0_10 = arith.constant 0 : index
    %23 = vector.load %arg5[%c0_8, %c0_9, %c0_10] : memref<3x256x128xbf16, #tpu.memory_space<vmem>>, vector<1x256x128xbf16>
    %24 = vector.shape_cast %23 : vector<1x256x128xbf16> to vector<256x128xbf16>
    %cst_11 = arith.constant dense<0.000000e+00> : vector<8x128xf32>
    %25 = tpu.matmul %22, %24, %cst_11 {dimension_numbers = #tpu.dot_dimension_numbers<[1], [0], [0], [1], [0, 0, 1, 1], [], []>} : vector<8x256xbf16>, vector<256x128xbf16>, vector<8x128xf32> -> vector<8x128xf32>
    %26 = arith.truncf %15 : vector<8x256xf32> to vector<8x256xbf16>
    %c1 = arith.constant 1 : index
    %c0_12 = arith.constant 0 : index
    %c0_13 = arith.constant 0 : index
    %27 = vector.load %arg5[%c1, %c0_12, %c0_13] : memref<3x256x128xbf16, #tpu.memory_space<vmem>>, vector<1x256x128xbf16>
    %28 = vector.shape_cast %27 : vector<1x256x128xbf16> to vector<256x128xbf16>
    %cst_14 = arith.constant dense<0.000000e+00> : vector<8x128xf32>
    %29 = tpu.matmul %26, %28, %cst_14 {dimension_numbers = #tpu.dot_dimension_numbers<[1], [0], [0], [1], [0, 0, 1, 1], [], []>} : vector<8x256xbf16>, vector<256x128xbf16>, vector<8x128xf32> -> vector<8x128xf32>
    %30 = arith.addf %25, %29 : vector<8x128xf32>
    %31 = arith.truncf %21 : vector<8x256xf32> to vector<8x256xbf16>
    %c2 = arith.constant 2 : index
    %c0_15 = arith.constant 0 : index
    %c0_16 = arith.constant 0 : index
    %32 = vector.load %arg5[%c2, %c0_15, %c0_16] : memref<3x256x128xbf16, #tpu.memory_space<vmem>>, vector<1x256x128xbf16>
    %33 = vector.shape_cast %32 : vector<1x256x128xbf16> to vector<256x128xbf16>
    %cst_17 = arith.constant dense<0.000000e+00> : vector<8x128xf32>
    %34 = tpu.matmul %31, %33, %cst_17 {dimension_numbers = #tpu.dot_dimension_numbers<[1], [0], [0], [1], [0, 0, 1, 1], [], []>} : vector<8x256xbf16>, vector<256x128xbf16>, vector<8x128xf32> -> vector<8x128xf32>
    %35 = arith.addf %30, %34 : vector<8x128xf32>
    %c0_18 = arith.constant 0 : index
    %c0_19 = arith.constant 0 : index
    %c0_20 = arith.constant 0 : index
    %36 = vector.load %arg2[%c0_18, %c0_19, %c0_20] : memref<1x8x256xbf16, #tpu.memory_space<vmem>>, vector<1x8x256xbf16>
    %37 = vector.shape_cast %36 : vector<1x8x256xbf16> to vector<8x256xbf16>
    %38 = arith.extf %37 : vector<8x256xbf16> to vector<8x256xf32>
    %c1_i32_21 = arith.constant 1 : i32
    %39 = tpu.dynamic_rotate %38 by %c1_i32_21 dim 0 : vector<8x256xf32>, i32 -> vector<8x256xf32>
    %40 = vector.broadcast %4 : vector<8x1xf32> to vector<8x256xf32>
    %41 = arith.mulf %39, %40 : vector<8x256xf32>
    %c7_i32_22 = arith.constant 7 : i32
    %42 = tpu.dynamic_rotate %38 by %c7_i32_22 dim 0 : vector<8x256xf32>, i32 -> vector<8x256xf32>
    %43 = vector.broadcast %8 : vector<8x1xf32> to vector<8x256xf32>
    %44 = arith.mulf %42, %43 : vector<8x256xf32>
    %45 = arith.truncf %41 : vector<8x256xf32> to vector<8x256xbf16>
    %c0_23 = arith.constant 0 : index
    %c0_24 = arith.constant 0 : index
    %c0_25 = arith.constant 0 : index
    %46 = vector.load %arg6[%c0_23, %c0_24, %c0_25] : memref<3x256x128xbf16, #tpu.memory_space<vmem>>, vector<1x256x128xbf16>
    %47 = vector.shape_cast %46 : vector<1x256x128xbf16> to vector<256x128xbf16>
    %cst_26 = arith.constant dense<0.000000e+00> : vector<8x128xf32>
    %48 = tpu.matmul %45, %47, %cst_26 {dimension_numbers = #tpu.dot_dimension_numbers<[1], [0], [0], [1], [0, 0, 1, 1], [], []>} : vector<8x256xbf16>, vector<256x128xbf16>, vector<8x128xf32> -> vector<8x128xf32>
    %49 = arith.truncf %38 : vector<8x256xf32> to vector<8x256xbf16>
    %c1_27 = arith.constant 1 : index
    %c0_28 = arith.constant 0 : index
    %c0_29 = arith.constant 0 : index
    %50 = vector.load %arg6[%c1_27, %c0_28, %c0_29] : memref<3x256x128xbf16, #tpu.memory_space<vmem>>, vector<1x256x128xbf16>
    %51 = vector.shape_cast %50 : vector<1x256x128xbf16> to vector<256x128xbf16>
    %cst_30 = arith.constant dense<0.000000e+00> : vector<8x128xf32>
    %52 = tpu.matmul %49, %51, %cst_30 {dimension_numbers = #tpu.dot_dimension_numbers<[1], [0], [0], [1], [0, 0, 1, 1], [], []>} : vector<8x256xbf16>, vector<256x128xbf16>, vector<8x128xf32> -> vector<8x128xf32>
    %53 = arith.addf %48, %52 : vector<8x128xf32>
    %54 = arith.truncf %44 : vector<8x256xf32> to vector<8x256xbf16>
    %c2_31 = arith.constant 2 : index
    %c0_32 = arith.constant 0 : index
    %c0_33 = arith.constant 0 : index
    %55 = vector.load %arg6[%c2_31, %c0_32, %c0_33] : memref<3x256x128xbf16, #tpu.memory_space<vmem>>, vector<1x256x128xbf16>
    %56 = vector.shape_cast %55 : vector<1x256x128xbf16> to vector<256x128xbf16>
    %cst_34 = arith.constant dense<0.000000e+00> : vector<8x128xf32>
    %57 = tpu.matmul %54, %56, %cst_34 {dimension_numbers = #tpu.dot_dimension_numbers<[1], [0], [0], [1], [0, 0, 1, 1], [], []>} : vector<8x256xbf16>, vector<256x128xbf16>, vector<8x128xf32> -> vector<8x128xf32>
    %58 = arith.addf %53, %57 : vector<8x128xf32>
    %59 = arith.addf %35, %58 : vector<8x128xf32>
    %c0_35 = arith.constant 0 : index
    %c0_36 = arith.constant 0 : index
    %60 = vector.load %arg7[%c0_35, %c0_36] : memref<1x128xf32, #tpu.memory_space<vmem>>, vector<1x128xf32>
    %61 = vector.broadcast %60 : vector<1x128xf32> to vector<8x128xf32>
    %62 = arith.mulf %59, %61 : vector<8x128xf32>
    %c0_37 = arith.constant 0 : index
    %c0_38 = arith.constant 0 : index
    %63 = vector.load %arg8[%c0_37, %c0_38] : memref<1x128xf32, #tpu.memory_space<vmem>>, vector<1x128xf32>
    %64 = vector.broadcast %63 : vector<1x128xf32> to vector<8x128xf32>
    %65 = arith.addf %62, %64 : vector<8x128xf32>
    %cst_39 = arith.constant 0.000000e+00 : f32
    %66 = vector.broadcast %cst_39 : f32 to vector<8x128xf32>
    %67 = arith.maximumf %65, %66 : vector<8x128xf32>
    %c1_i32_40 = arith.constant 1 : i32
    %68 = tpu.dynamic_rotate %67 by %c1_i32_40 dim 0 : vector<8x128xf32>, i32 -> vector<8x128xf32>
    %69 = vector.broadcast %4 : vector<8x1xf32> to vector<8x128xf32>
    %70 = arith.mulf %68, %69 : vector<8x128xf32>
    %c7_i32_41 = arith.constant 7 : i32
    %71 = tpu.dynamic_rotate %67 by %c7_i32_41 dim 0 : vector<8x128xf32>, i32 -> vector<8x128xf32>
    %72 = vector.broadcast %8 : vector<8x1xf32> to vector<8x128xf32>
    %73 = arith.mulf %71, %72 : vector<8x128xf32>
    %74 = arith.truncf %70 : vector<8x128xf32> to vector<8x128xbf16>
    %c0_42 = arith.constant 0 : index
    %c0_43 = arith.constant 0 : index
    %c0_44 = arith.constant 0 : index
    %75 = vector.load %arg9[%c0_42, %c0_43, %c0_44] : memref<3x128x128xbf16, #tpu.memory_space<vmem>>, vector<1x128x128xbf16>
    %76 = vector.shape_cast %75 : vector<1x128x128xbf16> to vector<128x128xbf16>
    %cst_45 = arith.constant dense<0.000000e+00> : vector<8x128xf32>
    %77 = tpu.matmul %74, %76, %cst_45 {dimension_numbers = #tpu.dot_dimension_numbers<[1], [0], [0], [1], [0, 0, 1, 1], [], []>} : vector<8x128xbf16>, vector<128x128xbf16>, vector<8x128xf32> -> vector<8x128xf32>
    %78 = arith.truncf %67 : vector<8x128xf32> to vector<8x128xbf16>
    %c1_46 = arith.constant 1 : index
    %c0_47 = arith.constant 0 : index
    %c0_48 = arith.constant 0 : index
    %79 = vector.load %arg9[%c1_46, %c0_47, %c0_48] : memref<3x128x128xbf16, #tpu.memory_space<vmem>>, vector<1x128x128xbf16>
    %80 = vector.shape_cast %79 : vector<1x128x128xbf16> to vector<128x128xbf16>
    %cst_49 = arith.constant dense<0.000000e+00> : vector<8x128xf32>
    %81 = tpu.matmul %78, %80, %cst_49 {dimension_numbers = #tpu.dot_dimension_numbers<[1], [0], [0], [1], [0, 0, 1, 1], [], []>} : vector<8x128xbf16>, vector<128x128xbf16>, vector<8x128xf32> -> vector<8x128xf32>
    %82 = arith.addf %77, %81 : vector<8x128xf32>
    %83 = arith.truncf %73 : vector<8x128xf32> to vector<8x128xbf16>
    %c2_50 = arith.constant 2 : index
    %c0_51 = arith.constant 0 : index
    %c0_52 = arith.constant 0 : index
    %84 = vector.load %arg9[%c2_50, %c0_51, %c0_52] : memref<3x128x128xbf16, #tpu.memory_space<vmem>>, vector<1x128x128xbf16>
    %85 = vector.shape_cast %84 : vector<1x128x128xbf16> to vector<128x128xbf16>
    %cst_53 = arith.constant dense<0.000000e+00> : vector<8x128xf32>
    %86 = tpu.matmul %83, %85, %cst_53 {dimension_numbers = #tpu.dot_dimension_numbers<[1], [0], [0], [1], [0, 0, 1, 1], [], []>} : vector<8x128xbf16>, vector<128x128xbf16>, vector<8x128xf32> -> vector<8x128xf32>
    %87 = arith.addf %82, %86 : vector<8x128xf32>
    %c0_54 = arith.constant 0 : index
    %c0_55 = arith.constant 0 : index
    %88 = vector.load %arg10[%c0_54, %c0_55] : memref<1x128xf32, #tpu.memory_space<vmem>>, vector<1x128xf32>
    %89 = vector.broadcast %88 : vector<1x128xf32> to vector<8x128xf32>
    %90 = arith.mulf %87, %89 : vector<8x128xf32>
    %c0_56 = arith.constant 0 : index
    %c0_57 = arith.constant 0 : index
    %91 = vector.load %arg11[%c0_56, %c0_57] : memref<1x128xf32, #tpu.memory_space<vmem>>, vector<1x128xf32>
    %92 = vector.broadcast %91 : vector<1x128xf32> to vector<8x128xf32>
    %93 = arith.addf %90, %92 : vector<8x128xf32>
    %cst_58 = arith.constant 0.000000e+00 : f32
    %94 = vector.broadcast %cst_58 : f32 to vector<8x128xf32>
    %95 = arith.maximumf %93, %94 : vector<8x128xf32>
    %96 = arith.truncf %95 : vector<8x128xf32> to vector<8x128xbf16>
    %c0_59 = arith.constant 0 : index
    %c0_60 = arith.constant 0 : index
    %c0_61 = arith.constant 0 : index
    %97 = vector.load %arg12[%c0_59, %c0_60, %c0_61] : memref<1x8x128xbf16, #tpu.memory_space<vmem>>, vector<1x8x128xbf16>
    %98 = vector.shape_cast %97 : vector<1x8x128xbf16> to vector<8x128xbf16>
    %99 = vector.shape_cast %96 : vector<8x128xbf16> to vector<1x8x128xbf16>
    tpu.vector_store %arg12[%c0_59, %c0_60, %c0_61], %99 {strides = array<i32>} : memref<1x8x128xbf16, #tpu.memory_space<vmem>>, vector<1x8x128xbf16>,
    return
  }
  func.func @transform_0(%arg0: i32) -> (i32, i32, i32) {
    %c0_i32 = arith.constant 0 : i32
    %c0_i32_0 = arith.constant 0 : i32
    %c0_i32_1 = arith.constant 0 : i32
    return %arg0, %c0_i32, %c0_i32_0 : i32, i32, i32
  }
  func.func @transform_1(%arg0: i32) -> (i32, i32, i32) {
    %c0_i32 = arith.constant 0 : i32
    %c0_i32_0 = arith.constant 0 : i32
    %c0_i32_1 = arith.constant 0 : i32
    return %arg0, %c0_i32, %c0_i32_0 : i32, i32, i32
  }
  func.func @transform_2(%arg0: i32) -> (i32, i32) {
    %c0_i32 = arith.constant 0 : i32
    %c0_i32_0 = arith.constant 0 : i32
    %c0_i32_1 = arith.constant 0 : i32
    return %c0_i32, %c0_i32_0 : i32, i32
  }
  func.func @transform_3(%arg0: i32) -> (i32, i32) {
    %c0_i32 = arith.constant 0 : i32
    %c0_i32_0 = arith.constant 0 : i32
    %c0_i32_1 = arith.constant 0 : i32
    return %c0_i32, %c0_i32_0 : i32, i32
  }
  func.func @transform_4(%arg0: i32) -> (i32, i32, i32) {
    %c0_i32 = arith.constant 0 : i32
    %c0_i32_0 = arith.constant 0 : i32
    %c0_i32_1 = arith.constant 0 : i32
    %c0_i32_2 = arith.constant 0 : i32
    return %c0_i32, %c0_i32_0, %c0_i32_1 : i32, i32, i32
  }
  func.func @transform_5(%arg0: i32) -> (i32, i32, i32) {
    %c0_i32 = arith.constant 0 : i32
    %c0_i32_0 = arith.constant 0 : i32
    %c0_i32_1 = arith.constant 0 : i32
    %c0_i32_2 = arith.constant 0 : i32
    return %c0_i32, %c0_i32_0, %c0_i32_1 : i32, i32, i32
  }
  func.func @transform_6(%arg0: i32) -> (i32, i32) {
    %c0_i32 = arith.constant 0 : i32
    %c0_i32_0 = arith.constant 0 : i32
    %c0_i32_1 = arith.constant 0 : i32
    return %c0_i32, %c0_i32_0 : i32, i32
  }
  func.func @transform_7(%arg0: i32) -> (i32, i32) {
    %c0_i32 = arith.constant 0 : i32
    %c0_i32_0 = arith.constant 0 : i32
    %c0_i32_1 = arith.constant 0 : i32
    return %c0_i32, %c0_i32_0 : i32, i32
  }
  func.func @transform_8(%arg0: i32) -> (i32, i32, i32) {
    %c0_i32 = arith.constant 0 : i32
    %c0_i32_0 = arith.constant 0 : i32
    %c0_i32_1 = arith.constant 0 : i32
    %c0_i32_2 = arith.constant 0 : i32
    return %c0_i32, %c0_i32_0, %c0_i32_1 : i32, i32, i32
  }
  func.func @transform_9(%arg0: i32) -> (i32, i32) {
    %c0_i32 = arith.constant 0 : i32
    %c0_i32_0 = arith.constant 0 : i32
    %c0_i32_1 = arith.constant 0 : i32
    return %c0_i32, %c0_i32_0 : i32, i32
  }
  func.func @transform_10(%arg0: i32) -> (i32, i32) {
    %c0_i32 = arith.constant 0 : i32
    %c0_i32_0 = arith.constant 0 : i32
    %c0_i32_1 = arith.constant 0 : i32
    return %c0_i32, %c0_i32_0 : i32, i32
  }
  func.func @transform_11(%arg0: i32) -> (i32, i32, i32) {
    %c0_i32 = arith.constant 0 : i32
    %c0_i32_0 = arith.constant 0 : i32
    %c0_i32_1 = arith.constant 0 : i32
    return %arg0, %c0_i32, %c0_i32_0 : i32, i32, i32
  }
}

module attributes {stable_mosaic.version = 11 : i64} {
  func.func @kernel(%arg0: i32, %arg1: memref<1x16x128xbf16, #tpu.memory_space<vmem>>, %arg2: memref<1x32x256xbf16, #tpu.memory_space<vmem>>, %arg3: memref<32x16xbf16, #tpu.memory_space<vmem>>, %arg4: memref<128x256xbf16, #tpu.memory_space<vmem>>, %arg5: memref<3x256x128xbf16, #tpu.memory_space<vmem>>, %arg6: memref<3x256x128xbf16, #tpu.memory_space<vmem>>, %arg7: memref<1x128xf32, #tpu.memory_space<vmem>>, %arg8: memref<1x128xf32, #tpu.memory_space<vmem>>, %arg9: memref<3x128x128xbf16, #tpu.memory_space<vmem>>, %arg10: memref<1x128xf32, #tpu.memory_space<vmem>>, %arg11: memref<1x128xf32, #tpu.memory_space<vmem>>, %arg12: memref<1x32x128xbf16, #tpu.memory_space<vmem>>) attributes {dimension_semantics = [#tpu.dimension_semantics<parallel>], iteration_bounds = array<i64: 2>, scalar_prefetch = 0 : i64, scratch_operands = 0 : i64, tpu.core_type = #tpu.core_type<tc>, window_params = [{transform_indices = @transform_0, window_bounds = array<i64: 1, 16, 128>}, {transform_indices = @transform_1, window_bounds = array<i64: 1, 32, 256>}, {pipeline_mode = #tpu.pipeline_mode<synchronous>, transform_indices = @transform_2, window_bounds = array<i64: 32, 16>}, {pipeline_mode = #tpu.pipeline_mode<synchronous>, transform_indices = @transform_3, window_bounds = array<i64: 128, 256>}, {pipeline_mode = #tpu.pipeline_mode<synchronous>, transform_indices = @transform_4, window_bounds = array<i64: 3, 256, 128>}, {pipeline_mode = #tpu.pipeline_mode<synchronous>, transform_indices = @transform_5, window_bounds = array<i64: 3, 256, 128>}, {pipeline_mode = #tpu.pipeline_mode<synchronous>, transform_indices = @transform_6, window_bounds = array<i64: 1, 128>}, {pipeline_mode = #tpu.pipeline_mode<synchronous>, transform_indices = @transform_7, window_bounds = array<i64: 1, 128>}, {pipeline_mode = #tpu.pipeline_mode<synchronous>, transform_indices = @transform_8, window_bounds = array<i64: 3, 128, 128>}, {pipeline_mode = #tpu.pipeline_mode<synchronous>, transform_indices = @transform_9, window_bounds = array<i64: 1, 128>}, {pipeline_mode = #tpu.pipeline_mode<synchronous>, transform_indices = @transform_10, window_bounds = array<i64: 1, 128>}, {transform_indices = @transform_11, window_bounds = array<i64: 1, 32, 128>}]} {
    %0 = tpu.iota {dimensions = array<i32: 0>} : vector<32x1xi32>
    %c0_i32 = arith.constant 0 : i32
    %1 = vector.broadcast %c0_i32 : i32 to vector<32x1xi32>
    %2 = arith.cmpi sgt, %0, %1 : vector<32x1xi32>
    %3 = arith.extui %2 : vector<32x1xi1> to vector<32x1xi32>
    %4 = arith.sitofp %3 : vector<32x1xi32> to vector<32x1xf32>
    %c31_i32 = arith.constant 31 : i32
    %5 = vector.broadcast %c31_i32 : i32 to vector<32x1xi32>
    %6 = arith.cmpi slt, %0, %5 : vector<32x1xi32>
    %7 = arith.extui %6 : vector<32x1xi1> to vector<32x1xi32>
    %8 = arith.sitofp %7 : vector<32x1xi32> to vector<32x1xf32>
    %c0 = arith.constant 0 : index
    %c0_0 = arith.constant 0 : index
    %c0_1 = arith.constant 0 : index
    %9 = vector.load %arg1[%c0, %c0_0, %c0_1] : memref<1x16x128xbf16, #tpu.memory_space<vmem>>, vector<1x16x128xbf16>
    %10 = vector.shape_cast %9 : vector<1x16x128xbf16> to vector<16x128xbf16>
    %c0_2 = arith.constant 0 : index
    %c0_3 = arith.constant 0 : index
    %11 = vector.load %arg4[%c0_2, %c0_3] : memref<128x256xbf16, #tpu.memory_space<vmem>>, vector<128x256xbf16>
    %cst = arith.constant dense<0.000000e+00> : vector<16x256xf32>
    %12 = tpu.matmul %10, %11, %cst {dimension_numbers = #tpu.dot_dimension_numbers<[1], [0], [0], [1], [0, 0, 1, 1], [], []>} : vector<16x128xbf16>, vector<128x256xbf16>, vector<16x256xf32> -> vector<16x256xf32>
    %c0_4 = arith.constant 0 : index
    %c0_5 = arith.constant 0 : index
    %13 = vector.load %arg3[%c0_4, %c0_5] : memref<32x16xbf16, #tpu.memory_space<vmem>>, vector<32x16xbf16>
    %14 = arith.truncf %12 : vector<16x256xf32> to vector<16x256xbf16>
    %cst_6 = arith.constant dense<0.000000e+00> : vector<32x256xf32>
    %15 = tpu.matmul %13, %14, %cst_6 {dimension_numbers = #tpu.dot_dimension_numbers<[1], [0], [0], [1], [0, 0, 1, 1], [], []>} : vector<32x16xbf16>, vector<16x256xbf16>, vector<32x256xf32> -> vector<32x256xf32>
    %c1_i32 = arith.constant 1 : i32
    %16 = tpu.dynamic_rotate %15 by %c1_i32 dim 0 : vector<32x256xf32>, i32 -> vector<32x256xf32>
    %17 = vector.broadcast %4 : vector<32x1xf32> to vector<32x256xf32>
    %18 = arith.mulf %16, %17 : vector<32x256xf32>
    %c31_i32_7 = arith.constant 31 : i32
    %19 = tpu.dynamic_rotate %15 by %c31_i32_7 dim 0 : vector<32x256xf32>, i32 -> vector<32x256xf32>
    %20 = vector.broadcast %8 : vector<32x1xf32> to vector<32x256xf32>
    %21 = arith.mulf %19, %20 : vector<32x256xf32>
    %22 = arith.truncf %18 : vector<32x256xf32> to vector<32x256xbf16>
    %c0_8 = arith.constant 0 : index
    %c0_9 = arith.constant 0 : index
    %c0_10 = arith.constant 0 : index
    %23 = vector.load %arg5[%c0_8, %c0_9, %c0_10] : memref<3x256x128xbf16, #tpu.memory_space<vmem>>, vector<1x256x128xbf16>
    %24 = vector.shape_cast %23 : vector<1x256x128xbf16> to vector<256x128xbf16>
    %cst_11 = arith.constant dense<0.000000e+00> : vector<32x128xf32>
    %25 = tpu.matmul %22, %24, %cst_11 {dimension_numbers = #tpu.dot_dimension_numbers<[1], [0], [0], [1], [0, 0, 1, 1], [], []>} : vector<32x256xbf16>, vector<256x128xbf16>, vector<32x128xf32> -> vector<32x128xf32>
    %26 = arith.truncf %15 : vector<32x256xf32> to vector<32x256xbf16>
    %c1 = arith.constant 1 : index
    %c0_12 = arith.constant 0 : index
    %c0_13 = arith.constant 0 : index
    %27 = vector.load %arg5[%c1, %c0_12, %c0_13] : memref<3x256x128xbf16, #tpu.memory_space<vmem>>, vector<1x256x128xbf16>
    %28 = vector.shape_cast %27 : vector<1x256x128xbf16> to vector<256x128xbf16>
    %cst_14 = arith.constant dense<0.000000e+00> : vector<32x128xf32>
    %29 = tpu.matmul %26, %28, %cst_14 {dimension_numbers = #tpu.dot_dimension_numbers<[1], [0], [0], [1], [0, 0, 1, 1], [], []>} : vector<32x256xbf16>, vector<256x128xbf16>, vector<32x128xf32> -> vector<32x128xf32>
    %30 = arith.addf %25, %29 : vector<32x128xf32>
    %31 = arith.truncf %21 : vector<32x256xf32> to vector<32x256xbf16>
    %c2 = arith.constant 2 : index
    %c0_15 = arith.constant 0 : index
    %c0_16 = arith.constant 0 : index
    %32 = vector.load %arg5[%c2, %c0_15, %c0_16] : memref<3x256x128xbf16, #tpu.memory_space<vmem>>, vector<1x256x128xbf16>
    %33 = vector.shape_cast %32 : vector<1x256x128xbf16> to vector<256x128xbf16>
    %cst_17 = arith.constant dense<0.000000e+00> : vector<32x128xf32>
    %34 = tpu.matmul %31, %33, %cst_17 {dimension_numbers = #tpu.dot_dimension_numbers<[1], [0], [0], [1], [0, 0, 1, 1], [], []>} : vector<32x256xbf16>, vector<256x128xbf16>, vector<32x128xf32> -> vector<32x128xf32>
    %35 = arith.addf %30, %34 : vector<32x128xf32>
    %c0_18 = arith.constant 0 : index
    %c0_19 = arith.constant 0 : index
    %c0_20 = arith.constant 0 : index
    %36 = vector.load %arg2[%c0_18, %c0_19, %c0_20] : memref<1x32x256xbf16, #tpu.memory_space<vmem>>, vector<1x32x256xbf16>
    %37 = vector.shape_cast %36 : vector<1x32x256xbf16> to vector<32x256xbf16>
    %38 = arith.extf %37 : vector<32x256xbf16> to vector<32x256xf32>
    %c1_i32_21 = arith.constant 1 : i32
    %39 = tpu.dynamic_rotate %38 by %c1_i32_21 dim 0 : vector<32x256xf32>, i32 -> vector<32x256xf32>
    %40 = vector.broadcast %4 : vector<32x1xf32> to vector<32x256xf32>
    %41 = arith.mulf %39, %40 : vector<32x256xf32>
    %c31_i32_22 = arith.constant 31 : i32
    %42 = tpu.dynamic_rotate %38 by %c31_i32_22 dim 0 : vector<32x256xf32>, i32 -> vector<32x256xf32>
    %43 = vector.broadcast %8 : vector<32x1xf32> to vector<32x256xf32>
    %44 = arith.mulf %42, %43 : vector<32x256xf32>
    %45 = arith.truncf %41 : vector<32x256xf32> to vector<32x256xbf16>
    %c0_23 = arith.constant 0 : index
    %c0_24 = arith.constant 0 : index
    %c0_25 = arith.constant 0 : index
    %46 = vector.load %arg6[%c0_23, %c0_24, %c0_25] : memref<3x256x128xbf16, #tpu.memory_space<vmem>>, vector<1x256x128xbf16>
    %47 = vector.shape_cast %46 : vector<1x256x128xbf16> to vector<256x128xbf16>
    %cst_26 = arith.constant dense<0.000000e+00> : vector<32x128xf32>
    %48 = tpu.matmul %45, %47, %cst_26 {dimension_numbers = #tpu.dot_dimension_numbers<[1], [0], [0], [1], [0, 0, 1, 1], [], []>} : vector<32x256xbf16>, vector<256x128xbf16>, vector<32x128xf32> -> vector<32x128xf32>
    %49 = arith.truncf %38 : vector<32x256xf32> to vector<32x256xbf16>
    %c1_27 = arith.constant 1 : index
    %c0_28 = arith.constant 0 : index
    %c0_29 = arith.constant 0 : index
    %50 = vector.load %arg6[%c1_27, %c0_28, %c0_29] : memref<3x256x128xbf16, #tpu.memory_space<vmem>>, vector<1x256x128xbf16>
    %51 = vector.shape_cast %50 : vector<1x256x128xbf16> to vector<256x128xbf16>
    %cst_30 = arith.constant dense<0.000000e+00> : vector<32x128xf32>
    %52 = tpu.matmul %49, %51, %cst_30 {dimension_numbers = #tpu.dot_dimension_numbers<[1], [0], [0], [1], [0, 0, 1, 1], [], []>} : vector<32x256xbf16>, vector<256x128xbf16>, vector<32x128xf32> -> vector<32x128xf32>
    %53 = arith.addf %48, %52 : vector<32x128xf32>
    %54 = arith.truncf %44 : vector<32x256xf32> to vector<32x256xbf16>
    %c2_31 = arith.constant 2 : index
    %c0_32 = arith.constant 0 : index
    %c0_33 = arith.constant 0 : index
    %55 = vector.load %arg6[%c2_31, %c0_32, %c0_33] : memref<3x256x128xbf16, #tpu.memory_space<vmem>>, vector<1x256x128xbf16>
    %56 = vector.shape_cast %55 : vector<1x256x128xbf16> to vector<256x128xbf16>
    %cst_34 = arith.constant dense<0.000000e+00> : vector<32x128xf32>
    %57 = tpu.matmul %54, %56, %cst_34 {dimension_numbers = #tpu.dot_dimension_numbers<[1], [0], [0], [1], [0, 0, 1, 1], [], []>} : vector<32x256xbf16>, vector<256x128xbf16>, vector<32x128xf32> -> vector<32x128xf32>
    %58 = arith.addf %53, %57 : vector<32x128xf32>
    %59 = arith.addf %35, %58 : vector<32x128xf32>
    %c0_35 = arith.constant 0 : index
    %c0_36 = arith.constant 0 : index
    %60 = vector.load %arg7[%c0_35, %c0_36] : memref<1x128xf32, #tpu.memory_space<vmem>>, vector<1x128xf32>
    %61 = vector.broadcast %60 : vector<1x128xf32> to vector<32x128xf32>
    %62 = arith.mulf %59, %61 : vector<32x128xf32>
    %c0_37 = arith.constant 0 : index
    %c0_38 = arith.constant 0 : index
    %63 = vector.load %arg8[%c0_37, %c0_38] : memref<1x128xf32, #tpu.memory_space<vmem>>, vector<1x128xf32>
    %64 = vector.broadcast %63 : vector<1x128xf32> to vector<32x128xf32>
    %65 = arith.addf %62, %64 : vector<32x128xf32>
    %cst_39 = arith.constant 0.000000e+00 : f32
    %66 = vector.broadcast %cst_39 : f32 to vector<32x128xf32>
    %67 = arith.maximumf %65, %66 : vector<32x128xf32>
    %c1_i32_40 = arith.constant 1 : i32
    %68 = tpu.dynamic_rotate %67 by %c1_i32_40 dim 0 : vector<32x128xf32>, i32 -> vector<32x128xf32>
    %69 = vector.broadcast %4 : vector<32x1xf32> to vector<32x128xf32>
    %70 = arith.mulf %68, %69 : vector<32x128xf32>
    %c31_i32_41 = arith.constant 31 : i32
    %71 = tpu.dynamic_rotate %67 by %c31_i32_41 dim 0 : vector<32x128xf32>, i32 -> vector<32x128xf32>
    %72 = vector.broadcast %8 : vector<32x1xf32> to vector<32x128xf32>
    %73 = arith.mulf %71, %72 : vector<32x128xf32>
    %74 = arith.truncf %70 : vector<32x128xf32> to vector<32x128xbf16>
    %c0_42 = arith.constant 0 : index
    %c0_43 = arith.constant 0 : index
    %c0_44 = arith.constant 0 : index
    %75 = vector.load %arg9[%c0_42, %c0_43, %c0_44] : memref<3x128x128xbf16, #tpu.memory_space<vmem>>, vector<1x128x128xbf16>
    %76 = vector.shape_cast %75 : vector<1x128x128xbf16> to vector<128x128xbf16>
    %cst_45 = arith.constant dense<0.000000e+00> : vector<32x128xf32>
    %77 = tpu.matmul %74, %76, %cst_45 {dimension_numbers = #tpu.dot_dimension_numbers<[1], [0], [0], [1], [0, 0, 1, 1], [], []>} : vector<32x128xbf16>, vector<128x128xbf16>, vector<32x128xf32> -> vector<32x128xf32>
    %78 = arith.truncf %67 : vector<32x128xf32> to vector<32x128xbf16>
    %c1_46 = arith.constant 1 : index
    %c0_47 = arith.constant 0 : index
    %c0_48 = arith.constant 0 : index
    %79 = vector.load %arg9[%c1_46, %c0_47, %c0_48] : memref<3x128x128xbf16, #tpu.memory_space<vmem>>, vector<1x128x128xbf16>
    %80 = vector.shape_cast %79 : vector<1x128x128xbf16> to vector<128x128xbf16>
    %cst_49 = arith.constant dense<0.000000e+00> : vector<32x128xf32>
    %81 = tpu.matmul %78, %80, %cst_49 {dimension_numbers = #tpu.dot_dimension_numbers<[1], [0], [0], [1], [0, 0, 1, 1], [], []>} : vector<32x128xbf16>, vector<128x128xbf16>, vector<32x128xf32> -> vector<32x128xf32>
    %82 = arith.addf %77, %81 : vector<32x128xf32>
    %83 = arith.truncf %73 : vector<32x128xf32> to vector<32x128xbf16>
    %c2_50 = arith.constant 2 : index
    %c0_51 = arith.constant 0 : index
    %c0_52 = arith.constant 0 : index
    %84 = vector.load %arg9[%c2_50, %c0_51, %c0_52] : memref<3x128x128xbf16, #tpu.memory_space<vmem>>, vector<1x128x128xbf16>
    %85 = vector.shape_cast %84 : vector<1x128x128xbf16> to vector<128x128xbf16>
    %cst_53 = arith.constant dense<0.000000e+00> : vector<32x128xf32>
    %86 = tpu.matmul %83, %85, %cst_53 {dimension_numbers = #tpu.dot_dimension_numbers<[1], [0], [0], [1], [0, 0, 1, 1], [], []>} : vector<32x128xbf16>, vector<128x128xbf16>, vector<32x128xf32> -> vector<32x128xf32>
    %87 = arith.addf %82, %86 : vector<32x128xf32>
    %c0_54 = arith.constant 0 : index
    %c0_55 = arith.constant 0 : index
    %88 = vector.load %arg10[%c0_54, %c0_55] : memref<1x128xf32, #tpu.memory_space<vmem>>, vector<1x128xf32>
    %89 = vector.broadcast %88 : vector<1x128xf32> to vector<32x128xf32>
    %90 = arith.mulf %87, %89 : vector<32x128xf32>
    %c0_56 = arith.constant 0 : index
    %c0_57 = arith.constant 0 : index
    %91 = vector.load %arg11[%c0_56, %c0_57] : memref<1x128xf32, #tpu.memory_space<vmem>>, vector<1x128xf32>
    %92 = vector.broadcast %91 : vector<1x128xf32> to vector<32x128xf32>
    %93 = arith.addf %90, %92 : vector<32x128xf32>
    %cst_58 = arith.constant 0.000000e+00 : f32
    %94 = vector.broadcast %cst_58 : f32 to vector<32x128xf32>
    %95 = arith.maximumf %93, %94 : vector<32x128xf32>
    %96 = arith.truncf %95 : vector<32x128xf32> to vector<32x128xbf16>
    %c0_59 = arith.constant 0 : index
    %c0_60 = arith.constant 0 : index
    %c0_61 = arith.constant 0 : index
    %97 = vector.load %arg12[%c0_59, %c0_60, %c0_61] : memref<1x32x128xbf16, #tpu.memory_space<vmem>>, vector<1x32x128xbf16>
    %98 = vector.shape_cast %97 : vector<1x32x128xbf16> to vector<32x128xbf16>
    %99 = vector.shape_cast %96 : vector<32x128xbf16> to vector<1x32x128xbf16>
    tpu.vector_store %arg12[%c0_59, %c0_60, %c0_61], %99 {strides = array<i32>} : memref<1x32x128xbf16, #tpu.memory_space<vmem>>, vector<1x32x128xbf16>,
    return
  }
  func.func @transform_0(%arg0: i32) -> (i32, i32, i32) {
    %c0_i32 = arith.constant 0 : i32
    %c0_i32_0 = arith.constant 0 : i32
    %c0_i32_1 = arith.constant 0 : i32
    return %arg0, %c0_i32, %c0_i32_0 : i32, i32, i32
  }
  func.func @transform_1(%arg0: i32) -> (i32, i32, i32) {
    %c0_i32 = arith.constant 0 : i32
    %c0_i32_0 = arith.constant 0 : i32
    %c0_i32_1 = arith.constant 0 : i32
    return %arg0, %c0_i32, %c0_i32_0 : i32, i32, i32
  }
  func.func @transform_2(%arg0: i32) -> (i32, i32) {
    %c0_i32 = arith.constant 0 : i32
    %c0_i32_0 = arith.constant 0 : i32
    %c0_i32_1 = arith.constant 0 : i32
    return %c0_i32, %c0_i32_0 : i32, i32
  }
  func.func @transform_3(%arg0: i32) -> (i32, i32) {
    %c0_i32 = arith.constant 0 : i32
    %c0_i32_0 = arith.constant 0 : i32
    %c0_i32_1 = arith.constant 0 : i32
    return %c0_i32, %c0_i32_0 : i32, i32
  }
  func.func @transform_4(%arg0: i32) -> (i32, i32, i32) {
    %c0_i32 = arith.constant 0 : i32
    %c0_i32_0 = arith.constant 0 : i32
    %c0_i32_1 = arith.constant 0 : i32
    %c0_i32_2 = arith.constant 0 : i32
    return %c0_i32, %c0_i32_0, %c0_i32_1 : i32, i32, i32
  }
  func.func @transform_5(%arg0: i32) -> (i32, i32, i32) {
    %c0_i32 = arith.constant 0 : i32
    %c0_i32_0 = arith.constant 0 : i32
    %c0_i32_1 = arith.constant 0 : i32
    %c0_i32_2 = arith.constant 0 : i32
    return %c0_i32, %c0_i32_0, %c0_i32_1 : i32, i32, i32
  }
  func.func @transform_6(%arg0: i32) -> (i32, i32) {
    %c0_i32 = arith.constant 0 : i32
    %c0_i32_0 = arith.constant 0 : i32
    %c0_i32_1 = arith.constant 0 : i32
    return %c0_i32, %c0_i32_0 : i32, i32
  }
  func.func @transform_7(%arg0: i32) -> (i32, i32) {
    %c0_i32 = arith.constant 0 : i32
    %c0_i32_0 = arith.constant 0 : i32
    %c0_i32_1 = arith.constant 0 : i32
    return %c0_i32, %c0_i32_0 : i32, i32
  }
  func.func @transform_8(%arg0: i32) -> (i32, i32, i32) {
    %c0_i32 = arith.constant 0 : i32
    %c0_i32_0 = arith.constant 0 : i32
    %c0_i32_1 = arith.constant 0 : i32
    %c0_i32_2 = arith.constant 0 : i32
    return %c0_i32, %c0_i32_0, %c0_i32_1 : i32, i32, i32
  }
  func.func @transform_9(%arg0: i32) -> (i32, i32) {
    %c0_i32 = arith.constant 0 : i32
    %c0_i32_0 = arith.constant 0 : i32
    %c0_i32_1 = arith.constant 0 : i32
    return %c0_i32, %c0_i32_0 : i32, i32
  }
  func.func @transform_10(%arg0: i32) -> (i32, i32) {
    %c0_i32 = arith.constant 0 : i32
    %c0_i32_0 = arith.constant 0 : i32
    %c0_i32_1 = arith.constant 0 : i32
    return %c0_i32, %c0_i32_0 : i32, i32
  }
  func.func @transform_11(%arg0: i32) -> (i32, i32, i32) {
    %c0_i32 = arith.constant 0 : i32
    %c0_i32_0 = arith.constant 0 : i32
    %c0_i32_1 = arith.constant 0 : i32
    return %arg0, %c0_i32, %c0_i32_0 : i32, i32, i32
  }
}

module attributes {stable_mosaic.version = 11 : i64} {
  func.func @kernel(%arg0: i32, %arg1: memref<1x32x128xbf16, #tpu.memory_space<vmem>>, %arg2: memref<64x32xbf16, #tpu.memory_space<vmem>>, %arg3: memref<128x256xbf16, #tpu.memory_space<vmem>>, %arg4: memref<3x256x64xbf16, #tpu.memory_space<vmem>>, %arg5: memref<1x64xf32, #tpu.memory_space<vmem>>, %arg6: memref<1x64xf32, #tpu.memory_space<vmem>>, %arg7: memref<3x64x128xbf16, #tpu.memory_space<vmem>>, %arg8: memref<1x128xf32, #tpu.memory_space<vmem>>, %arg9: memref<1x128xf32, #tpu.memory_space<vmem>>, %arg10: memref<1x64x128xbf16, #tpu.memory_space<vmem>>) attributes {dimension_semantics = [#tpu.dimension_semantics<parallel>], iteration_bounds = array<i64: 2>, scalar_prefetch = 0 : i64, scratch_operands = 0 : i64, tpu.core_type = #tpu.core_type<tc>, window_params = [{transform_indices = @transform_0, window_bounds = array<i64: 1, 32, 128>}, {pipeline_mode = #tpu.pipeline_mode<synchronous>, transform_indices = @transform_1, window_bounds = array<i64: 64, 32>}, {pipeline_mode = #tpu.pipeline_mode<synchronous>, transform_indices = @transform_2, window_bounds = array<i64: 128, 256>}, {pipeline_mode = #tpu.pipeline_mode<synchronous>, transform_indices = @transform_3, window_bounds = array<i64: 3, 256, 64>}, {pipeline_mode = #tpu.pipeline_mode<synchronous>, transform_indices = @transform_4, window_bounds = array<i64: 1, 64>}, {pipeline_mode = #tpu.pipeline_mode<synchronous>, transform_indices = @transform_5, window_bounds = array<i64: 1, 64>}, {pipeline_mode = #tpu.pipeline_mode<synchronous>, transform_indices = @transform_6, window_bounds = array<i64: 3, 64, 128>}, {pipeline_mode = #tpu.pipeline_mode<synchronous>, transform_indices = @transform_7, window_bounds = array<i64: 1, 128>}, {pipeline_mode = #tpu.pipeline_mode<synchronous>, transform_indices = @transform_8, window_bounds = array<i64: 1, 128>}, {transform_indices = @transform_9, window_bounds = array<i64: 1, 64, 128>}]} {
    %0 = tpu.iota {dimensions = array<i32: 0>} : vector<64x1xi32>
    %c0_i32 = arith.constant 0 : i32
    %1 = vector.broadcast %c0_i32 : i32 to vector<64x1xi32>
    %2 = arith.cmpi sgt, %0, %1 : vector<64x1xi32>
    %3 = arith.extui %2 : vector<64x1xi1> to vector<64x1xi32>
    %4 = arith.sitofp %3 : vector<64x1xi32> to vector<64x1xf32>
    %c63_i32 = arith.constant 63 : i32
    %5 = vector.broadcast %c63_i32 : i32 to vector<64x1xi32>
    %6 = arith.cmpi slt, %0, %5 : vector<64x1xi32>
    %7 = arith.extui %6 : vector<64x1xi1> to vector<64x1xi32>
    %8 = arith.sitofp %7 : vector<64x1xi32> to vector<64x1xf32>
    %c0 = arith.constant 0 : index
    %c0_0 = arith.constant 0 : index
    %c0_1 = arith.constant 0 : index
    %9 = vector.load %arg1[%c0, %c0_0, %c0_1] : memref<1x32x128xbf16, #tpu.memory_space<vmem>>, vector<1x32x128xbf16>
    %10 = vector.shape_cast %9 : vector<1x32x128xbf16> to vector<32x128xbf16>
    %c0_2 = arith.constant 0 : index
    %c0_3 = arith.constant 0 : index
    %11 = vector.load %arg3[%c0_2, %c0_3] : memref<128x256xbf16, #tpu.memory_space<vmem>>, vector<128x256xbf16>
    %cst = arith.constant dense<0.000000e+00> : vector<32x256xf32>
    %12 = tpu.matmul %10, %11, %cst {dimension_numbers = #tpu.dot_dimension_numbers<[1], [0], [0], [1], [0, 0, 1, 1], [], []>} : vector<32x128xbf16>, vector<128x256xbf16>, vector<32x256xf32> -> vector<32x256xf32>
    %c0_4 = arith.constant 0 : index
    %c0_5 = arith.constant 0 : index
    %13 = vector.load %arg2[%c0_4, %c0_5] : memref<64x32xbf16, #tpu.memory_space<vmem>>, vector<64x32xbf16>
    %14 = arith.truncf %12 : vector<32x256xf32> to vector<32x256xbf16>
    %cst_6 = arith.constant dense<0.000000e+00> : vector<64x256xf32>
    %15 = tpu.matmul %13, %14, %cst_6 {dimension_numbers = #tpu.dot_dimension_numbers<[1], [0], [0], [1], [0, 0, 1, 1], [], []>} : vector<64x32xbf16>, vector<32x256xbf16>, vector<64x256xf32> -> vector<64x256xf32>
    %c1_i32 = arith.constant 1 : i32
    %16 = tpu.dynamic_rotate %15 by %c1_i32 dim 0 : vector<64x256xf32>, i32 -> vector<64x256xf32>
    %17 = vector.broadcast %4 : vector<64x1xf32> to vector<64x256xf32>
    %18 = arith.mulf %16, %17 : vector<64x256xf32>
    %c63_i32_7 = arith.constant 63 : i32
    %19 = tpu.dynamic_rotate %15 by %c63_i32_7 dim 0 : vector<64x256xf32>, i32 -> vector<64x256xf32>
    %20 = vector.broadcast %8 : vector<64x1xf32> to vector<64x256xf32>
    %21 = arith.mulf %19, %20 : vector<64x256xf32>
    %22 = arith.truncf %18 : vector<64x256xf32> to vector<64x256xbf16>
    %c0_8 = arith.constant 0 : index
    %c0_9 = arith.constant 0 : index
    %c0_10 = arith.constant 0 : index
    %23 = vector.load %arg4[%c0_8, %c0_9, %c0_10] : memref<3x256x64xbf16, #tpu.memory_space<vmem>>, vector<1x256x64xbf16>
    %24 = vector.shape_cast %23 : vector<1x256x64xbf16> to vector<256x64xbf16>
    %cst_11 = arith.constant dense<0.000000e+00> : vector<64x64xf32>
    %25 = tpu.matmul %22, %24, %cst_11 {dimension_numbers = #tpu.dot_dimension_numbers<[1], [0], [0], [1], [0, 0, 1, 1], [], []>} : vector<64x256xbf16>, vector<256x64xbf16>, vector<64x64xf32> -> vector<64x64xf32>
    %26 = arith.truncf %15 : vector<64x256xf32> to vector<64x256xbf16>
    %c1 = arith.constant 1 : index
    %c0_12 = arith.constant 0 : index
    %c0_13 = arith.constant 0 : index
    %27 = vector.load %arg4[%c1, %c0_12, %c0_13] : memref<3x256x64xbf16, #tpu.memory_space<vmem>>, vector<1x256x64xbf16>
    %28 = vector.shape_cast %27 : vector<1x256x64xbf16> to vector<256x64xbf16>
    %cst_14 = arith.constant dense<0.000000e+00> : vector<64x64xf32>
    %29 = tpu.matmul %26, %28, %cst_14 {dimension_numbers = #tpu.dot_dimension_numbers<[1], [0], [0], [1], [0, 0, 1, 1], [], []>} : vector<64x256xbf16>, vector<256x64xbf16>, vector<64x64xf32> -> vector<64x64xf32>
    %30 = arith.addf %25, %29 : vector<64x64xf32>
    %31 = arith.truncf %21 : vector<64x256xf32> to vector<64x256xbf16>
    %c2 = arith.constant 2 : index
    %c0_15 = arith.constant 0 : index
    %c0_16 = arith.constant 0 : index
    %32 = vector.load %arg4[%c2, %c0_15, %c0_16] : memref<3x256x64xbf16, #tpu.memory_space<vmem>>, vector<1x256x64xbf16>
    %33 = vector.shape_cast %32 : vector<1x256x64xbf16> to vector<256x64xbf16>
    %cst_17 = arith.constant dense<0.000000e+00> : vector<64x64xf32>
    %34 = tpu.matmul %31, %33, %cst_17 {dimension_numbers = #tpu.dot_dimension_numbers<[1], [0], [0], [1], [0, 0, 1, 1], [], []>} : vector<64x256xbf16>, vector<256x64xbf16>, vector<64x64xf32> -> vector<64x64xf32>
    %35 = arith.addf %30, %34 : vector<64x64xf32>
    %c0_18 = arith.constant 0 : index
    %c0_19 = arith.constant 0 : index
    %36 = vector.load %arg5[%c0_18, %c0_19] : memref<1x64xf32, #tpu.memory_space<vmem>>, vector<1x64xf32>
    %37 = vector.broadcast %36 : vector<1x64xf32> to vector<64x64xf32>
    %38 = arith.mulf %35, %37 : vector<64x64xf32>
    %c0_20 = arith.constant 0 : index
    %c0_21 = arith.constant 0 : index
    %39 = vector.load %arg6[%c0_20, %c0_21] : memref<1x64xf32, #tpu.memory_space<vmem>>, vector<1x64xf32>
    %40 = vector.broadcast %39 : vector<1x64xf32> to vector<64x64xf32>
    %41 = arith.addf %38, %40 : vector<64x64xf32>
    %cst_22 = arith.constant 0.000000e+00 : f32
    %42 = vector.broadcast %cst_22 : f32 to vector<64x64xf32>
    %43 = arith.maximumf %41, %42 : vector<64x64xf32>
    %c1_i32_23 = arith.constant 1 : i32
    %44 = tpu.dynamic_rotate %43 by %c1_i32_23 dim 0 : vector<64x64xf32>, i32 -> vector<64x64xf32>
    %45 = vector.broadcast %4 : vector<64x1xf32> to vector<64x64xf32>
    %46 = arith.mulf %44, %45 : vector<64x64xf32>
    %c63_i32_24 = arith.constant 63 : i32
    %47 = tpu.dynamic_rotate %43 by %c63_i32_24 dim 0 : vector<64x64xf32>, i32 -> vector<64x64xf32>
    %48 = vector.broadcast %8 : vector<64x1xf32> to vector<64x64xf32>
    %49 = arith.mulf %47, %48 : vector<64x64xf32>
    %50 = arith.truncf %46 : vector<64x64xf32> to vector<64x64xbf16>
    %c0_25 = arith.constant 0 : index
    %c0_26 = arith.constant 0 : index
    %c0_27 = arith.constant 0 : index
    %51 = vector.load %arg7[%c0_25, %c0_26, %c0_27] : memref<3x64x128xbf16, #tpu.memory_space<vmem>>, vector<1x64x128xbf16>
    %52 = vector.shape_cast %51 : vector<1x64x128xbf16> to vector<64x128xbf16>
    %cst_28 = arith.constant dense<0.000000e+00> : vector<64x128xf32>
    %53 = tpu.matmul %50, %52, %cst_28 {dimension_numbers = #tpu.dot_dimension_numbers<[1], [0], [0], [1], [0, 0, 1, 1], [], []>} : vector<64x64xbf16>, vector<64x128xbf16>, vector<64x128xf32> -> vector<64x128xf32>
    %54 = arith.truncf %43 : vector<64x64xf32> to vector<64x64xbf16>
    %c1_29 = arith.constant 1 : index
    %c0_30 = arith.constant 0 : index
    %c0_31 = arith.constant 0 : index
    %55 = vector.load %arg7[%c1_29, %c0_30, %c0_31] : memref<3x64x128xbf16, #tpu.memory_space<vmem>>, vector<1x64x128xbf16>
    %56 = vector.shape_cast %55 : vector<1x64x128xbf16> to vector<64x128xbf16>
    %cst_32 = arith.constant dense<0.000000e+00> : vector<64x128xf32>
    %57 = tpu.matmul %54, %56, %cst_32 {dimension_numbers = #tpu.dot_dimension_numbers<[1], [0], [0], [1], [0, 0, 1, 1], [], []>} : vector<64x64xbf16>, vector<64x128xbf16>, vector<64x128xf32> -> vector<64x128xf32>
    %58 = arith.addf %53, %57 : vector<64x128xf32>
    %59 = arith.truncf %49 : vector<64x64xf32> to vector<64x64xbf16>
    %c2_33 = arith.constant 2 : index
    %c0_34 = arith.constant 0 : index
    %c0_35 = arith.constant 0 : index
    %60 = vector.load %arg7[%c2_33, %c0_34, %c0_35] : memref<3x64x128xbf16, #tpu.memory_space<vmem>>, vector<1x64x128xbf16>
    %61 = vector.shape_cast %60 : vector<1x64x128xbf16> to vector<64x128xbf16>
    %cst_36 = arith.constant dense<0.000000e+00> : vector<64x128xf32>
    %62 = tpu.matmul %59, %61, %cst_36 {dimension_numbers = #tpu.dot_dimension_numbers<[1], [0], [0], [1], [0, 0, 1, 1], [], []>} : vector<64x64xbf16>, vector<64x128xbf16>, vector<64x128xf32> -> vector<64x128xf32>
    %63 = arith.addf %58, %62 : vector<64x128xf32>
    %c0_37 = arith.constant 0 : index
    %c0_38 = arith.constant 0 : index
    %64 = vector.load %arg8[%c0_37, %c0_38] : memref<1x128xf32, #tpu.memory_space<vmem>>, vector<1x128xf32>
    %65 = vector.broadcast %64 : vector<1x128xf32> to vector<64x128xf32>
    %66 = arith.mulf %63, %65 : vector<64x128xf32>
    %c0_39 = arith.constant 0 : index
    %c0_40 = arith.constant 0 : index
    %67 = vector.load %arg9[%c0_39, %c0_40] : memref<1x128xf32, #tpu.memory_space<vmem>>, vector<1x128xf32>
    %68 = vector.broadcast %67 : vector<1x128xf32> to vector<64x128xf32>
    %69 = arith.addf %66, %68 : vector<64x128xf32>
    %cst_41 = arith.constant 0.000000e+00 : f32
    %70 = vector.broadcast %cst_41 : f32 to vector<64x128xf32>
    %71 = arith.maximumf %69, %70 : vector<64x128xf32>
    %72 = arith.truncf %71 : vector<64x128xf32> to vector<64x128xbf16>
    %c0_42 = arith.constant 0 : index
    %c0_43 = arith.constant 0 : index
    %c0_44 = arith.constant 0 : index
    %73 = vector.load %arg10[%c0_42, %c0_43, %c0_44] : memref<1x64x128xbf16, #tpu.memory_space<vmem>>, vector<1x64x128xbf16>
    %74 = vector.shape_cast %73 : vector<1x64x128xbf16> to vector<64x128xbf16>
    %75 = vector.shape_cast %72 : vector<64x128xbf16> to vector<1x64x128xbf16>
    tpu.vector_store %arg10[%c0_42, %c0_43, %c0_44], %75 {strides = array<i32>} : memref<1x64x128xbf16, #tpu.memory_space<vmem>>, vector<1x64x128xbf16>,
    return
  }
  func.func @transform_0(%arg0: i32) -> (i32, i32, i32) {
    %c0_i32 = arith.constant 0 : i32
    %c0_i32_0 = arith.constant 0 : i32
    %c0_i32_1 = arith.constant 0 : i32
    return %arg0, %c0_i32, %c0_i32_0 : i32, i32, i32
  }
  func.func @transform_1(%arg0: i32) -> (i32, i32) {
    %c0_i32 = arith.constant 0 : i32
    %c0_i32_0 = arith.constant 0 : i32
    %c0_i32_1 = arith.constant 0 : i32
    return %c0_i32, %c0_i32_0 : i32, i32
  }
  func.func @transform_2(%arg0: i32) -> (i32, i32) {
    %c0_i32 = arith.constant 0 : i32
    %c0_i32_0 = arith.constant 0 : i32
    %c0_i32_1 = arith.constant 0 : i32
    return %c0_i32, %c0_i32_0 : i32, i32
  }
  func.func @transform_3(%arg0: i32) -> (i32, i32, i32) {
    %c0_i32 = arith.constant 0 : i32
    %c0_i32_0 = arith.constant 0 : i32
    %c0_i32_1 = arith.constant 0 : i32
    %c0_i32_2 = arith.constant 0 : i32
    return %c0_i32, %c0_i32_0, %c0_i32_1 : i32, i32, i32
  }
  func.func @transform_4(%arg0: i32) -> (i32, i32) {
    %c0_i32 = arith.constant 0 : i32
    %c0_i32_0 = arith.constant 0 : i32
    %c0_i32_1 = arith.constant 0 : i32
    return %c0_i32, %c0_i32_0 : i32, i32
  }
  func.func @transform_5(%arg0: i32) -> (i32, i32) {
    %c0_i32 = arith.constant 0 : i32
    %c0_i32_0 = arith.constant 0 : i32
    %c0_i32_1 = arith.constant 0 : i32
    return %c0_i32, %c0_i32_0 : i32, i32
  }
  func.func @transform_6(%arg0: i32) -> (i32, i32, i32) {
    %c0_i32 = arith.constant 0 : i32
    %c0_i32_0 = arith.constant 0 : i32
    %c0_i32_1 = arith.constant 0 : i32
    %c0_i32_2 = arith.constant 0 : i32
    return %c0_i32, %c0_i32_0, %c0_i32_1 : i32, i32, i32
  }
  func.func @transform_7(%arg0: i32) -> (i32, i32) {
    %c0_i32 = arith.constant 0 : i32
    %c0_i32_0 = arith.constant 0 : i32
    %c0_i32_1 = arith.constant 0 : i32
    return %c0_i32, %c0_i32_0 : i32, i32
  }
  func.func @transform_8(%arg0: i32) -> (i32, i32) {
    %c0_i32 = arith.constant 0 : i32
    %c0_i32_0 = arith.constant 0 : i32
    %c0_i32_1 = arith.constant 0 : i32
    return %c0_i32, %c0_i32_0 : i32, i32
  }
  func.func @transform_9(%arg0: i32) -> (i32, i32, i32) {
    %c0_i32 = arith.constant 0 : i32
    %c0_i32_0 = arith.constant 0 : i32
    %c0_i32_1 = arith.constant 0 : i32
    return %arg0, %c0_i32, %c0_i32_0 : i32, i32, i32
  }
}

</mosaic_0001>

<bundles_post_ra>
// kernel: _lambda_.5
= control target key start
LH: loop header
LB: loop body
LE: loop exit
PB: predicated region body
PF: predicated region fallthrough
CT: control target
= control target key end

     0   :  { %s2958_s17 = smov 0   ;;  %s3538_s0 = inlined_call_operand.vmem [shape: bf16[2,8,128], index: 0, kind: input, shape index: {}]   ;;  %s3539_s1 = inlined_call_operand.vmem [shape: bf16[2,16,256], index: 1, kind: input, shape index: {}]   ;;  %s3540_s2 = inlined_call_operand.vmem [shape: bf16[16,8], index: 2, kind: input, shape index: {}]   ;;  %s3541_s3 = inlined_call_operand.vmem [shape: bf16[128,256], index: 3, kind: input, shape index: {}]   ;;  %s3542_s4 = inlined_call_operand.vmem [shape: bf16[3,256,128], index: 4, kind: input, shape index: {}]   ;;  %s3543_s5 = inlined_call_operand.vmem [shape: bf16[3,256,128], index: 5, kind: input, shape index: {}]   ;;  %s3544_s6 = inlined_call_operand.vmem [shape: f32[1,128], index: 6, kind: input, shape index: {}]   ;;  %s3545_s7 = inlined_call_operand.vmem [shape: f32[1,128], index: 7, kind: input, shape index: {}]   ;;  %s3546_s8 = inlined_call_operand.vmem [shape: bf16[3,128,128], index: 8, kind: input, shape index: {}]   ;;  %s3547_s9 = inlined_call_operand.vmem [shape: f32[1,128], index: 9, kind: input, shape index: {}]   ;;  %s3548_s10 = inlined_call_operand.vmem [shape: f32[1,128], index: 10, kind: input, shape index: {}]   ;;  %s3549_s11 = inlined_call_operand.vmem [shape: bf16[2,16,128], index: 11, kind: output, shape index: {}]  }
   0x1 LB: > { %s2172_s18 = sadd.s32 4294967295, %s2893_s17   ;;  %p2176_p0 = scmp.ge.s32.totalorder %s2893_s17, 1  ;;  %s2893_s17 = sphi %s2958_s17, %s21_s17  }
   0x2   : > { %p346_p1 = scmp.lt.s32.totalorder %s2893_s17, 3 }
   0x4   : > { %p347_p2 = pnand %p2176_p0, %p346_p1 }
   0x5   : > { %v2740_v0 = vld [vmem:[%s3541_s3 + $0x4] ss:$8 sps:$4 sm:$0xff] (!%p347_p2)   ;;  %v2742_v1 = vld [vmem:[%s3541_s3] ss:$8 sps:$4 sm:$0xff] (!%p347_p2)   ;;  %v2895_v2 = vmov (!%p347_p2), 0   ;;  %p390_p3 = scmp.lt.s32.totalorder (!%p347_p2), %s2172_s18, 1  ;;  %v405_v63 = vlaneseq (!%p347_p2) }
   0x6   : > { %350 = sbr.rel (%p347_p2) target bundleno = 1088 (0x440), region = 64  ;;  %549 = vmatprep.mubr.bf16.mxu0 (!%p347_p2), %v2895_v2  ;;  %610 = vmatprep.mubr.bf16.mxu1 (!%p347_p2), %v2895_v2  ;;  %v2743_v3 = vld [vmem:[%s3541_s3 + $0x14] ss:$8 sps:$4 sm:$0xff] (!%p347_p2)   ;;  %v2745_v4 = vld [vmem:[%s3541_s3 + $0x10] ss:$8 sps:$4 sm:$0xff] (!%p347_p2)   ;;  %v2765_v18 = vld [vmem:[%s3542_s4 + $0xc0] sm:$0xff] (!%p347_p2)  }
   0x7   : > { %517 = vmatprep.subr.bf16.mxu0 (!%p347_p2), %v2740_v0  ;;  %v2746_v5 = vld [vmem:[%s3541_s3 + $0x24] ss:$8 sps:$4 sm:$0xff] (!%p347_p2)   ;;  %v2748_v6 = vld [vmem:[%s3541_s3 + $0x20] ss:$8 sps:$4 sm:$0xff] (!%p347_p2)   ;;  %v2749_v7 = vld [vmem:[%s3541_s3 + $0x34] ss:$8 sps:$4 sm:$0xff] (!%p347_p2)  }
   0x8   : > { %518 = vmatpush1.bf16.msra.mxu0 (!%p347_p2), %v2742_v1  ;;  %v2751_v8 = vld [vmem:[%s3541_s3 + $0x30] ss:$8 sps:$4 sm:$0xff] (!%p347_p2)   ;;  %v2752_v9 = vld [vmem:[%s3541_s3 + $0x44] ss:$8 sps:$4 sm:$0xff] (!%p347_p2)   ;;  %v2754_v10 = vld [vmem:[%s3541_s3 + $0x40] ss:$8 sps:$4 sm:$0xff] (!%p347_p2)  }
   0x9   : > { %519 = vmatprep.subr.bf16.mxu0 (!%p347_p2), %v2743_v3  ;;  %v2755_v11 = vld [vmem:[%s3541_s3 + $0x54] ss:$8 sps:$4 sm:$0xff] (!%p347_p2)   ;;  %v2757_v12 = vld [vmem:[%s3541_s3 + $0x50] ss:$8 sps:$4 sm:$0xff] (!%p347_p2)   ;;  %v2758_v13 = vld [vmem:[%s3541_s3 + $0x64] ss:$8 sps:$4 sm:$0xff] (!%p347_p2)  }
   0xa   : > { %v2760_v14 = vld [vmem:[%s3541_s3 + $0x60] ss:$8 sps:$4 sm:$0xff] (!%p347_p2)   ;;  %v2761_v15 = vld [vmem:[%s3541_s3 + $0x74] ss:$8 sps:$4 sm:$0xff] (!%p347_p2)   ;;  %v2763_v16 = vld [vmem:[%s3541_s3 + $0x70] ss:$8 sps:$4 sm:$0xff] (!%p347_p2)  }
   0xb   : > { %v2766_v19 = vld [vmem:[%s3542_s4 + $0x80] sm:$0xff] (!%p347_p2)   ;;  %v2767_v20 = vld [vmem:[%s3542_s4 + $0xc8] sm:$0xff] (!%p347_p2)   ;;  %v2771_v22 = vld [vmem:[%s3542_s4 + $0xd0] sm:$0xff] (!%p347_p2)   ;;  %vm571_vm0 = vcmask (!%p347_p2), 1043456   ;;  %vm567_vm1 = vcmask (!%p347_p2), 64512   ;;  %v3135_v0 = vshrl.u32 (!%p347_p2), %v405_v63, 7 }
   0xc   : > { %520 = vmatpush1.bf16.msra.mxu0 (!%p347_p2), %v2745_v4  ;;  %v2768_v21 = vld [vmem:[%s3542_s4 + $0x88] sm:$0xff] (!%p347_p2)   ;;  %v2772_v23 = vld [vmem:[%s3542_s4 + $0x90] sm:$0xff] (!%p347_p2)   ;;  %v2775_v24 = vld [vmem:[%s3542_s4 + $0xd8] sm:$0xff] (!%p347_p2)   ;;  %vm2897_vm6 = vmmov (!%p347_p2), 0  }
   0xd   : > { %s3551_s18 = smov (!%p390_p3, %s2172_s18), 1  ;;  %521 = vmatprep.subr.bf16.mxu0 %v2746_v5  ;;  %v2776_v25 = vld [vmem:[%s3542_s4 + $0x98] sm:$0xff]   ;;  %v2779_v26 = vld [vmem:[%s3542_s4 + $0xe0] sm:$0xff]   ;;  %v2783_v28 = vld [vmem:[%s3542_s4 + $0xe8] sm:$0xff]   ;;  %v407_v3 = vadd.s32 8, %v3135_v0  ;;  %vm408_vm2 = vcmp.gt.s32.totalorder %v3135_v0, 0 }
   0xe   : > { %s2177_s20 = sshll.u32 %s3551_s18, 2  ;;  %v2780_v27 = vld [vmem:[%s3542_s4 + $0xa0] sm:$0xff]   ;;  %v2784_v29 = vld [vmem:[%s3542_s4 + $0xa8] sm:$0xff]   ;;  %v2787_v30 = vld [vmem:[%s3542_s4 + $0xf0] sm:$0xff]   ;;  %s2493_s24 = sshll.u32 %s3551_s18, 4  ;;  %vm625_vm3 = vcmp.lt.s32.totalorder %v3135_v0, 1 }
   0xf   : > { %s393_s21 = scalar_lea.vmem %s3538_s0, %s2177_s20  ;;  %v2788_v31 = vld [vmem:[%s3542_s4 + $0xb0] sm:$0xff]   ;;  %v2769_v37 = vld [vmem:[%s3542_s4 + $0x140] sm:$0xff]   ;;  %v2773_v42 = vld [vmem:[%s3542_s4 + $0x148] sm:$0xff]   ;;  %s398_s27 = scalar_lea.vmem %s3539_s1, %s2493_s24  ;;  %vm415_vm4 = vcmp.lt.s32.totalorder %v407_v3, 15  ;;  %vm638_vm5 = vcmp.lt.s32.totalorder %v3135_v0, 7 }
  0x10   : > { %522 = vmatpush1.bf16.msra.mxu0 %v2748_v6  ;;  %v420_v17 = vld [vmem:[%s393_s21] sm:$0xf]  ;;  %v2774_v43 = vld [vmem:[%s3542_s4 + $0x108] sm:$0xff]   ;;  %v2777_v44 = vld [vmem:[%s3542_s4 + $0x150] sm:$0xff]   ;;  %s2494_s21 = sshll.u32 %s3551_s18, 3 }
  0x11   : > { %523 = vmatprep.subr.bf16.mxu0 %v2749_v7  ;;  %v2764_v40 = vld [vmem:[%s3540_s2] sm:$0xff]   ;;  %v2778_v45 = vld [vmem:[%s3542_s4 + $0x110] sm:$0xff]   ;;  %v2781_v46 = vld [vmem:[%s3542_s4 + $0x158] sm:$0xff]   ;;  %s403_s24 = scalar_lea.vmem %s3549_s11, %s2494_s21 }
  0x12   : > { %v2770_v41 = vld [vmem:[%s3542_s4 + $0x100] sm:$0xff]   ;;  %v2782_v47 = vld [vmem:[%s3542_s4 + $0x118] sm:$0xff]   ;;  %v2789_v50 = vld [vmem:[%s3542_s4 + $0x168] sm:$0xff]  }
  0x13   : > { %v2785_v48 = vld [vmem:[%s3542_s4 + $0x160] sm:$0xff]   ;;  %v2790_v51 = vld [vmem:[%s3542_s4 + $0x128] sm:$0xff]   ;;  %v2791_v52 = vld [vmem:[%s3542_s4 + $0xf8] sm:$0xff]  }
  0x14   : > { %524 = vmatpush1.bf16.msra.mxu0 %v2751_v8  ;;  %v2786_v49 = vld [vmem:[%s3542_s4 + $0x120] sm:$0xff]   ;;  %v2792_v53 = vld [vmem:[%s3542_s4 + $0xb8] sm:$0xff]   ;;  %v2793_v54 = vld [vmem:[%s3542_s4 + $0x170] sm:$0xff]  }
  0x15   : > { %525 = vmatprep.subr.bf16.mxu0 %v2752_v9  ;;  %v2794_v55 = vld [vmem:[%s3542_s4 + $0x130] sm:$0xff]   ;;  %v2795_v56 = vld [vmem:[%s3542_s4 + $0x40] sm:$0xff]   ;;  %v2797_v57 = vld [vmem:[%s3542_s4 + $0x178] sm:$0xff]   ;;  %v2896_v9 = vmov 0.0  }
  0x16   : > { %v2798_v58 = vld [vmem:[%s3542_s4 + $0x138] sm:$0xff]   ;;  %v2814_v59 = vld [vmem:[%s3543_s5 + $0x40] sm:$0xff]   ;;  %v3131_v61 = vld [vmem:[%s398_s27 + $0x8] sm:$0xff] }
  0x17   : > { %v3129_v60 = vld [vmem:[%s398_s27] sm:$0xff]  ;;  %v1169_v2 = vunpack.c.h.bf16 %v3131_v61  ;;  %v2808_v3 = vld [vmem:[%s3542_s4 + $0x28] sm:$0xff]   ;;  %v2873_v0 = vld [vmem:[%s3546_s8 + $0x10] sm:$0xff]  }
  0x18   : > { %526 = vmatpush1.bf16.msra.mxu0 %v2754_v10  ;;  %v2347_v62 = vcombine.low %v3129_v60, %v3131_v61  ;;  %v1167_v1 = vunpack.c.h.bf16 %v3129_v60  ;;  %v3149_v10 = vsel %vm408_vm2, 1.0, %v2896_v9  ;;  %v2830_v63 = vld [vmem:[%s3543_s5 + $0x60] sm:$0xff]  }
  0x19   : > { %527 = vmatprep.subr.bf16.mxu0 %v2755_v11  ;;  %v1173_v5 = vrot.slane %v1169_v2, 7 }
  0x1a   : > { %v1171_v4 = vrot.slane %v1167_v1, 7 }
  0x1c   : > { %528 = vmatpush1.bf16.msra.mxu0 %v2757_v12  ;;  %v1177_v6 = vsel %vm625_vm3, %v1173_v5, %v1171_v4 }
  0x1d   : > { %529 = vmatprep.subr.bf16.mxu0 %v2758_v13  ;;  %v3153_v13 = vsel %vm415_vm4, 1.0, %v2896_v9 }
  0x20   : > { %530 = vmatpush1.bf16.msra.mxu0 %v2760_v14 }
  0x21   : > { %531 = vmatprep.subr.bf16.mxu0 %v2761_v15  ;;  %v1179_v15 = vmul.f32 %v3149_v10, %v1177_v6  ;;  %v1166_v6 = vunpack.c.l.bf16 %v3129_v60 }
  0x24   : > { %532 = vmatpush1.bf16.msra.mxu0 %v2763_v16 }
  0x25   : > { %2502 = vmatprep.subr.bf16.mxu0 %v2765_v18 }
  0x27   : > { %550 = vmatmul.mubr.bf16.vlgmr.msra.gmra.mrb[0].mxu0 %v420_v17 }
  0x28   : > { %2503 = vmatpush3.bf16.msra.mxu0 %v2766_v19 }
  0x29   : > { %2504 = vmatprep.subr.bf16.mxu0 %v2767_v20 }
  0x2c   : > { %2505 = vmatpush3.bf16.msra.mxu0 %v2768_v21 }
  0x2d   : > { %2506 = vmatprep.subr.bf16.mxu0 %v2771_v22 }
  0x30   : > { %2507 = vmatpush3.bf16.msra.mxu0 %v2772_v23 }
  0x31   : > { %2508 = vmatprep.subr.bf16.mxu0 %v2775_v24 }
  0x34   : > { %2509 = vmatpush3.bf16.msra.mxu0 %v2776_v25  ;;  %v2796_v25 = vld [vmem:[%s3542_s4] sm:$0xff]  }
  0x35   : > { %2510 = vmatprep.subr.bf16.mxu0 %v2779_v26 }
  0x38   : > { %2511 = vmatpush3.bf16.msra.mxu0 %v2780_v27 }
  0x39   : > { %2512 = vmatprep.subr.bf16.mxu0 %v2783_v28 }
  0x3c   : > { %2513 = vmatpush3.bf16.msra.mxu0 %v2784_v29 }
  0x3d   : > { %2514 = vmatprep.subr.bf16.mxu0 %v2787_v30  ;;  %v2799_v30 = vld [vmem:[%s3542_s4 + $0x48] sm:$0xff]  }
  0x40   : > { %2515 = vmatpush3.bf16.msra.mxu0 %v2788_v31 }
  0x41   : > { %2516 = vmatprep.subr.bf16.mxu0 %v2791_v52  ;;  %v2822_v52 = vld [vmem:[%s3543_s5 + $0x50] sm:$0xff]  }
  0x44   : > { %2517 = vmatpush3.bf16.msra.mxu0 %v2792_v53  ;;  %v2804_v53 = vld [vmem:[%s3542_s4 + $0x18] sm:$0xff]  }
  0x45   : > { %2524 = vmatprep.subr.bf16.mxu0 %v2795_v56  ;;  %v2826_v56 = vld [vmem:[%s3543_s5 + $0x58] sm:$0xff]  }
  0xfa   : > { %v551_v32 = vpop.f32.mrb[0].mxu0 }
  0xfb   : > { %v560_v33 = vpack.c.bf16 %v551_v32, %v551_v32  ;;  %v553_v34 = vpop.f32.mrb[1].mxu0 }
  0xfc   : > { %v561_v35 = vpack.c.bf16 %v553_v34, %v553_v34  ;;  %v555_v36 = vpop.f32.mrb[2].mxu0 }
  0xfd   : > { %v556_v38 = vpop.f32.mrb[3].mxu0  ;;  %v573_v39 = vsel %vm571_vm0, %v560_v33, 0 }
  0xfe   : > { %2201 = vmatprep.subr.msk.bf16.mxu1 %vm571_vm0, %v561_v35  ;;  %v1175_v38 = vsel %vm625_vm3, %v1171_v4, %v1173_v5  ;;  %v2809_v4 = vld [vmem:[%s3542_s4 + $0x70] sm:$0xff]   ;;  %v2832_v5 = vld [vmem:[%s3543_s5 + $0x20] sm:$0xff]  }
  0xff   : > { %579 = vmatpush1.bf16.msra.mxu1 %v573_v39  ;;  %v2800_v39 = vld [vmem:[%s3542_s4 + $0x8] sm:$0xff]  }
 0x100   : > { %2546 = vmatprep.subr.bf16.mxu1 %v2769_v37 }
 0x102   : > { %2202 = vmatmul.mubr.msk.bf16.vlgmr.msra.gmra.mrb[0].mxu1 %vm567_vm1, %v2764_v40 }
 0x103   : > { %2547 = vmatpush3.bf16.msra.mxu1 %v2770_v41 }
 0x104   : > { %2548 = vmatprep.subr.bf16.mxu1 %v2773_v42 }
 0x107   : > { %2549 = vmatpush3.bf16.msra.mxu1 %v2774_v43 }
 0x108   : > { %2550 = vmatprep.subr.bf16.mxu1 %v2777_v44  ;;  %v2801_v44 = vld [vmem:[%s3542_s4 + $0x50] sm:$0xff]  }
 0x10b   : > { %2551 = vmatpush3.bf16.msra.mxu1 %v2778_v45 }
 0x10c   : > { %2552 = vmatprep.subr.bf16.mxu1 %v2781_v46  ;;  %v2816_v46 = vld [vmem:[%s3543_s5] sm:$0xff]  }
 0x10f   : > { %2553 = vmatpush3.bf16.msra.mxu1 %v2782_v47  ;;  %v1195_v47 = vpack.c.bf16 %v1175_v38, %v1179_v15  ;;  %v1170_v15 = vrot.slane %v1166_v6, 7  ;;  %v2835_v38 = vld [vmem:[%s3543_s5 + $0xa8] sm:$0xff]  }
 0x110   : > { %2554 = vmatprep.subr.bf16.mxu1 %v2785_v48  ;;  %v2818_v48 = vld [vmem:[%s3543_s5 + $0x48] sm:$0xff]  }
 0x113   : > { %2555 = vmatpush3.bf16.msra.mxu1 %v2786_v49  ;;  %v2802_v49 = vld [vmem:[%s3542_s4 + $0x10] sm:$0xff]  }
 0x114   : > { %2556 = vmatprep.subr.bf16.mxu1 %v2789_v50  ;;  %v2803_v50 = vld [vmem:[%s3542_s4 + $0x58] sm:$0xff]  }
 0x117   : > { %2557 = vmatpush3.bf16.msra.mxu1 %v2790_v51  ;;  %v2820_v51 = vld [vmem:[%s3543_s5 + $0x8] sm:$0xff]  }
 0x118   : > { %2558 = vmatprep.subr.bf16.mxu1 %v2793_v54  ;;  %v2805_v54 = vld [vmem:[%s3542_s4 + $0x60] sm:$0xff]  }
 0x11b   : > { %2559 = vmatpush3.bf16.msra.mxu1 %v2794_v55  ;;  %v2824_v55 = vld [vmem:[%s3543_s5 + $0x10] sm:$0xff]  }
 0x11c   : > { %2560 = vmatprep.subr.bf16.mxu1 %v2797_v57  ;;  %v2806_v57 = vld [vmem:[%s3542_s4 + $0x20] sm:$0xff]  }
 0x11f   : > { %2561 = vmatpush3.bf16.msra.mxu1 %v2798_v58  ;;  %v2807_v58 = vld [vmem:[%s3542_s4 + $0x68] sm:$0xff]  }
 0x120   : > { %2590 = vmatprep.subr.bf16.mxu1 %v2814_v59  ;;  %v2828_v59 = vld [vmem:[%s3543_s5 + $0x18] sm:$0xff]  }
 0x1d5   : > { %v612_v7 = vpop.f32.mrb[0].mxu1 }
 0x1d6   : > { %v614_v8 = vpop.f32.mrb[1].mxu1  ;;  %v621_v11 = vrot.slane %v612_v7, 7  ;;  %v634_v12 = vrot.slane %v612_v7, 1 }
 0x1d7   : > { %v616_v14 = vpop.f32.mrb[2].mxu1  ;;  %v622_v16 = vrot.slane %v614_v8, 7  ;;  %v635_v21 = vrot.slane %v614_v8, 1 }
 0x1d8   : > { %v623_v17 = vrot.slane %v616_v14, 7  ;;  %v636_v18 = vrot.slane %v616_v14, 1  ;;  %v681_v19 = vpack.c.bf16 %v616_v14, %v612_v7  ;;  %v618_v20 = vpop.f32.mrb[3].mxu1  ;;  %v1168_v7 = vunpack.c.l.bf16 %v3131_v61  ;;  %v2836_v14 = vld [vmem:[%s3543_s5 + $0x28] sm:$0xff]  }
 0x1d9   : > { %v624_v22 = vrot.slane %v618_v20, 7  ;;  %v637_v23 = vrot.slane %v618_v20, 1  ;;  %v682_v24 = vpack.c.bf16 %v618_v20, %v614_v8  ;;  %v2834_v8 = vld [vmem:[%s3543_s5 + $0x68] sm:$0xff]   ;;  %v2840_v20 = vld [vmem:[%s3543_s5 + $0x30] sm:$0xff]  }
 0x1da   : > { %v3161_v26 = vsel %vm625_vm3, %v621_v11, %v623_v17  ;;  %v628_v27 = vsel %vm625_vm3, %v623_v17, %v621_v11  ;;  %v639_v28 = vsel %vm638_vm5, %v634_v12, %v636_v18  ;;  %v641_v29 = vsel %vm638_vm5, %v636_v18, %v634_v12  ;;  %v2810_v11 = vld [vmem:[%s3542_s4 + $0x30] sm:$0xff]   ;;  %v2811_v12 = vld [vmem:[%s3542_s4 + $0x78] sm:$0xff]  }
 0x1db   : > { %v3173_v31 = vmul.f32 %v3149_v10, %v628_v27  ;;  %v645_v32 = vmul.f32 %v3153_v13, %v641_v29  ;;  %844 = vmatprep.mubr.bf16.mxu0 %v682_v24  ;;  %v627_v33 = vsel %vm625_vm3, %v622_v16, %v624_v22  ;;  %v629_v34 = vsel %vm625_vm3, %v624_v22, %v622_v16  ;;  %v2838_v17 = vld [vmem:[%s3543_s5 + $0x70] sm:$0xff]   ;;  %v2812_v18 = vld [vmem:[%s3542_s4 + $0x38] sm:$0xff]  }
 0x1dc   : > { %845 = vmatmul.mubr.bf16.vlgmr.msra.gmra.mrb[4].mxu0 %v681_v19  ;;  %v631_v35 = vmul.f32 %v3149_v10, %v629_v34  ;;  %v640_v36 = vsel %vm638_vm5, %v635_v21, %v637_v23  ;;  %v642_v37 = vsel %vm638_vm5, %v637_v23, %v635_v21  ;;  %v1172_v16 = vrot.slane %v1168_v7, 7  ;;  %v2813_v19 = vld [vmem:[%s3543_s5 + $0xc0] sm:$0xff]   ;;  %v2842_v22 = vld [vmem:[%s3543_s5 + $0x78] sm:$0xff]  }
 0x1dd   : > { %2525 = vmatpush3.bf16.msra.mxu0 %v2796_v25  ;;  %v646_v40 = vmul.f32 %v3153_v13, %v642_v37  ;;  %v990_v41 = vpack.c.bf16 %v645_v32, %v639_v28  ;;  %v647_v42 = vpack.c.bf16 %v3161_v26, %v3173_v31  ;;  %v2815_v23 = vld [vmem:[%s3543_s5 + $0x80] sm:$0xff]   ;;  %v2348_v24 = vcombine.high %v3129_v60, %v3131_v61  ;;  %v2817_v25 = vld [vmem:[%s3543_s5 + $0xc8] sm:$0xff]   ;;  %v2844_v28 = vld [vmem:[%s3543_s5 + $0x38] sm:$0xff]  }
 0x1de   : > { %2526 = vmatprep.subr.bf16.mxu0 %v2799_v30  ;;  %v648_v43 = vpack.c.bf16 %v627_v33, %v631_v35  ;;  %v1176_v21 = vsel %vm625_vm3, %v1172_v16, %v1170_v15  ;;  %v1174_v29 = vsel %vm625_vm3, %v1170_v15, %v1172_v16  ;;  %v2819_v30 = vld [vmem:[%s3543_s5 + $0x88] sm:$0xff]   ;;  %v2821_v32 = vld [vmem:[%s3543_s5 + $0xd0] sm:$0xff]   ;;  %v2825_v31 = vld [vmem:[%s3543_s5 + $0xd8] sm:$0xff]  }
 0x1df   : > { %v991_v45 = vpack.c.bf16 %v646_v40, %v640_v36  ;;  %v1178_v27 = vmul.f32 %v3149_v10, %v1176_v21  ;;  %v2823_v26 = vld [vmem:[%s3543_s5 + $0x90] sm:$0xff]   ;;  %v2827_v34 = vld [vmem:[%s3543_s5 + $0x98] sm:$0xff]   ;;  %v2829_v35 = vld [vmem:[%s3543_s5 + $0xe0] sm:$0xff]   ;;  %v1183_v40 = vrot.slane %v1167_v1, 1 }
 0x1e0   : > { %981 = vmatprep.mubr.bf16.mxu0 %v648_v43  ;;  %v2831_v36 = vld [vmem:[%s3543_s5 + $0xa0] sm:$0xff]   ;;  %v2833_v37 = vld [vmem:[%s3543_s5 + $0xe8] sm:$0xff]   ;;  %v2841_v43 = vld [vmem:[%s3543_s5 + $0xf8] sm:$0xff]  }
 0x1e1   : > { %2527 = vmatpush3.bf16.msra.mxu0 %v2800_v39  ;;  %1153 = vmatprep.mubr.bf16.mxu1 %v991_v45  ;;  %v1194_v33 = vpack.c.bf16 %v1174_v29, %v1178_v27  ;;  %v2837_v39 = vld [vmem:[%s3543_s5 + $0xf0] sm:$0xff]   ;;  %v2843_v1 = vld [vmem:[%s3543_s5 + $0xb8] sm:$0xff]   ;;  %v2847_v45 = vld [vmem:[%s3543_s5 + $0x140] sm:$0xff]  }
 0x1e2   : > { %1154 = vmatmul.mubr.bf16.vlgmr.msra.gmra.mrb[4].mxu1 %v990_v41  ;;  %2528 = vmatprep.subr.bf16.mxu0 %v2801_v44  ;;  %v1185_v41 = vrot.slane %v1169_v2, 1  ;;  %v2861_v60 = vld [vmem:[%s3543_s5 + $0x178] sm:$0xff]   ;;  %v2867_v15 = vld [vmem:[%s3546_s8 + $0x60] sm:$0xff]   ;;  %v2868_v16 = vld [vmem:[%s3546_s8 + $0x68] sm:$0xff]  }
 0x1e3   : > { %2591 = vmatpush3.bf16.msra.mxu1 %v2816_v46  ;;  %1536 = vmatprep.mubr.bf16.mxu1 %v1195_v47  ;;  %v2848_v47 = vld [vmem:[%s3543_s5 + $0x100] sm:$0xff]  }
 0x1e4   : > { %2592 = vmatprep.subr.bf16.mxu1 %v2818_v48  ;;  %v1189_v44 = vsel %vm638_vm5, %v1185_v41, %v1183_v40  ;;  %v1187_v46 = vsel %vm638_vm5, %v1183_v40, %v1185_v41 }
 0x1e5   : > { %2529 = vmatpush3.bf16.msra.mxu0 %v2802_v49  ;;  %v1193_v2 = vmul.f32 %v3153_v13, %v1189_v44  ;;  %v2849_v49 = vld [vmem:[%s3543_s5 + $0x148] sm:$0xff]  }
 0x1e6   : > { %2530 = vmatprep.subr.bf16.mxu0 %v2803_v50  ;;  %v2850_v50 = vld [vmem:[%s3543_s5 + $0x108] sm:$0xff]  }
 0x1e7   : > { %2593 = vmatpush3.bf16.msra.mxu1 %v2820_v51  ;;  %v1546_v48 = vpack.c.bf16 %v1193_v2, %v1187_v46  ;;  %v2851_v51 = vld [vmem:[%s3543_s5 + $0x150] sm:$0xff]  }
 0x1e8   : > { %2594 = vmatprep.subr.bf16.mxu1 %v2822_v52  ;;  %v2852_v52 = vld [vmem:[%s3543_s5 + $0x110] sm:$0xff]  }
 0x1e9   : > { %2531 = vmatpush3.bf16.msra.mxu0 %v2804_v53  ;;  %v2854_v53 = vld [vmem:[%s3543_s5 + $0x118] sm:$0xff]  }
 0x1ea   : > { %2532 = vmatprep.subr.bf16.mxu0 %v2805_v54  ;;  %v2855_v54 = vld [vmem:[%s3543_s5 + $0x160] sm:$0xff]  }
 0x1eb   : > { %2595 = vmatpush3.bf16.msra.mxu1 %v2824_v55  ;;  %v2856_v55 = vld [vmem:[%s3543_s5 + $0x120] sm:$0xff]  }
 0x1ec   : > { %2596 = vmatprep.subr.bf16.mxu1 %v2826_v56  ;;  %v2857_v56 = vld [vmem:[%s3543_s5 + $0x168] sm:$0xff]  }
 0x1ed   : > { %2533 = vmatpush3.bf16.msra.mxu0 %v2806_v57  ;;  %v2858_v57 = vld [vmem:[%s3543_s5 + $0x128] sm:$0xff]  }
 0x1ee   : > { %2534 = vmatprep.subr.bf16.mxu0 %v2807_v58  ;;  %v1182_v58 = vrot.slane %v1166_v6, 1 }
 0x1ef   : > { %2597 = vmatpush3.bf16.msra.mxu1 %v2828_v59  ;;  %v1184_v59 = vrot.slane %v1168_v7, 1 }
 0x1f0   : > { %2598 = vmatprep.subr.bf16.mxu1 %v2830_v63  ;;  %v2859_v63 = vld [vmem:[%s3543_s5 + $0x170] sm:$0xff]  }
 0x1f1   : > { %2535 = vmatpush3.bf16.msra.mxu0 %v2808_v3  ;;  %v2860_v3 = vld [vmem:[%s3543_s5 + $0x130] sm:$0xff]   ;;  %v1186_v6 = vsel %vm638_vm5, %v1182_v58, %v1184_v59 }
 0x1f2   : > { %2536 = vmatprep.subr.bf16.mxu0 %v2809_v4  ;;  %v1188_v4 = vsel %vm638_vm5, %v1184_v59, %v1182_v58  ;;  %v2429_v59 = vld [vmem:[%s3544_s6] ss:$0 sm:$0xff] }
 0x1f3   : > { %2599 = vmatpush3.bf16.msra.mxu1 %v2832_v5  ;;  %v1192_v61 = vmul.f32 %v3153_v13, %v1188_v4  ;;  %v2862_v5 = vld [vmem:[%s3543_s5 + $0x138] sm:$0xff]   ;;  %v2430_v4 = vld [vmem:[%s3545_s7] ss:$0 sm:$0xff] }
 0x1f4   : > { %2600 = vmatprep.subr.bf16.mxu1 %v2834_v8  ;;  %v2863_v8 = vld [vmem:[%s3546_s8 + $0x40] sm:$0xff]  }
 0x1f5   : > { %2537 = vmatpush3.bf16.msra.mxu0 %v2810_v11  ;;  %v1545_v7 = vpack.c.bf16 %v1192_v61, %v1186_v6  ;;  %v2864_v11 = vld [vmem:[%s3546_s8 + $0x48] sm:$0xff]  }
 0x1f6   : > { %2538 = vmatprep.subr.bf16.mxu0 %v2811_v12  ;;  %v2865_v12 = vld [vmem:[%s3546_s8 + $0x50] sm:$0xff]  }
 0x1f7   : > { %2601 = vmatpush3.bf16.msra.mxu1 %v2836_v14  ;;  %v2866_v14 = vld [vmem:[%s3546_s8 + $0x58] sm:$0xff]  }
 0x1f8   : > { %2602 = vmatprep.subr.bf16.mxu1 %v2838_v17  ;;  %v2869_v17 = vld [vmem:[%s3546_s8 + $0x70] sm:$0xff]  }
 0x1f9   : > { %2539 = vmatpush3.bf16.msra.mxu0 %v2812_v18  ;;  %v2870_v18 = vld [vmem:[%s3546_s8 + $0x78] sm:$0xff]  }
 0x1fa   : > { %2568 = vmatprep.subr.bf16.mxu0 %v2813_v19 }
 0x1fb   : > { %2603 = vmatpush3.bf16.msra.mxu1 %v2840_v20 }
 0x1fc   : > { %982 = vmatmul.mubr.bf16.vlgmr.msra.gmra.mrb[8].mxu0 %v647_v42  ;;  %2604 = vmatprep.subr.bf16.mxu1 %v2842_v22  ;;  %v2839_v42 = vld [vmem:[%s3543_s5 + $0xb0] sm:$0xff]  }
 0x1fd   : > { %2569 = vmatpush3.bf16.msra.mxu0 %v2815_v23  ;;  %1399 = vmatprep.mubr.bf16.mxu0 %v2348_v24 }
 0x1fe   : > { %2570 = vmatprep.subr.bf16.mxu0 %v2817_v25 }
 0x1ff   : > { %2605 = vmatpush3.bf16.msra.mxu1 %v2844_v28 }
 0x200   : > { %2661 = vmatprep.subr.bf16.mxu1 %v2896_v9 }
 0x201   : > { %2571 = vmatpush3.bf16.msra.mxu0 %v2819_v30 }
 0x202   : > { %2572 = vmatprep.subr.bf16.mxu0 %v2821_v32  ;;  %1537 = vmatmul.mubr.bf16.vlgmr.msra.gmra.mrb[8].mxu1 %v1194_v33 }
 0x203   : > { %2662 = vmatpush3.bf16.msra.mxu1 %v2863_v8  ;;  %2677 = vmatprep.mubr.msk.bf16.mxu1 %vm2897_vm6, %v2896_v9 }
 0x204   : > { %2663 = vmatprep.subr.bf16.mxu1 %v2896_v9 }
 0x205   : > { %2573 = vmatpush3.bf16.msra.mxu0 %v2823_v26 }
 0x206   : > { %2574 = vmatprep.subr.bf16.mxu0 %v2825_v31 }
 0x207   : > { %2664 = vmatpush3.bf16.msra.mxu1 %v2864_v11 }
 0x208   : > { %2665 = vmatprep.subr.bf16.mxu1 %v2896_v9 }
 0x209   : > { %2575 = vmatpush3.bf16.msra.mxu0 %v2827_v34 }
 0x20a   : > { %2576 = vmatprep.subr.bf16.mxu0 %v2829_v35 }
 0x20b   : > { %2666 = vmatpush3.bf16.msra.mxu1 %v2865_v12  ;;  %v2871_v12 = vld [vmem:[%s3546_s8] sm:$0xff]  }
 0x20c   : > { %2667 = vmatprep.subr.bf16.mxu1 %v2896_v9 }
 0x20d   : > { %2577 = vmatpush3.bf16.msra.mxu0 %v2831_v36 }
 0x20e   : > { %2578 = vmatprep.subr.bf16.mxu0 %v2833_v37 }
 0x20f   : > { %2668 = vmatpush3.bf16.msra.mxu1 %v2866_v14 }
 0x210   : > { %2669 = vmatprep.subr.bf16.mxu1 %v2896_v9 }
 0x211   : > { %2579 = vmatpush3.bf16.msra.mxu0 %v2835_v38 }
 0x212   : > { %2580 = vmatprep.subr.bf16.mxu0 %v2837_v39 }
 0x213   : > { %2670 = vmatpush3.bf16.msra.mxu1 %v2867_v15 }
 0x214   : > { %2671 = vmatprep.subr.bf16.mxu1 %v2896_v9 }
 0x215   : > { %2581 = vmatpush3.bf16.msra.mxu0 %v2839_v42 }
 0x216   : > { %2582 = vmatprep.subr.bf16.mxu0 %v2841_v43 }
 0x217   : > { %2672 = vmatpush3.bf16.msra.mxu1 %v2868_v16 }
 0x218   : > { %2673 = vmatprep.subr.bf16.mxu1 %v2896_v9 }
 0x219   : > { %2583 = vmatpush3.bf16.msra.mxu0 %v2843_v1 }
 0x21a   : > { %2612 = vmatprep.subr.bf16.mxu0 %v2847_v45 }
 0x21b   : > { %2674 = vmatpush3.bf16.msra.mxu1 %v2869_v17 }
 0x21c   : > { %1400 = vmatmul.mubr.bf16.vlgmr.msra.gmra.mrb[12].mxu0 %v2347_v62  ;;  %v2853_v62 = vld [vmem:[%s3543_s5 + $0x158] sm:$0xff]   ;;  %2675 = vmatprep.subr.bf16.mxu1 %v2896_v9 }
 0x21d   : > { %2613 = vmatpush3.bf16.msra.mxu0 %v2848_v47  ;;  %1708 = vmatprep.mubr.bf16.mxu0 %v1546_v48 }
 0x21e   : > { %2614 = vmatprep.subr.bf16.mxu0 %v2849_v49 }
 0x21f   : > { %2676 = vmatpush3.bf16.msra.mxu1 %v2870_v18 }
 0x220   : > { %2681 = vmatprep.subr.bf16.mxu1 %v2896_v9 }
 0x221   : > { %2615 = vmatpush3.bf16.msra.mxu0 %v2850_v50 }
 0x222   : > { %2616 = vmatprep.subr.bf16.mxu0 %v2851_v51 }
 0x225   : > { %2617 = vmatpush3.bf16.msra.mxu0 %v2852_v52 }
 0x226   : > { %2618 = vmatprep.subr.bf16.mxu0 %v2853_v62 }
 0x229   : > { %2619 = vmatpush3.bf16.msra.mxu0 %v2854_v53 }
 0x22a   : > { %2620 = vmatprep.subr.bf16.mxu0 %v2855_v54 }
 0x22d   : > { %2621 = vmatpush3.bf16.msra.mxu0 %v2856_v55 }
 0x22e   : > { %2622 = vmatprep.subr.bf16.mxu0 %v2857_v56 }
 0x231   : > { %2623 = vmatpush3.bf16.msra.mxu0 %v2858_v57 }
 0x232   : > { %2624 = vmatprep.subr.bf16.mxu0 %v2859_v63 }
 0x235   : > { %2625 = vmatpush3.bf16.msra.mxu0 %v2860_v3 }
 0x236   : > { %2626 = vmatprep.subr.bf16.mxu0 %v2861_v60 }
 0x239   : > { %2627 = vmatpush3.bf16.msra.mxu0 %v2862_v5 }
 0x23c   : > { %1709 = vmatmul.mubr.bf16.vlgmr.msra.gmra.mrb[16].mxu0 %v1545_v7 }
 0x2af   : > { %v2518_v19 = vpop.f32.mrb[4].mxu0 }
 0x2b0   : > { %v2519_v20 = vpop.f32.mrb[5].mxu0 }
 0x2b1   : > { %v2520_v21 = vadd.f32 %v2519_v20, %v2518_v19  ;;  %v2521_v22 = vpop.f32.mrb[6].mxu0 }
 0x2b2   : > { %v2522_v23 = vpop.f32.mrb[7].mxu0 }
 0x2b3   : > { %v2523_v24 = vadd.f32 %v2522_v23, %v2521_v22  ;;  %v2872_v23 = vld [vmem:[%s3546_s8 + $0x8] sm:$0xff]  }
 0x2b5   : > { %v2562_v25 = vpop.f32.mrb[4].mxu1 }
 0x2b6   : > { %v2563_v27 = vpop.f32.mrb[5].mxu1 }
 0x2b7   : > { %v2564_v28 = vadd.f32 %v2563_v27, %v2562_v25  ;;  %v2565_v29 = vpop.f32.mrb[6].mxu1 }
 0x2b8   : > { %v2566_v30 = vpop.f32.mrb[7].mxu1 }
 0x2b9   : > { %v2567_v32 = vadd.f32 %v2566_v30, %v2565_v29  ;;  %v2874_v29 = vld [vmem:[%s3546_s8 + $0x18] sm:$0xff]   ;;  %v2877_v30 = vld [vmem:[%s3546_s8 + $0x30] sm:$0xff]  }
 0x2cf   : > { %v2540_v33 = vpop.f32.mrb[8].mxu0 }
 0x2d0   : > { %v2541_v26 = vpop.f32.mrb[9].mxu0 }
 0x2d1   : > { %v2542_v31 = vadd.f32 %v2541_v26, %v2540_v33  ;;  %v2543_v34 = vpop.f32.mrb[10].mxu0  ;;  %v2879_v33 = vld [vmem:[%s3546_s8 + $0x80] sm:$0xff]   ;;  %v2880_v26 = vld [vmem:[%s3546_s8 + $0x88] sm:$0xff]  }
 0x2d2   : > { %v2544_v35 = vpop.f32.mrb[11].mxu0 }
 0x2d3   : > { %v984_v36 = vadd.f32 %v2542_v31, %v2520_v21  ;;  %v2545_v37 = vadd.f32 %v2544_v35, %v2543_v34  ;;  %v2881_v31 = vld [vmem:[%s3546_s8 + $0x90] sm:$0xff]   ;;  %v2882_v34 = vld [vmem:[%s3546_s8 + $0x98] sm:$0xff]   ;;  %v2883_v35 = vld [vmem:[%s3546_s8 + $0xa0] sm:$0xff]  }
 0x2d5   : > { %v1162_v38 = vadd.f32 %v2564_v28, %v984_v36  ;;  %v987_v39 = vadd.f32 %v2545_v37, %v2523_v24  ;;  %v2606_v40 = vpop.f32.mrb[8].mxu1  ;;  %v2884_v36 = vld [vmem:[%s3546_s8 + $0xa8] sm:$0xff]   ;;  %v2885_v37 = vld [vmem:[%s3546_s8 + $0xb0] sm:$0xff]  }
 0x2d6   : > { %v2607_v41 = vpop.f32.mrb[9].mxu1 }
 0x2d7   : > { %v1163_v42 = vadd.f32 %v2567_v32, %v987_v39  ;;  %v2608_v43 = vadd.f32 %v2607_v41, %v2606_v40  ;;  %v2609_v44 = vpop.f32.mrb[10].mxu1  ;;  %v2878_v32 = vld [vmem:[%s3546_s8 + $0x38] sm:$0xff]   ;;  %v2487_v39 = vld [vmem:[%s3547_s9] ss:$0 sm:$0xff] }
 0x2d8   : > { %v2610_v1 = vpop.f32.mrb[11].mxu1  ;;  %v2488_v41 = vld [vmem:[%s3548_s10] ss:$0 sm:$0xff] }
 0x2d9   : > { %v2611_v2 = vadd.f32 %v2610_v1, %v2609_v44 }
 0x2ef   : > { %v2584_v45 = vpop.f32.mrb[12].mxu0 }
 0x2f0   : > { %v2585_v46 = vpop.f32.mrb[13].mxu0 }
 0x2f1   : > { %v2586_v47 = vadd.f32 %v2585_v46, %v2584_v45  ;;  %v2587_v48 = vpop.f32.mrb[14].mxu0 }
 0x2f2   : > { %v2588_v49 = vpop.f32.mrb[15].mxu0 }
 0x2f3   : > { %v1539_v50 = vadd.f32 %v2608_v43, %v2586_v47  ;;  %v2589_v51 = vadd.f32 %v2588_v49, %v2587_v48 }
 0x2f5   : > { %v1542_v52 = vadd.f32 %v2611_v2, %v2589_v51 }
 0x30f   : > { %v2628_v62 = vpop.f32.mrb[16].mxu0 }
 0x310   : > { %v2629_v53 = vpop.f32.mrb[17].mxu0 }
 0x311   : > { %v2630_v54 = vadd.f32 %v2629_v53, %v2628_v62  ;;  %v2631_v55 = vpop.f32.mrb[18].mxu0 }
 0x312   : > { %v2632_v56 = vpop.f32.mrb[19].mxu0 }
 0x313   : > { %v1717_v57 = vadd.f32 %v2630_v54, %v1539_v50  ;;  %v2633_v58 = vadd.f32 %v2632_v56, %v2631_v55 }
 0x315   : > { %v1719_v63 = vadd.f32 %v1717_v57, %v1162_v38  ;;  %v1718_v3 = vadd.f32 %v2633_v58, %v1542_v52  ;;  %v2886_v38 = vld [vmem:[%s3546_s8 + $0xb8] sm:$0xff]  }
 0x317   : > { %v1728_v60 = vmul.f32 %v2429_v59, %v1719_v63  ;;  %v1720_v61 = vadd.f32 %v1718_v3, %v1163_v42 }
 0x319   : > { %v1737_v5 = vadd.f32 %v2430_v4, %v1728_v60  ;;  %v1729_v6 = vmul.f32 %v2429_v59, %v1720_v61 }
 0x31b   : > { %v1739_v7 = vmax.f32 %v1737_v5, 0.0  ;;  %v1738_v8 = vadd.f32 %v2430_v4, %v1729_v6 }
 0x31d   : > { %v1740_v11 = vmax.f32 %v1738_v8, 0.0  ;;  %v1741_v14 = vrot.slane %v1739_v7, 7  ;;  %v1747_v17 = vrot.slane %v1739_v7, 1 }
 0x31f   : > { %v1770_v15 = vpack.c.bf16 %v1740_v11, %v1739_v7  ;;  %v1742_v16 = vrot.slane %v1740_v11, 7  ;;  %v1748_v18 = vrot.slane %v1740_v11, 1 }
 0x321   : > { %2678 = vmatmul.mubr.bf16.vlgmr.msra.gmra.mrb[12].mxu1 %v1770_v15  ;;  %v1743_v19 = vsel %vm625_vm3, %v1741_v14, %v1742_v16  ;;  %v1744_v20 = vsel %vm625_vm3, %v1742_v16, %v1741_v14  ;;  %v1749_v21 = vsel %vm638_vm5, %v1747_v17, %v1748_v18  ;;  %v1750_v22 = vsel %vm638_vm5, %v1748_v18, %v1747_v17 }
 0x322   : > { %2682 = vmatpush3.bf16.msra.mxu1 %v2871_v12  ;;  %2697 = vmatprep.mubr.msk.bf16.mxu1 %vm2897_vm6, %v2896_v9  ;;  %v1745_v24 = vmul.f32 %v3149_v10, %v1744_v20  ;;  %v1752_v25 = vmul.f32 %v3153_v13, %v1750_v22  ;;  %v2875_v10 = vld [vmem:[%s3546_s8 + $0x20] sm:$0xff]   ;;  %v2876_v13 = vld [vmem:[%s3546_s8 + $0x28] sm:$0xff]  }
 0x323   : > { %2683 = vmatprep.subr.bf16.mxu1 %v2896_v9 }
 0x324   : > { %v1753_v27 = vpack.c.bf16 %v1743_v19, %v1745_v24  ;;  %v1966_v28 = vpack.c.bf16 %v1752_v25, %v1749_v21 }
 0x326   : > { %2684 = vmatpush3.bf16.msra.mxu1 %v2872_v23 }
 0x327   : > { %2685 = vmatprep.subr.bf16.mxu1 %v2896_v9 }
 0x32a   : > { %2686 = vmatpush3.bf16.msra.mxu1 %v2873_v0 }
 0x32b   : > { %2687 = vmatprep.subr.bf16.mxu1 %v2896_v9 }
 0x32e   : > { %2688 = vmatpush3.bf16.msra.mxu1 %v2874_v29 }
 0x32f   : > { %2689 = vmatprep.subr.bf16.mxu1 %v2896_v9 }
 0x332   : > { %2690 = vmatpush3.bf16.msra.mxu1 %v2875_v10 }
 0x333   : > { %2691 = vmatprep.subr.bf16.mxu1 %v2896_v9 }
 0x336   : > { %2692 = vmatpush3.bf16.msra.mxu1 %v2876_v13 }
 0x337   : > { %2693 = vmatprep.subr.bf16.mxu1 %v2896_v9 }
 0x33a   : > { %2694 = vmatpush3.bf16.msra.mxu1 %v2877_v30 }
 0x33b   : > { %2695 = vmatprep.subr.bf16.mxu1 %v2896_v9 }
 0x33e   : > { %2696 = vmatpush3.bf16.msra.mxu1 %v2878_v32 }
 0x33f   : > { %2701 = vmatprep.subr.bf16.mxu1 %v2896_v9 }
 0x341   : > { %2698 = vmatmul.mubr.bf16.vlgmr.msra.gmra.mrb[12].mxu1 %v1753_v27 }
 0x342   : > { %2702 = vmatpush3.bf16.msra.mxu1 %v2879_v33  ;;  %2717 = vmatprep.mubr.msk.bf16.mxu1 %vm2897_vm6, %v2896_v9 }
 0x343   : > { %2703 = vmatprep.subr.bf16.mxu1 %v2896_v9 }
 0x346   : > { %2704 = vmatpush3.bf16.msra.mxu1 %v2880_v26 }
 0x347   : > { %2705 = vmatprep.subr.bf16.mxu1 %v2896_v9 }
 0x34a   : > { %2706 = vmatpush3.bf16.msra.mxu1 %v2881_v31 }
 0x34b   : > { %2707 = vmatprep.subr.bf16.mxu1 %v2896_v9 }
 0x34e   : > { %2708 = vmatpush3.bf16.msra.mxu1 %v2882_v34 }
 0x34f   : > { %2709 = vmatprep.subr.bf16.mxu1 %v2896_v9 }
 0x352   : > { %2710 = vmatpush3.bf16.msra.mxu1 %v2883_v35 }
 0x353   : > { %2711 = vmatprep.subr.bf16.mxu1 %v2896_v9 }
 0x356   : > { %2712 = vmatpush3.bf16.msra.mxu1 %v2884_v36 }
 0x357   : > { %2713 = vmatprep.subr.bf16.mxu1 %v2896_v9 }
 0x35a   : > { %2714 = vmatpush3.bf16.msra.mxu1 %v2885_v37 }
 0x35b   : > { %2715 = vmatprep.subr.bf16.mxu1 %v2896_v9 }
 0x35e   : > { %2716 = vmatpush3.bf16.msra.mxu1 %v2886_v38 }
 0x361   : > { %2718 = vmatmul.mubr.bf16.vlgmr.msra.gmra.mrb[12].mxu1 %v1966_v28 }
 0x434   : > { %v2066_v40 = vpop.f32.mrb[12].mxu1 }
 0x435   : > { %v2082_v42 = vmul.f32 %v2487_v39, %v2066_v40  ;;  %v2719_v43 = vpop.f32.mrb[13].mxu1 }
 0x436   : > { %v2069_v44 = vpop.f32.mrb[14].mxu1 }
 0x437   : > { %v2091_v1 = vadd.f32 %v2488_v41, %v2082_v42  ;;  %v2083_v2 = vmul.f32 %v2487_v39, %v2069_v44  ;;  %v2720_v45 = vpop.f32.mrb[15].mxu1 }
 0x439   : > { %v2092_v46 = vadd.f32 %v2488_v41, %v2083_v2  ;;  %v2093_v9 = vmax.f32 %v2091_v1, 0.0 }
 0x43b   : > { %v2094_v47 = vmax.f32 %v2092_v46, 0.0 }
 0x43d   : > { %v2500_v48 = vpack.c.bf16 %v2094_v47, %v2093_v9 }
 0x43f   : > { %2501 = vst [vmem:[%s403_s24] sm:$0xff] %v2500_v48  }
 0x440 PF: > { %s21_s17 = sadd.s32 1, %s2893_s17  }
 0x441   : > { %p18_p4 = scmp.ge.s32.totalorder %s21_s17, 4  }
 0x443   :  { %20 = sbr.rel (!%p18_p4) target bundleno = 1 (0x1), region = 103 }

// kernel: _lambda_.4
= control target key start
LH: loop header
LB: loop body
LE: loop exit
PB: predicated region body
PF: predicated region fallthrough
CT: control target
= control target key end

     0   :  { %s2851_s17 = smov 0   ;;  %s3367_s0 = inlined_call_operand.vmem [shape: bf16[2,4,128], index: 0, kind: input, shape index: {}]   ;;  %s3368_s1 = inlined_call_operand.vmem [shape: bf16[2,8,256], index: 1, kind: input, shape index: {}]   ;;  %s3369_s2 = inlined_call_operand.vmem [shape: bf16[8,4], index: 2, kind: input, shape index: {}]   ;;  %s3370_s3 = inlined_call_operand.vmem [shape: bf16[128,256], index: 3, kind: input, shape index: {}]   ;;  %s3371_s4 = inlined_call_operand.vmem [shape: bf16[3,256,128], index: 4, kind: input, shape index: {}]   ;;  %s3372_s5 = inlined_call_operand.vmem [shape: bf16[3,256,128], index: 5, kind: input, shape index: {}]   ;;  %s3373_s6 = inlined_call_operand.vmem [shape: f32[1,128], index: 6, kind: input, shape index: {}]   ;;  %s3374_s7 = inlined_call_operand.vmem [shape: f32[1,128], index: 7, kind: input, shape index: {}]   ;;  %s3375_s8 = inlined_call_operand.vmem [shape: bf16[3,128,128], index: 8, kind: input, shape index: {}]   ;;  %s3376_s9 = inlined_call_operand.vmem [shape: f32[1,128], index: 9, kind: input, shape index: {}]   ;;  %s3377_s10 = inlined_call_operand.vmem [shape: f32[1,128], index: 10, kind: input, shape index: {}]   ;;  %s3378_s11 = inlined_call_operand.vmem [shape: bf16[2,8,128], index: 11, kind: output, shape index: {}]  }
   0x1 LB: > { %s2078_s18 = sadd.s32 4294967295, %s2786_s17   ;;  %p2082_p0 = scmp.ge.s32.totalorder %s2786_s17, 1  ;;  %s2786_s17 = sphi %s2851_s17, %s21_s17  }
   0x2   : > { %p346_p1 = scmp.lt.s32.totalorder %s2786_s17, 3 }
   0x4   : > { %p347_p2 = pnand %p2082_p0, %p346_p1 }
   0x5   : > { %v2634_v0 = vld [vmem:[%s3370_s3 + $0x4] ss:$8 sps:$4 sm:$0xff] (!%p347_p2)   ;;  %v2636_v1 = vld [vmem:[%s3370_s3] ss:$8 sps:$4 sm:$0xff] (!%p347_p2)   ;;  %v2788_v2 = vmov (!%p347_p2), 0   ;;  %p389_p3 = scmp.lt.s32.totalorder (!%p347_p2), %s2078_s18, 1  ;;  %v403_v60 = vlaneseq (!%p347_p2) }
   0x6   : > { %350 = sbr.rel (%p347_p2) target bundleno = 1082 (0x43a), region = 64  ;;  %540 = vmatprep.mubr.bf16.mxu0 (!%p347_p2), %v2788_v2  ;;  %595 = vmatprep.mubr.bf16.mxu1 (!%p347_p2), %v2788_v2  ;;  %v2637_v3 = vld [vmem:[%s3370_s3 + $0x14] ss:$8 sps:$4 sm:$0xff] (!%p347_p2)   ;;  %v2639_v4 = vld [vmem:[%s3370_s3 + $0x10] ss:$8 sps:$4 sm:$0xff] (!%p347_p2)   ;;  %v2658_v18 = vld [vmem:[%s3371_s4 + $0xc0] sm:$0xff] (!%p347_p2)  }
   0x7   : > { %508 = vmatprep.subr.bf16.mxu0 (!%p347_p2), %v2634_v0  ;;  %v2640_v5 = vld [vmem:[%s3370_s3 + $0x24] ss:$8 sps:$4 sm:$0xff] (!%p347_p2)   ;;  %v2642_v6 = vld [vmem:[%s3370_s3 + $0x20] ss:$8 sps:$4 sm:$0xff] (!%p347_p2)   ;;  %v2643_v7 = vld [vmem:[%s3370_s3 + $0x34] ss:$8 sps:$4 sm:$0xff] (!%p347_p2)  }
   0x8   : > { %509 = vmatpush1.bf16.msra.mxu0 (!%p347_p2), %v2636_v1  ;;  %v2645_v8 = vld [vmem:[%s3370_s3 + $0x30] ss:$8 sps:$4 sm:$0xff] (!%p347_p2)   ;;  %v2646_v9 = vld [vmem:[%s3370_s3 + $0x44] ss:$8 sps:$4 sm:$0xff] (!%p347_p2)   ;;  %v2648_v10 = vld [vmem:[%s3370_s3 + $0x40] ss:$8 sps:$4 sm:$0xff] (!%p347_p2)  }
   0x9   : > { %510 = vmatprep.subr.bf16.mxu0 (!%p347_p2), %v2637_v3  ;;  %v2649_v11 = vld [vmem:[%s3370_s3 + $0x54] ss:$8 sps:$4 sm:$0xff] (!%p347_p2)   ;;  %v2651_v12 = vld [vmem:[%s3370_s3 + $0x50] ss:$8 sps:$4 sm:$0xff] (!%p347_p2)   ;;  %v2652_v13 = vld [vmem:[%s3370_s3 + $0x64] ss:$8 sps:$4 sm:$0xff] (!%p347_p2)  }
   0xa   : > { %v2654_v14 = vld [vmem:[%s3370_s3 + $0x60] ss:$8 sps:$4 sm:$0xff] (!%p347_p2)   ;;  %v2655_v15 = vld [vmem:[%s3370_s3 + $0x74] ss:$8 sps:$4 sm:$0xff] (!%p347_p2)   ;;  %v2657_v16 = vld [vmem:[%s3370_s3 + $0x70] ss:$8 sps:$4 sm:$0xff] (!%p347_p2)  }
   0xb   : > { %v2659_v19 = vld [vmem:[%s3371_s4 + $0x80] sm:$0xff] (!%p347_p2)   ;;  %v2660_v20 = vld [vmem:[%s3371_s4 + $0xc8] sm:$0xff] (!%p347_p2)   ;;  %v2664_v22 = vld [vmem:[%s3371_s4 + $0xd0] sm:$0xff] (!%p347_p2)   ;;  %vm556_vm0 = vcmask (!%p347_p2), 1041408   ;;  %vm552_vm1 = vcmask (!%p347_p2), 31744   ;;  %v404_v61 = vshrl.u32 (!%p347_p2), %v403_v60, 7 }
   0xc   : > { %511 = vmatpush1.bf16.msra.mxu0 (!%p347_p2), %v2639_v4  ;;  %v2661_v21 = vld [vmem:[%s3371_s4 + $0x88] sm:$0xff] (!%p347_p2)   ;;  %v2665_v23 = vld [vmem:[%s3371_s4 + $0x90] sm:$0xff] (!%p347_p2)   ;;  %v2668_v24 = vld [vmem:[%s3371_s4 + $0xd8] sm:$0xff] (!%p347_p2)   ;;  %v2789_v0 = vmov (!%p347_p2), 0.0   ;;  %vm2790_vm4 = vmmov (!%p347_p2), 0  }
   0xd   : > { %s3380_s18 = smov (!%p389_p3, %s2078_s18), 1  ;;  %512 = vmatprep.subr.bf16.mxu0 %v2640_v5  ;;  %v2669_v25 = vld [vmem:[%s3371_s4 + $0x98] sm:$0xff]   ;;  %v2672_v26 = vld [vmem:[%s3371_s4 + $0xe0] sm:$0xff]   ;;  %v2676_v28 = vld [vmem:[%s3371_s4 + $0xe8] sm:$0xff]   ;;  %vm408_vm2 = vcmp.lt.s32.totalorder %v404_v61, 7  ;;  %vm405_vm3 = vcmp.gt.s32.totalorder %v404_v61, 0 }
   0xe   : > { %s2083_s20 = sshll.u32 %s3380_s18, 1  ;;  %v2673_v27 = vld [vmem:[%s3371_s4 + $0xa0] sm:$0xff]   ;;  %v2677_v29 = vld [vmem:[%s3371_s4 + $0xa8] sm:$0xff]   ;;  %v2680_v30 = vld [vmem:[%s3371_s4 + $0xf0] sm:$0xff]   ;;  %s2395_s24 = sshll.u32 %s3380_s18, 3  ;;  %v3026_v1 = vsel %vm408_vm2, 1.0, %v2789_v0 }
   0xf   : > { %s392_s21 = scalar_lea.vmem %s3367_s0, %s2083_s20  ;;  %v2681_v31 = vld [vmem:[%s3371_s4 + $0xb0] sm:$0xff]   ;;  %v2662_v37 = vld [vmem:[%s3371_s4 + $0x140] sm:$0xff]   ;;  %v2666_v42 = vld [vmem:[%s3371_s4 + $0x148] sm:$0xff]   ;;  %s397_s27 = scalar_lea.vmem %s3368_s1, %s2395_s24  ;;  %v3033_v4 = vsel %vm405_vm3, 1.0, %v2789_v0 }
  0x10   : > { %513 = vmatpush1.bf16.msra.mxu0 %v2642_v6  ;;  %v411_v17 = vld [vmem:[%s392_s21] sm:$0x3]  ;;  %v2667_v43 = vld [vmem:[%s3371_s4 + $0x108] sm:$0xff]   ;;  %v2670_v44 = vld [vmem:[%s3371_s4 + $0x150] sm:$0xff]   ;;  %s2086_s21 = sshll.u32 %s3380_s18, 2 }
  0x11   : > { %514 = vmatprep.subr.bf16.mxu0 %v2643_v7  ;;  %v549_v40 = vld [vmem:[%s3369_s2] sm:$0xf]  ;;  %v2671_v45 = vld [vmem:[%s3371_s4 + $0x110] sm:$0xff]   ;;  %v2674_v46 = vld [vmem:[%s3371_s4 + $0x158] sm:$0xff]   ;;  %s401_s24 = scalar_lea.vmem %s3378_s11, %s2086_s21 }
  0x12   : > { %v2663_v41 = vld [vmem:[%s3371_s4 + $0x100] sm:$0xff]   ;;  %v2675_v47 = vld [vmem:[%s3371_s4 + $0x118] sm:$0xff]   ;;  %v2682_v50 = vld [vmem:[%s3371_s4 + $0x168] sm:$0xff]  }
  0x13   : > { %v2678_v48 = vld [vmem:[%s3371_s4 + $0x160] sm:$0xff]   ;;  %v2683_v51 = vld [vmem:[%s3371_s4 + $0x128] sm:$0xff]   ;;  %v2684_v52 = vld [vmem:[%s3371_s4 + $0xf8] sm:$0xff]  }
  0x14   : > { %515 = vmatpush1.bf16.msra.mxu0 %v2645_v8  ;;  %v2679_v49 = vld [vmem:[%s3371_s4 + $0x120] sm:$0xff]   ;;  %v2685_v53 = vld [vmem:[%s3371_s4 + $0xb8] sm:$0xff]   ;;  %v2686_v54 = vld [vmem:[%s3371_s4 + $0x170] sm:$0xff]  }
  0x15   : > { %516 = vmatprep.subr.bf16.mxu0 %v2646_v9  ;;  %v2687_v55 = vld [vmem:[%s3371_s4 + $0x130] sm:$0xff]   ;;  %v2688_v56 = vld [vmem:[%s3371_s4 + $0x40] sm:$0xff]   ;;  %v2690_v57 = vld [vmem:[%s3371_s4 + $0x178] sm:$0xff]  }
  0x16   : > { %v2691_v58 = vld [vmem:[%s3371_s4 + $0x138] sm:$0xff]   ;;  %v2707_v59 = vld [vmem:[%s3372_s5 + $0x40] sm:$0xff]  }
  0x17   : > { %v3022_v62 = vld [vmem:[%s397_s27] sm:$0xff] }
  0x18   : > { %517 = vmatpush1.bf16.msra.mxu0 %v2648_v10  ;;  %v1127_v63 = vunpack.c.h.bf16 %v3022_v62  ;;  %v2252_v60 = vcombine.high %v3022_v62, %v3022_v62 }
  0x19   : > { %518 = vmatprep.subr.bf16.mxu0 %v2649_v11  ;;  %v2689_v11 = vld [vmem:[%s3371_s4] sm:$0xff]  }
  0x1a   : > { %v1129_v3 = vrot.slane %v1127_v63, 7 }
  0x1c   : > { %519 = vmatpush1.bf16.msra.mxu0 %v2651_v12 }
  0x1d   : > { %520 = vmatprep.subr.bf16.mxu0 %v2652_v13 }
  0x20   : > { %521 = vmatpush1.bf16.msra.mxu0 %v2654_v14 }
  0x21   : > { %522 = vmatprep.subr.bf16.mxu0 %v2655_v15  ;;  %v2692_v15 = vld [vmem:[%s3371_s4 + $0x48] sm:$0xff]  }
  0x24   : > { %523 = vmatpush1.bf16.msra.mxu0 %v2657_v16 }
  0x25   : > { %2396 = vmatprep.subr.bf16.mxu0 %v2658_v18  ;;  %v1131_v18 = vmul.f32 %v3033_v4, %v1129_v3  ;;  %v2714_v3 = vld [vmem:[%s3372_s5 + $0xd0] sm:$0xff]  }
  0x27   : > { %541 = vmatmul.mubr.bf16.vlgmr.msra.gmra.mrb[0].mxu0 %v411_v17 }
  0x28   : > { %2397 = vmatpush3.bf16.msra.mxu0 %v2659_v19 }
  0x29   : > { %2398 = vmatprep.subr.bf16.mxu0 %v2660_v20 }
  0x2c   : > { %2399 = vmatpush3.bf16.msra.mxu0 %v2661_v21  ;;  %v2693_v21 = vld [vmem:[%s3371_s4 + $0x8] sm:$0xff]  }
  0x2d   : > { %2400 = vmatprep.subr.bf16.mxu0 %v2664_v22  ;;  %v2709_v22 = vld [vmem:[%s3372_s5] sm:$0xff]  }
  0x30   : > { %2401 = vmatpush3.bf16.msra.mxu0 %v2665_v23 }
  0x31   : > { %2402 = vmatprep.subr.bf16.mxu0 %v2668_v24  ;;  %v2694_v24 = vld [vmem:[%s3371_s4 + $0x50] sm:$0xff]  }
  0x34   : > { %2403 = vmatpush3.bf16.msra.mxu0 %v2669_v25  ;;  %v2711_v25 = vld [vmem:[%s3372_s5 + $0x48] sm:$0xff]  }
  0x35   : > { %2404 = vmatprep.subr.bf16.mxu0 %v2672_v26  ;;  %v1137_v26 = vpack.c.bf16 %v1131_v18, %v1131_v18  ;;  %v2740_v18 = vld [vmem:[%s3372_s5 + $0x140] sm:$0xff]  }
  0x38   : > { %2405 = vmatpush3.bf16.msra.mxu0 %v2673_v27  ;;  %v2695_v27 = vld [vmem:[%s3371_s4 + $0x10] sm:$0xff]  }
  0x39   : > { %2406 = vmatprep.subr.bf16.mxu0 %v2676_v28  ;;  %v2713_v28 = vld [vmem:[%s3372_s5 + $0x8] sm:$0xff]  }
  0x3c   : > { %2407 = vmatpush3.bf16.msra.mxu0 %v2677_v29  ;;  %v2696_v29 = vld [vmem:[%s3371_s4 + $0x58] sm:$0xff]  }
  0x3d   : > { %2408 = vmatprep.subr.bf16.mxu0 %v2680_v30  ;;  %v2715_v30 = vld [vmem:[%s3372_s5 + $0x50] sm:$0xff]  }
  0x40   : > { %2409 = vmatpush3.bf16.msra.mxu0 %v2681_v31  ;;  %v2697_v31 = vld [vmem:[%s3371_s4 + $0x18] sm:$0xff]  }
  0x41   : > { %2410 = vmatprep.subr.bf16.mxu0 %v2684_v52 }
  0x44   : > { %2411 = vmatpush3.bf16.msra.mxu0 %v2685_v53  ;;  %v2706_v53 = vld [vmem:[%s3372_s5 + $0xc0] sm:$0xff]  }
  0x45   : > { %2418 = vmatprep.subr.bf16.mxu0 %v2688_v56  ;;  %v2708_v56 = vld [vmem:[%s3372_s5 + $0x80] sm:$0xff]  }
  0xfa   : > { %v542_v32 = vpop.f32.mrb[0].mxu0 }
  0xfb   : > { %v550_v33 = vpack.c.bf16 %v542_v32, %v542_v32  ;;  %v544_v34 = vpop.f32.mrb[1].mxu0  ;;  %v2717_v32 = vld [vmem:[%s3372_s5 + $0x10] sm:$0xff]  }
  0xfc   : > { %v551_v35 = vpack.c.bf16 %v544_v34, %v544_v34  ;;  %v546_v36 = vpop.f32.mrb[2].mxu0  ;;  %v2719_v34 = vld [vmem:[%s3372_s5 + $0x58] sm:$0xff]  }
  0xfd   : > { %v547_v38 = vpop.f32.mrb[3].mxu0  ;;  %v558_v39 = vsel %vm556_vm0, %v550_v33, 0  ;;  %v2698_v33 = vld [vmem:[%s3371_s4 + $0x60] sm:$0xff]   ;;  %v2721_v36 = vld [vmem:[%s3372_s5 + $0x18] sm:$0xff]  }
  0xfe   : > { %2105 = vmatprep.subr.msk.bf16.mxu1 %vm556_vm0, %v551_v35  ;;  %v2699_v35 = vld [vmem:[%s3371_s4 + $0x20] sm:$0xff]  }
  0xff   : > { %564 = vmatpush1.bf16.msra.mxu1 %v558_v39  ;;  %v2723_v38 = vld [vmem:[%s3372_s5 + $0x60] sm:$0xff]   ;;  %v2701_v39 = vld [vmem:[%s3371_s4 + $0x28] sm:$0xff]  }
 0x100   : > { %2440 = vmatprep.subr.bf16.mxu1 %v2662_v37  ;;  %v2700_v37 = vld [vmem:[%s3371_s4 + $0x68] sm:$0xff]  }
 0x102   : > { %2106 = vmatmul.mubr.msk.bf16.vlgmr.msra.gmra.mrb[0].mxu1 %vm552_vm1, %v549_v40  ;;  %v2725_v40 = vld [vmem:[%s3372_s5 + $0x20] sm:$0xff]  }
 0x103   : > { %2441 = vmatpush3.bf16.msra.mxu1 %v2663_v41  ;;  %v2702_v41 = vld [vmem:[%s3371_s4 + $0x70] sm:$0xff]  }
 0x104   : > { %2442 = vmatprep.subr.bf16.mxu1 %v2666_v42  ;;  %v2727_v42 = vld [vmem:[%s3372_s5 + $0x68] sm:$0xff]  }
 0x107   : > { %2443 = vmatpush3.bf16.msra.mxu1 %v2667_v43  ;;  %v1126_v43 = vunpack.c.l.bf16 %v3022_v62 }
 0x108   : > { %2444 = vmatprep.subr.bf16.mxu1 %v2670_v44  ;;  %v2703_v44 = vld [vmem:[%s3371_s4 + $0x30] sm:$0xff]  }
 0x10b   : > { %2445 = vmatpush3.bf16.msra.mxu1 %v2671_v45  ;;  %v2729_v45 = vld [vmem:[%s3372_s5 + $0x28] sm:$0xff]  }
 0x10c   : > { %2446 = vmatprep.subr.bf16.mxu1 %v2674_v46 }
 0x10f   : > { %2447 = vmatpush3.bf16.msra.mxu1 %v2675_v47  ;;  %v2704_v47 = vld [vmem:[%s3371_s4 + $0x78] sm:$0xff]  }
 0x110   : > { %2448 = vmatprep.subr.bf16.mxu1 %v2678_v48  ;;  %v2731_v48 = vld [vmem:[%s3372_s5 + $0x70] sm:$0xff]  }
 0x113   : > { %2449 = vmatpush3.bf16.msra.mxu1 %v2679_v49  ;;  %v1128_v49 = vrot.slane %v1126_v43, 7 }
 0x114   : > { %2450 = vmatprep.subr.bf16.mxu1 %v2682_v50  ;;  %v2705_v50 = vld [vmem:[%s3371_s4 + $0x38] sm:$0xff]  }
 0x117   : > { %2451 = vmatpush3.bf16.msra.mxu1 %v2683_v51  ;;  %v2733_v51 = vld [vmem:[%s3372_s5 + $0x30] sm:$0xff]  }
 0x118   : > { %2452 = vmatprep.subr.bf16.mxu1 %v2686_v54  ;;  %v2735_v54 = vld [vmem:[%s3372_s5 + $0x78] sm:$0xff]  }
 0x11b   : > { %2453 = vmatpush3.bf16.msra.mxu1 %v2687_v55  ;;  %v1130_v55 = vmul.f32 %v3033_v4, %v1128_v49 }
 0x11c   : > { %2454 = vmatprep.subr.bf16.mxu1 %v2690_v57  ;;  %v2737_v57 = vld [vmem:[%s3372_s5 + $0x38] sm:$0xff]  }
 0x11d   : > { %v1136_v61 = vpack.c.bf16 %v1130_v55, %v1130_v55 }
 0x11f   : > { %2455 = vmatpush3.bf16.msra.mxu1 %v2691_v58 }
 0x120   : > { %2484 = vmatprep.subr.bf16.mxu1 %v2707_v59  ;;  %v2710_v59 = vld [vmem:[%s3372_s5 + $0xc8] sm:$0xff]  }
 0x1d5   : > { %v3028_v2 = vpop.f32.mrb[0].mxu1 }
 0x1d6   : > { %v608_v5 = vrot.slane %v3028_v2, 1  ;;  %v599_v6 = vpop.f32.mrb[1].mxu1  ;;  %v646_v13 = vpack.c.bf16 %v3028_v2, %v3028_v2  ;;  %v604_v46 = vrot.slane %v3028_v2, 7  ;;  %v2712_v2 = vld [vmem:[%s3372_s5 + $0x88] sm:$0xff]  }
 0x1d7   : > { %v605_v7 = vrot.slane %v599_v6, 7  ;;  %v609_v8 = vrot.slane %v599_v6, 1  ;;  %v647_v9 = vpack.c.bf16 %v599_v6, %v599_v6  ;;  %v601_v10 = vpop.f32.mrb[2].mxu1  ;;  %v2718_v6 = vld [vmem:[%s3372_s5 + $0xd8] sm:$0xff]  }
 0x1d8   : > { %v610_v12 = vmul.f32 %v3026_v1, %v608_v5  ;;  %v602_v14 = vpop.f32.mrb[3].mxu1  ;;  %v606_v52 = vmul.f32 %v3033_v4, %v604_v46  ;;  %v2716_v5 = vld [vmem:[%s3372_s5 + $0x90] sm:$0xff]   ;;  %v2726_v10 = vld [vmem:[%s3372_s5 + $0xe8] sm:$0xff]  }
 0x1d9   : > { %809 = vmatprep.mubr.bf16.mxu0 %v647_v9  ;;  %v607_v16 = vmul.f32 %v3033_v4, %v605_v7  ;;  %v611_v17 = vmul.f32 %v3026_v1, %v609_v8  ;;  %v2720_v7 = vld [vmem:[%s3372_s5 + $0x98] sm:$0xff]   ;;  %v2722_v8 = vld [vmem:[%s3372_s5 + $0xe0] sm:$0xff]   ;;  %v1133_v14 = vrot.slane %v1127_v63, 1  ;;  %v2251_v63 = vcombine.low %v3022_v62, %v3022_v62 }
 0x1da   : > { %810 = vmatmul.mubr.bf16.vlgmr.msra.gmra.mrb[4].mxu0 %v646_v13  ;;  %v953_v23 = vpack.c.bf16 %v610_v12, %v610_v12  ;;  %v612_v58 = vpack.c.bf16 %v606_v52, %v606_v52  ;;  %v2724_v9 = vld [vmem:[%s3372_s5 + $0xa0] sm:$0xff]   ;;  %v2730_v12 = vld [vmem:[%s3372_s5 + $0xf0] sm:$0xff]  }
 0x1db   : > { %2419 = vmatpush3.bf16.msra.mxu0 %v2689_v11  ;;  %v613_v19 = vpack.c.bf16 %v607_v16, %v607_v16  ;;  %v954_v20 = vpack.c.bf16 %v611_v17, %v611_v17  ;;  %v2728_v11 = vld [vmem:[%s3372_s5 + $0xa8] sm:$0xff]   ;;  %v2732_v13 = vld [vmem:[%s3372_s5 + $0xb0] sm:$0xff]   ;;  %v2736_v16 = vld [vmem:[%s3372_s5 + $0xb8] sm:$0xff]   ;;  %v1135_v17 = vmul.f32 %v3026_v1, %v1133_v14 }
 0x1dc   : > { %2420 = vmatprep.subr.bf16.mxu0 %v2692_v15  ;;  %v2734_v15 = vld [vmem:[%s3372_s5 + $0xf8] sm:$0xff]  }
 0x1dd   : > { %945 = vmatprep.mubr.bf16.mxu0 %v613_v19  ;;  %1116 = vmatprep.mubr.bf16.mxu1 %v954_v20  ;;  %v2741_v19 = vld [vmem:[%s3372_s5 + $0x100] sm:$0xff]   ;;  %v1483_v20 = vpack.c.bf16 %v1135_v17, %v1135_v17 }
 0x1de   : > { %1117 = vmatmul.mubr.bf16.vlgmr.msra.gmra.mrb[4].mxu1 %v953_v23  ;;  %v2744_v23 = vld [vmem:[%s3372_s5 + $0x150] sm:$0xff]  }
 0x1df   : > { %2421 = vmatpush3.bf16.msra.mxu0 %v2693_v21  ;;  %2485 = vmatpush3.bf16.msra.mxu1 %v2709_v22  ;;  %v2742_v21 = vld [vmem:[%s3372_s5 + $0x148] sm:$0xff]  }
 0x1e0   : > { %2422 = vmatprep.subr.bf16.mxu0 %v2694_v24  ;;  %2486 = vmatprep.subr.bf16.mxu1 %v2711_v25  ;;  %v2743_v22 = vld [vmem:[%s3372_s5 + $0x108] sm:$0xff]   ;;  %v2745_v24 = vld [vmem:[%s3372_s5 + $0x110] sm:$0xff]   ;;  %v2746_v25 = vld [vmem:[%s3372_s5 + $0x158] sm:$0xff]  }
 0x1e1   : > { %1474 = vmatprep.mubr.bf16.mxu1 %v1137_v26  ;;  %v2747_v26 = vld [vmem:[%s3372_s5 + $0x118] sm:$0xff]  }
 0x1e3   : > { %2423 = vmatpush3.bf16.msra.mxu0 %v2695_v27  ;;  %2487 = vmatpush3.bf16.msra.mxu1 %v2713_v28  ;;  %v2748_v27 = vld [vmem:[%s3372_s5 + $0x160] sm:$0xff]  }
 0x1e4   : > { %2424 = vmatprep.subr.bf16.mxu0 %v2696_v29  ;;  %2488 = vmatprep.subr.bf16.mxu1 %v2715_v30  ;;  %v2749_v28 = vld [vmem:[%s3372_s5 + $0x120] sm:$0xff]   ;;  %v2750_v29 = vld [vmem:[%s3372_s5 + $0x168] sm:$0xff]  }
 0x1e5   : > { %v2751_v30 = vld [vmem:[%s3372_s5 + $0x128] sm:$0xff]  }
 0x1e7   : > { %2425 = vmatpush3.bf16.msra.mxu0 %v2697_v31  ;;  %2489 = vmatpush3.bf16.msra.mxu1 %v2717_v32  ;;  %v2752_v31 = vld [vmem:[%s3372_s5 + $0x170] sm:$0xff]   ;;  %v1132_v32 = vrot.slane %v1126_v43, 1 }
 0x1e8   : > { %2426 = vmatprep.subr.bf16.mxu0 %v2698_v33  ;;  %2490 = vmatprep.subr.bf16.mxu1 %v2719_v34  ;;  %v2753_v33 = vld [vmem:[%s3372_s5 + $0x130] sm:$0xff]   ;;  %v2754_v34 = vld [vmem:[%s3372_s5 + $0x178] sm:$0xff]  }
 0x1e9   : > { %v2762_v43 = vld [vmem:[%s3375_s8 + $0x70] sm:$0xff]  }
 0x1eb   : > { %2427 = vmatpush3.bf16.msra.mxu0 %v2699_v35  ;;  %2491 = vmatpush3.bf16.msra.mxu1 %v2721_v36  ;;  %v1134_v35 = vmul.f32 %v3026_v1, %v1132_v32  ;;  %v2755_v36 = vld [vmem:[%s3372_s5 + $0x138] sm:$0xff]   ;;  %v2770_v32 = vld [vmem:[%s3375_s8 + $0x30] sm:$0xff]  }
 0x1ec   : > { %2428 = vmatprep.subr.bf16.mxu0 %v2700_v37  ;;  %2492 = vmatprep.subr.bf16.mxu1 %v2723_v38  ;;  %v2756_v37 = vld [vmem:[%s3375_s8 + $0x40] sm:$0xff]   ;;  %v2757_v38 = vld [vmem:[%s3375_s8 + $0x48] sm:$0xff]  }
 0x1ed   : > { %v1482_v62 = vpack.c.bf16 %v1134_v35, %v1134_v35 }
 0x1ef   : > { %2429 = vmatpush3.bf16.msra.mxu0 %v2701_v39  ;;  %2493 = vmatpush3.bf16.msra.mxu1 %v2725_v40  ;;  %v2758_v39 = vld [vmem:[%s3375_s8 + $0x50] sm:$0xff]   ;;  %v2759_v40 = vld [vmem:[%s3375_s8 + $0x58] sm:$0xff]  }
 0x1f0   : > { %2430 = vmatprep.subr.bf16.mxu0 %v2702_v41  ;;  %2494 = vmatprep.subr.bf16.mxu1 %v2727_v42  ;;  %v2760_v41 = vld [vmem:[%s3375_s8 + $0x60] sm:$0xff]   ;;  %v2761_v42 = vld [vmem:[%s3375_s8 + $0x68] sm:$0xff]  }
 0x1f3   : > { %2431 = vmatpush3.bf16.msra.mxu0 %v2703_v44  ;;  %2495 = vmatpush3.bf16.msra.mxu1 %v2729_v45  ;;  %v2763_v44 = vld [vmem:[%s3375_s8 + $0x78] sm:$0xff]  }
 0x1f4   : > { %2432 = vmatprep.subr.bf16.mxu0 %v2704_v47  ;;  %2496 = vmatprep.subr.bf16.mxu1 %v2731_v48 }
 0x1f7   : > { %2433 = vmatpush3.bf16.msra.mxu0 %v2705_v50  ;;  %2497 = vmatpush3.bf16.msra.mxu1 %v2733_v51 }
 0x1f8   : > { %2462 = vmatprep.subr.bf16.mxu0 %v2706_v53  ;;  %2498 = vmatprep.subr.bf16.mxu1 %v2735_v54 }
 0x1fa   : > { %946 = vmatmul.mubr.bf16.vlgmr.msra.gmra.mrb[8].mxu0 %v612_v58 }
 0x1fb   : > { %2463 = vmatpush3.bf16.msra.mxu0 %v2708_v56  ;;  %2499 = vmatpush3.bf16.msra.mxu1 %v2737_v57 }
 0x1fc   : > { %2464 = vmatprep.subr.bf16.mxu0 %v2710_v59  ;;  %1338 = vmatprep.mubr.bf16.mxu0 %v2252_v60 }
 0x1fd   : > { %2555 = vmatprep.subr.bf16.mxu1 %v2789_v0 }
 0x1fe   : > { %1475 = vmatmul.mubr.bf16.vlgmr.msra.gmra.mrb[8].mxu1 %v1136_v61 }
 0x1ff   : > { %2465 = vmatpush3.bf16.msra.mxu0 %v2712_v2  ;;  %2556 = vmatpush3.bf16.msra.mxu1 %v2756_v37  ;;  %v2773_v37 = vld [vmem:[%s3375_s8 + $0x88] sm:$0xff]  }
 0x200   : > { %2466 = vmatprep.subr.bf16.mxu0 %v2714_v3  ;;  %2557 = vmatprep.subr.bf16.mxu1 %v2789_v0 }
 0x201   : > { %2571 = vmatprep.mubr.msk.bf16.mxu1 %vm2790_vm4, %v2789_v0 }
 0x203   : > { %2467 = vmatpush3.bf16.msra.mxu0 %v2716_v5  ;;  %2558 = vmatpush3.bf16.msra.mxu1 %v2757_v38  ;;  %v2775_v38 = vld [vmem:[%s3375_s8 + $0x98] sm:$0xff]  }
 0x204   : > { %2468 = vmatprep.subr.bf16.mxu0 %v2718_v6  ;;  %2559 = vmatprep.subr.bf16.mxu1 %v2789_v0 }
 0x207   : > { %2469 = vmatpush3.bf16.msra.mxu0 %v2720_v7  ;;  %2560 = vmatpush3.bf16.msra.mxu1 %v2758_v39  ;;  %v2776_v39 = vld [vmem:[%s3375_s8 + $0xa0] sm:$0xff]  }
 0x208   : > { %2470 = vmatprep.subr.bf16.mxu0 %v2722_v8  ;;  %2561 = vmatprep.subr.bf16.mxu1 %v2789_v0 }
 0x20b   : > { %2471 = vmatpush3.bf16.msra.mxu0 %v2724_v9  ;;  %2562 = vmatpush3.bf16.msra.mxu1 %v2759_v40  ;;  %v2777_v40 = vld [vmem:[%s3375_s8 + $0xa8] sm:$0xff]  }
 0x20c   : > { %2472 = vmatprep.subr.bf16.mxu0 %v2726_v10  ;;  %2563 = vmatprep.subr.bf16.mxu1 %v2789_v0 }
 0x20f   : > { %2473 = vmatpush3.bf16.msra.mxu0 %v2728_v11  ;;  %2564 = vmatpush3.bf16.msra.mxu1 %v2760_v41  ;;  %v2778_v41 = vld [vmem:[%s3375_s8 + $0xb0] sm:$0xff]  }
 0x210   : > { %2474 = vmatprep.subr.bf16.mxu0 %v2730_v12  ;;  %2565 = vmatprep.subr.bf16.mxu1 %v2789_v0 }
 0x213   : > { %2475 = vmatpush3.bf16.msra.mxu0 %v2732_v13  ;;  %2566 = vmatpush3.bf16.msra.mxu1 %v2761_v42 }
 0x214   : > { %2476 = vmatprep.subr.bf16.mxu0 %v2734_v15  ;;  %2567 = vmatprep.subr.bf16.mxu1 %v2789_v0 }
 0x217   : > { %2477 = vmatpush3.bf16.msra.mxu0 %v2736_v16  ;;  %2568 = vmatpush3.bf16.msra.mxu1 %v2762_v43  ;;  %v2779_v43 = vld [vmem:[%s3375_s8 + $0xb8] sm:$0xff]  }
 0x218   : > { %2506 = vmatprep.subr.bf16.mxu0 %v2740_v18  ;;  %2569 = vmatprep.subr.bf16.mxu1 %v2789_v0 }
 0x21a   : > { %1339 = vmatmul.mubr.bf16.vlgmr.msra.gmra.mrb[12].mxu0 %v2251_v63 }
 0x21b   : > { %2507 = vmatpush3.bf16.msra.mxu0 %v2741_v19  ;;  %1645 = vmatprep.mubr.bf16.mxu0 %v1483_v20  ;;  %v2333_v19 = vld [vmem:[%s3373_s6] ss:$0 sm:$0xff] }
 0x21c   : > { %2508 = vmatprep.subr.bf16.mxu0 %v2742_v21  ;;  %2570 = vmatpush3.bf16.msra.mxu1 %v2763_v44  ;;  %v2334_v21 = vld [vmem:[%s3374_s7] ss:$0 sm:$0xff] }
 0x21d   : > { %2575 = vmatprep.subr.bf16.mxu1 %v2789_v0 }
 0x21f   : > { %2509 = vmatpush3.bf16.msra.mxu0 %v2743_v22 }
 0x220   : > { %2510 = vmatprep.subr.bf16.mxu0 %v2744_v23 }
 0x223   : > { %2511 = vmatpush3.bf16.msra.mxu0 %v2745_v24 }
 0x224   : > { %2512 = vmatprep.subr.bf16.mxu0 %v2746_v25  ;;  %v2764_v25 = vld [vmem:[%s3375_s8] sm:$0xff]  }
 0x227   : > { %2513 = vmatpush3.bf16.msra.mxu0 %v2747_v26 }
 0x228   : > { %2514 = vmatprep.subr.bf16.mxu0 %v2748_v27  ;;  %v2765_v27 = vld [vmem:[%s3375_s8 + $0x8] sm:$0xff]  }
 0x22b   : > { %2515 = vmatpush3.bf16.msra.mxu0 %v2749_v28  ;;  %v2766_v28 = vld [vmem:[%s3375_s8 + $0x10] sm:$0xff]  }
 0x22c   : > { %2516 = vmatprep.subr.bf16.mxu0 %v2750_v29  ;;  %v2767_v29 = vld [vmem:[%s3375_s8 + $0x18] sm:$0xff]  }
 0x22f   : > { %2517 = vmatpush3.bf16.msra.mxu0 %v2751_v30  ;;  %v2768_v30 = vld [vmem:[%s3375_s8 + $0x20] sm:$0xff]  }
 0x230   : > { %2518 = vmatprep.subr.bf16.mxu0 %v2752_v31  ;;  %v2769_v31 = vld [vmem:[%s3375_s8 + $0x28] sm:$0xff]  }
 0x233   : > { %2519 = vmatpush3.bf16.msra.mxu0 %v2753_v33 }
 0x234   : > { %2520 = vmatprep.subr.bf16.mxu0 %v2754_v34  ;;  %v2771_v34 = vld [vmem:[%s3375_s8 + $0x38] sm:$0xff]  }
 0x237   : > { %2521 = vmatpush3.bf16.msra.mxu0 %v2755_v36  ;;  %v2772_v36 = vld [vmem:[%s3375_s8 + $0x80] sm:$0xff]  }
 0x23a   : > { %1646 = vmatmul.mubr.bf16.vlgmr.msra.gmra.mrb[16].mxu0 %v1482_v62 }
 0x2ad   : > { %v2412_v45 = vpop.f32.mrb[4].mxu0 }
 0x2ae   : > { %v2413_v46 = vpop.f32.mrb[5].mxu0 }
 0x2af   : > { %v2414_v47 = vadd.f32 %v2413_v46, %v2412_v45  ;;  %v2415_v48 = vpop.f32.mrb[6].mxu0  ;;  %v2391_v46 = vld [vmem:[%s3376_s9] ss:$0 sm:$0xff] }
 0x2b0   : > { %v2416_v49 = vpop.f32.mrb[7].mxu0  ;;  %v2392_v48 = vld [vmem:[%s3377_s10] ss:$0 sm:$0xff] }
 0x2b1   : > { %v2456_v50 = vpop.f32.mrb[4].mxu1 }
 0x2b2   : > { %v2457_v51 = vpop.f32.mrb[5].mxu1 }
 0x2b3   : > { %v2458_v52 = vadd.f32 %v2457_v51, %v2456_v50  ;;  %v2459_v53 = vpop.f32.mrb[6].mxu1 }
 0x2b4   : > { %v2460_v54 = vpop.f32.mrb[7].mxu1 }
 0x2cd   : > { %v2434_v55 = vpop.f32.mrb[8].mxu0 }
 0x2ce   : > { %v2435_v56 = vpop.f32.mrb[9].mxu0 }
 0x2cf   : > { %v2436_v57 = vadd.f32 %v2435_v56, %v2434_v55  ;;  %v2437_v58 = vpop.f32.mrb[10].mxu0 }
 0x2d0   : > { %v2438_v59 = vpop.f32.mrb[11].mxu0 }
 0x2d1   : > { %v948_v60 = vadd.f32 %v2436_v57, %v2414_v47  ;;  %v2500_v61 = vpop.f32.mrb[8].mxu1 }
 0x2d2   : > { %v2501_v2 = vpop.f32.mrb[9].mxu1 }
 0x2d3   : > { %v1124_v3 = vadd.f32 %v2458_v52, %v948_v60  ;;  %v2502_v5 = vadd.f32 %v2501_v2, %v2500_v61  ;;  %v2503_v6 = vpop.f32.mrb[10].mxu1 }
 0x2d4   : > { %v2504_v7 = vpop.f32.mrb[11].mxu1 }
 0x2ed   : > { %v2478_v8 = vpop.f32.mrb[12].mxu0 }
 0x2ee   : > { %v2479_v9 = vpop.f32.mrb[13].mxu0 }
 0x2ef   : > { %v2480_v10 = vadd.f32 %v2479_v9, %v2478_v8  ;;  %v2481_v11 = vpop.f32.mrb[14].mxu0 }
 0x2f0   : > { %v2482_v12 = vpop.f32.mrb[15].mxu0 }
 0x2f1   : > { %v1477_v13 = vadd.f32 %v2502_v5, %v2480_v10 }
 0x30d   : > { %v2522_v14 = vpop.f32.mrb[16].mxu0 }
 0x30e   : > { %v2523_v15 = vpop.f32.mrb[17].mxu0 }
 0x30f   : > { %v2524_v16 = vadd.f32 %v2523_v15, %v2522_v14  ;;  %v2525_v17 = vpop.f32.mrb[18].mxu0 }
 0x310   : > { %v2526_v18 = vpop.f32.mrb[19].mxu0 }
 0x311   : > { %v1653_v63 = vadd.f32 %v2524_v16, %v1477_v13 }
 0x313   : > { %v1654_v20 = vadd.f32 %v1653_v63, %v1124_v3 }
 0x315   : > { %v1662_v22 = vmul.f32 %v2333_v19, %v1654_v20 }
 0x317   : > { %v1670_v23 = vadd.f32 %v2334_v21, %v1662_v22 }
 0x319   : > { %v1671_v24 = vmax.f32 %v1670_v23, 0.0 }
 0x31b   : > { %v1693_v26 = vpack.c.bf16 %v1671_v24, %v1671_v24  ;;  %v1672_v33 = vrot.slane %v1671_v24, 7  ;;  %v1674_v42 = vrot.slane %v1671_v24, 1 }
 0x31d   : > { %2572 = vmatmul.mubr.bf16.vlgmr.msra.gmra.mrb[12].mxu1 %v1693_v26  ;;  %v1673_v35 = vmul.f32 %v3033_v4, %v1672_v33  ;;  %v2774_v4 = vld [vmem:[%s3375_s8 + $0x90] sm:$0xff]   ;;  %v1675_v44 = vmul.f32 %v3026_v1, %v1674_v42 }
 0x31e   : > { %2576 = vmatpush3.bf16.msra.mxu1 %v2764_v25  ;;  %2591 = vmatprep.mubr.msk.bf16.mxu1 %vm2790_vm4, %v2789_v0 }
 0x31f   : > { %2577 = vmatprep.subr.bf16.mxu1 %v2789_v0  ;;  %v1676_v62 = vpack.c.bf16 %v1673_v35, %v1673_v35  ;;  %v1887_v45 = vpack.c.bf16 %v1675_v44, %v1675_v44 }
 0x322   : > { %2578 = vmatpush3.bf16.msra.mxu1 %v2765_v27 }
 0x323   : > { %2579 = vmatprep.subr.bf16.mxu1 %v2789_v0 }
 0x326   : > { %2580 = vmatpush3.bf16.msra.mxu1 %v2766_v28 }
 0x327   : > { %2581 = vmatprep.subr.bf16.mxu1 %v2789_v0 }
 0x32a   : > { %2582 = vmatpush3.bf16.msra.mxu1 %v2767_v29 }
 0x32b   : > { %2583 = vmatprep.subr.bf16.mxu1 %v2789_v0 }
 0x32e   : > { %2584 = vmatpush3.bf16.msra.mxu1 %v2768_v30 }
 0x32f   : > { %2585 = vmatprep.subr.bf16.mxu1 %v2789_v0 }
 0x332   : > { %2586 = vmatpush3.bf16.msra.mxu1 %v2769_v31 }
 0x333   : > { %2587 = vmatprep.subr.bf16.mxu1 %v2789_v0 }
 0x336   : > { %2588 = vmatpush3.bf16.msra.mxu1 %v2770_v32 }
 0x337   : > { %2589 = vmatprep.subr.bf16.mxu1 %v2789_v0 }
 0x33a   : > { %2590 = vmatpush3.bf16.msra.mxu1 %v2771_v34 }
 0x33b   : > { %2595 = vmatprep.subr.bf16.mxu1 %v2789_v0 }
 0x33d   : > { %2592 = vmatmul.mubr.bf16.vlgmr.msra.gmra.mrb[12].mxu1 %v1676_v62 }
 0x33e   : > { %2596 = vmatpush3.bf16.msra.mxu1 %v2772_v36  ;;  %2611 = vmatprep.mubr.msk.bf16.mxu1 %vm2790_vm4, %v2789_v0 }
 0x33f   : > { %2597 = vmatprep.subr.bf16.mxu1 %v2789_v0 }
 0x342   : > { %2598 = vmatpush3.bf16.msra.mxu1 %v2773_v37 }
 0x343   : > { %2599 = vmatprep.subr.bf16.mxu1 %v2789_v0 }
 0x346   : > { %2600 = vmatpush3.bf16.msra.mxu1 %v2774_v4 }
 0x347   : > { %2601 = vmatprep.subr.bf16.mxu1 %v2789_v0 }
 0x34a   : > { %2602 = vmatpush3.bf16.msra.mxu1 %v2775_v38 }
 0x34b   : > { %2603 = vmatprep.subr.bf16.mxu1 %v2789_v0 }
 0x34e   : > { %2604 = vmatpush3.bf16.msra.mxu1 %v2776_v39 }
 0x34f   : > { %2605 = vmatprep.subr.bf16.mxu1 %v2789_v0 }
 0x352   : > { %2606 = vmatpush3.bf16.msra.mxu1 %v2777_v40 }
 0x353   : > { %2607 = vmatprep.subr.bf16.mxu1 %v2789_v0 }
 0x356   : > { %2608 = vmatpush3.bf16.msra.mxu1 %v2778_v41 }
 0x357   : > { %2609 = vmatprep.subr.bf16.mxu1 %v2789_v0 }
 0x35a   : > { %2610 = vmatpush3.bf16.msra.mxu1 %v2779_v43 }
 0x35d   : > { %2612 = vmatmul.mubr.bf16.vlgmr.msra.gmra.mrb[12].mxu1 %v1887_v45 }
 0x430   : > { %v1987_v47 = vpop.f32.mrb[12].mxu1 }
 0x431   : > { %v2001_v49 = vmul.f32 %v2391_v46, %v1987_v47  ;;  %v2613_v50 = vpop.f32.mrb[13].mxu1 }
 0x432   : > { %v1990_v51 = vpop.f32.mrb[14].mxu1 }
 0x433   : > { %v2009_v52 = vadd.f32 %v2392_v48, %v2001_v49  ;;  %v2614_v0 = vpop.f32.mrb[15].mxu1 }
 0x435   : > { %v2010_v53 = vmax.f32 %v2009_v52, 0.0 }
 0x437   : > { %v2011_v1 = vpack.c.bf16 %v2010_v53, %v2010_v53 }
 0x439   : > { %2012 = vst [vmem:[%s401_s24] sm:$0xf] %v2011_v1 }
 0x43a PF: > { %s21_s17 = sadd.s32 1, %s2786_s17  }
 0x43b   : > { %p18_p4 = scmp.ge.s32.totalorder %s21_s17, 4  }
 0x43d   :  { %20 = sbr.rel (!%p18_p4) target bundleno = 1 (0x1), region = 103 }

// kernel: _lambda_.7
= control target key start
LH: loop header
LB: loop body
LE: loop exit
PB: predicated region body
PF: predicated region fallthrough
CT: control target
= control target key end

     0   :  { %s2558_s30 = smov 0   ;;  %s3153_s0 = inlined_call_operand.vmem [shape: bf16[2,32,128], index: 0, kind: input, shape index: {}]   ;;  %s3154_s1 = inlined_call_operand.vmem [shape: bf16[64,32], index: 1, kind: input, shape index: {}]   ;;  %s3155_s2 = inlined_call_operand.vmem [shape: bf16[128,256], index: 2, kind: input, shape index: {}]   ;;  %s3156_s3 = inlined_call_operand.vmem [shape: bf16[3,256,64], index: 3, kind: input, shape index: {}]   ;;  %s3157_s4 = inlined_call_operand.vmem [shape: f32[1,64], index: 4, kind: input, shape index: {}]   ;;  %s3158_s5 = inlined_call_operand.vmem [shape: f32[1,64], index: 5, kind: input, shape index: {}]   ;;  %s3159_s6 = inlined_call_operand.vmem [shape: bf16[3,64,128], index: 6, kind: input, shape index: {}]   ;;  %s3160_s7 = inlined_call_operand.vmem [shape: f32[1,128], index: 7, kind: input, shape index: {}]   ;;  %s3161_s8 = inlined_call_operand.vmem [shape: f32[1,128], index: 8, kind: input, shape index: {}]   ;;  %s3162_s9 = inlined_call_operand.vmem [shape: bf16[2,64,128], index: 9, kind: output, shape index: {}]  }
   0x1 LB: > { %s1954_s10 = sadd.s32 4294967295, %s2504_s30   ;;  %p1958_p0 = scmp.ge.s32.totalorder %s2504_s30, 1  ;;  %s2504_s30 = sphi %s2558_s30, %s19_s30  }
   0x2   : > { %p287_p1 = scmp.lt.s32.totalorder %s2504_s30, 3 }
   0x4   : > { %p288_p2 = pnand %p1958_p0, %p287_p1 }
   0x5   : > { %v2408_v0 = vld [vmem:[%s3155_s2 + $0x4] ss:$8 sps:$4 sm:$0xff] (!%p288_p2)   ;;  %p323_p3 = scmp.lt.s32.totalorder (!%p288_p2), %s1954_s10, 1  ;;  %v2410_v1 = vld [vmem:[%s3155_s2] ss:$8 sps:$4 sm:$0xff] (!%p288_p2)   ;;  %v2506_v2 = vmov (!%p288_p2), 0  }
   0x6   : > { %291 = sbr.rel (%p288_p2) target bundleno = 1026 (0x402), region = 56  ;;  %535 = vmatprep.mubr.bf16.mxu0 (!%p288_p2), %v2506_v2  ;;  %633 = vmatprep.mubr.bf16.mxu1 (!%p288_p2), %v2506_v2  ;;  %v2411_v3 = vld [vmem:[%s3155_s2 + $0x14] ss:$8 sps:$4 sm:$0xff] (!%p288_p2)   ;;  %v2413_v4 = vld [vmem:[%s3155_s2 + $0x10] ss:$8 sps:$4 sm:$0xff] (!%p288_p2)   ;;  %v2438_v31 = vld [vmem:[%s3156_s3 + $0xc0] sm:$0xff] (!%p288_p2)  }
   0x7   : > { %503 = vmatprep.subr.bf16.mxu0 (!%p288_p2), %v2408_v0  ;;  %v2414_v5 = vld [vmem:[%s3155_s2 + $0x24] ss:$8 sps:$4 sm:$0xff] (!%p288_p2)   ;;  %v2416_v6 = vld [vmem:[%s3155_s2 + $0x20] ss:$8 sps:$4 sm:$0xff] (!%p288_p2)   ;;  %v2417_v7 = vld [vmem:[%s3155_s2 + $0x34] ss:$8 sps:$4 sm:$0xff] (!%p288_p2)  }
   0x8   : > { %504 = vmatpush1.bf16.msra.mxu0 (!%p288_p2), %v2410_v1  ;;  %v2419_v8 = vld [vmem:[%s3155_s2 + $0x30] ss:$8 sps:$4 sm:$0xff] (!%p288_p2)   ;;  %v2420_v9 = vld [vmem:[%s3155_s2 + $0x44] ss:$8 sps:$4 sm:$0xff] (!%p288_p2)   ;;  %v2422_v10 = vld [vmem:[%s3155_s2 + $0x40] ss:$8 sps:$4 sm:$0xff] (!%p288_p2)  }
   0x9   : > { %505 = vmatprep.subr.bf16.mxu0 (!%p288_p2), %v2411_v3  ;;  %v2423_v11 = vld [vmem:[%s3155_s2 + $0x54] ss:$8 sps:$4 sm:$0xff] (!%p288_p2)   ;;  %v2425_v12 = vld [vmem:[%s3155_s2 + $0x50] ss:$8 sps:$4 sm:$0xff] (!%p288_p2)   ;;  %v2426_v13 = vld [vmem:[%s3155_s2 + $0x64] ss:$8 sps:$4 sm:$0xff] (!%p288_p2)  }
   0xa   : > { %v2428_v14 = vld [vmem:[%s3155_s2 + $0x60] ss:$8 sps:$4 sm:$0xff] (!%p288_p2)   ;;  %v2429_v15 = vld [vmem:[%s3155_s2 + $0x74] ss:$8 sps:$4 sm:$0xff] (!%p288_p2)   ;;  %v2431_v16 = vld [vmem:[%s3155_s2 + $0x70] ss:$8 sps:$4 sm:$0xff] (!%p288_p2)  }
   0xb   : > { %v2434_v32 = vld [vmem:[%s3154_s1] sm:$0xff] (!%p288_p2)   ;;  %vm588_vm0 = vcmask (!%p288_p2), 261120   ;;  %v2440_v34 = vld [vmem:[%s3156_s3 + $0xc8] sm:$0xff] (!%p288_p2)   ;;  %v2442_v36 = vld [vmem:[%s3156_s3 + $0xd0] sm:$0xff] (!%p288_p2)   ;;  %vm1520_vm5 = vcmask (!%p288_p2), 523264  }
   0xc   : > { %506 = vmatpush1.bf16.msra.mxu0 (!%p288_p2), %v2413_v4  ;;  %v2439_v33 = vld [vmem:[%s3156_s3 + $0x80] sm:$0xff] (!%p288_p2)   ;;  %v2441_v35 = vld [vmem:[%s3156_s3 + $0x88] sm:$0xff] (!%p288_p2)   ;;  %v2443_v38 = vld [vmem:[%s3156_s3 + $0x90] sm:$0xff] (!%p288_p2)   ;;  %v334_v4 = vlaneseq (!%p288_p2) }
   0xd   : > { %s3164_s10 = smov (!%p323_p3, %s1954_s10), 1  ;;  %507 = vmatprep.subr.bf16.mxu0 %v2414_v5  ;;  %v2435_v37 = vld [vmem:[%s3154_s1 + $0x8] sm:$0xff]   ;;  %v2444_v39 = vld [vmem:[%s3156_s3 + $0xd8] sm:$0xff]   ;;  %v2446_v41 = vld [vmem:[%s3156_s3 + $0xe0] sm:$0xff]  }
   0xe   : > { %s2157_s21 = sshll.u32 %s3164_s10, 4  ;;  %v2445_v40 = vld [vmem:[%s3156_s3 + $0x98] sm:$0xff]   ;;  %v2436_v42 = vld [vmem:[%s3154_s1 + $0x10] sm:$0xff]   ;;  %v2447_v43 = vld [vmem:[%s3156_s3 + $0xa0] sm:$0xff]   ;;  %v2741_v5 = vshrl.u32 %v334_v4, 7  ;;  %s2158_s12 = sshll.u32 %s3164_s10, 5 }
   0xf   : > { %s327_s28 = scalar_lea.vmem %s3153_s0, %s2157_s21  ;;  %v2448_v44 = vld [vmem:[%s3156_s3 + $0xe8] sm:$0xff]   ;;  %v2450_v46 = vld [vmem:[%s3156_s3 + $0xf0] sm:$0xff]   ;;  %v2437_v47 = vld [vmem:[%s3154_s1 + $0x18] sm:$0xff]   ;;  %s332_s15 = scalar_lea.vmem %s3162_s9, %s2158_s12 }
  0x10   : > { %508 = vmatpush1.bf16.msra.mxu0 %v2416_v6  ;;  %v2432_v17 = vld [vmem:[%s327_s28] sm:$0xff]   ;;  %v2433_v18 = vld [vmem:[%s327_s28 + $0x8] sm:$0xff]   ;;  %v2451_v48 = vld [vmem:[%s3156_s3 + $0xb0] sm:$0xff]   ;;  %vm690_vm1 = vcmp.lt.s32.totalorder %v2741_v5, 1  ;;  %vm739_vm2 = vcmp.lt.s32.totalorder %v2741_v5, 7  ;;  %vm343_vm3 = vcmp.gt.s32.totalorder %v2741_v5, 0 }
  0x11   : > { %509 = vmatprep.subr.bf16.mxu0 %v2417_v7  ;;  %v2449_v45 = vld [vmem:[%s3156_s3 + $0xa8] sm:$0xff]   ;;  %v2452_v49 = vld [vmem:[%s3156_s3 + $0xf8] sm:$0xff]   ;;  %v2454_v51 = vld [vmem:[%s3156_s3 + $0x40] sm:$0xff]  }
  0x12   : > { %v2453_v50 = vld [vmem:[%s3156_s3 + $0xb8] sm:$0xff]   ;;  %v2455_v52 = vld [vmem:[%s3156_s3] sm:$0xff]   ;;  %v2458_v54 = vld [vmem:[%s3156_s3 + $0x48] sm:$0xff]  }
  0x13   : > { %v2456_v53 = vld [vmem:[%s3156_s3 + $0x140] sm:$0xff]   ;;  %v2459_v55 = vld [vmem:[%s3156_s3 + $0x8] sm:$0xff]   ;;  %v2462_v56 = vld [vmem:[%s3156_s3 + $0x50] sm:$0xff]  }
  0x14   : > { %510 = vmatpush1.bf16.msra.mxu0 %v2419_v8  ;;  %v2463_v57 = vld [vmem:[%s3156_s3 + $0x10] sm:$0xff]   ;;  %v2466_v58 = vld [vmem:[%s3156_s3 + $0x58] sm:$0xff]   ;;  %v2470_v60 = vld [vmem:[%s3156_s3 + $0x60] sm:$0xff]  }
  0x15   : > { %511 = vmatprep.subr.bf16.mxu0 %v2420_v9  ;;  %v2467_v59 = vld [vmem:[%s3156_s3 + $0x18] sm:$0xff]   ;;  %v2471_v61 = vld [vmem:[%s3156_s3 + $0x20] sm:$0xff]   ;;  %v2474_v62 = vld [vmem:[%s3156_s3 + $0x68] sm:$0xff]  }
  0x16   : > { %v2475_v63 = vld [vmem:[%s3156_s3 + $0x28] sm:$0xff]   ;;  %v2478_v0 = vld [vmem:[%s3156_s3 + $0x70] sm:$0xff]   ;;  %v2483_v3 = vld [vmem:[%s3156_s3 + $0x38] sm:$0xff]  }
  0x17   : > { %v2479_v1 = vld [vmem:[%s3156_s3 + $0x30] sm:$0xff]  }
  0x18   : > { %512 = vmatpush1.bf16.msra.mxu0 %v2422_v10 }
  0x19   : > { %513 = vmatprep.subr.bf16.mxu0 %v2423_v11 }
  0x1c   : > { %514 = vmatpush1.bf16.msra.mxu0 %v2425_v12 }
  0x1d   : > { %515 = vmatprep.subr.bf16.mxu0 %v2426_v13 }
  0x20   : > { %516 = vmatpush1.bf16.msra.mxu0 %v2428_v14 }
  0x21   : > { %517 = vmatprep.subr.bf16.mxu0 %v2429_v15 }
  0x24   : > { %518 = vmatpush1.bf16.msra.mxu0 %v2431_v16 }
  0x25   : > { %2230 = vmatprep.subr.bf16.mxu0 %v2454_v51 }
  0x27   : > { %536 = vmatmul.mubr.bf16.vlgmr.msra.gmra.mrb[0].mxu0 %v2432_v17 }
  0x28   : > { %545 = vmatprep.mubr.bf16.mxu0 %v2506_v2  ;;  %2231 = vmatpush3.bf16.msra.mxu0 %v2455_v52 }
  0x29   : > { %2232 = vmatprep.subr.bf16.mxu0 %v2458_v54 }
  0x2c   : > { %2233 = vmatpush3.bf16.msra.mxu0 %v2459_v55 }
  0x2d   : > { %2234 = vmatprep.subr.bf16.mxu0 %v2462_v56 }
  0x2f   : > { %546 = vmatmul.mubr.bf16.gmra.mrb[4].mxu0 %v2433_v18 }
  0x30   : > { %2235 = vmatpush3.bf16.msra.mxu0 %v2463_v57  ;;  %v2469_v57 = vld [vmem:[%s3156_s3 + $0x118] sm:$0xff]  }
  0x31   : > { %2236 = vmatprep.subr.bf16.mxu0 %v2466_v58 }
  0x34   : > { %2237 = vmatpush3.bf16.msra.mxu0 %v2467_v59 }
  0x35   : > { %2238 = vmatprep.subr.bf16.mxu0 %v2470_v60  ;;  %v2472_v60 = vld [vmem:[%s3156_s3 + $0x160] sm:$0xff]  }
  0x38   : > { %2239 = vmatpush3.bf16.msra.mxu0 %v2471_v61 }
  0x39   : > { %2240 = vmatprep.subr.bf16.mxu0 %v2474_v62 }
  0x3c   : > { %2241 = vmatpush3.bf16.msra.mxu0 %v2475_v63 }
  0x3d   : > { %2242 = vmatprep.subr.bf16.mxu0 %v2478_v0 }
  0x40   : > { %2243 = vmatpush3.bf16.msra.mxu0 %v2479_v1  ;;  %v342_v1 = vadd.s32 56, %v2741_v5  ;;  %v2496_v5 = vld [vmem:[%s3159_s6 + $0x50] sm:$0xff]  }
  0x42   : > { %vm374_vm4 = vcmp.lt.s32.totalorder %v342_v1, 63 }
  0xfa   : > { %v537_v19 = vpop.f32.mrb[0].mxu0 }
  0xfb   : > { %v539_v20 = vpop.f32.mrb[1].mxu0 }
  0xfc   : > { %v541_v21 = vpop.f32.mrb[2].mxu0 }
  0xfd   : > { %v564_v22 = vpack.c.bf16 %v541_v21, %v537_v19  ;;  %v543_v23 = vpop.f32.mrb[3].mxu0 }
  0xfe   : > { %v565_v24 = vpack.c.bf16 %v543_v23, %v539_v20  ;;  %v2457_v20 = vld [vmem:[%s3156_s3 + $0x100] sm:$0xff]   ;;  %v2460_v23 = vld [vmem:[%s3156_s3 + $0x148] sm:$0xff]  }
 0x100   : > { %601 = vmatprep.subr.bf16.mxu1 %v565_v24 }
 0x101   : > { %602 = vmatpush1.bf16.msra.mxu1 %v564_v22 }
 0x102   : > { %v547_v25 = vpop.f32.mrb[4].mxu0 }
 0x103   : > { %v549_v26 = vpop.f32.mrb[5].mxu0 }
 0x104   : > { %v551_v27 = vpop.f32.mrb[6].mxu0 }
 0x105   : > { %v566_v28 = vpack.c.bf16 %v551_v27, %v547_v25  ;;  %v553_v29 = vpop.f32.mrb[7].mxu0  ;;  %v2461_v27 = vld [vmem:[%s3156_s3 + $0x108] sm:$0xff]  }
 0x106   : > { %v567_v30 = vpack.c.bf16 %v553_v29, %v549_v26 }
 0x108   : > { %603 = vmatprep.subr.bf16.mxu1 %v567_v30 }
 0x109   : > { %604 = vmatpush1.bf16.msra.mxu1 %v566_v28 }
 0x10a   : > { %2190 = vmatprep.subr.bf16.mxu1 %v2438_v31  ;;  %v2464_v31 = vld [vmem:[%s3156_s3 + $0x150] sm:$0xff]  }
 0x10c   : > { %1987 = vmatmul.mubr.msk.bf16.vlgmr.msra.gmra.mrb[0].mxu1 %vm588_vm0, %v2434_v32 }
 0x10d   : > { %643 = vmatprep.mubr.bf16.mxu1 %v2506_v2  ;;  %2191 = vmatpush3.bf16.msra.mxu1 %v2439_v33 }
 0x10e   : > { %2192 = vmatprep.subr.bf16.mxu1 %v2440_v34 }
 0x111   : > { %2193 = vmatpush3.bf16.msra.mxu1 %v2441_v35 }
 0x112   : > { %2194 = vmatprep.subr.bf16.mxu1 %v2442_v36 }
 0x114   : > { %1988 = vmatmul.mubr.msk.bf16.gmra.mrb[4].mxu1 %vm588_vm0, %v2435_v37 }
 0x115   : > { %653 = vmatprep.mubr.bf16.mxu1 %v2506_v2  ;;  %2195 = vmatpush3.bf16.msra.mxu1 %v2443_v38 }
 0x116   : > { %2196 = vmatprep.subr.bf16.mxu1 %v2444_v39 }
 0x119   : > { %2197 = vmatpush3.bf16.msra.mxu1 %v2445_v40 }
 0x11a   : > { %2198 = vmatprep.subr.bf16.mxu1 %v2446_v41 }
 0x11c   : > { %1989 = vmatmul.mubr.msk.bf16.gmra.mrb[8].mxu1 %vm588_vm0, %v2436_v42 }
 0x11d   : > { %663 = vmatprep.mubr.bf16.mxu1 %v2506_v2  ;;  %2199 = vmatpush3.bf16.msra.mxu1 %v2447_v43  ;;  %v2482_v2 = vld [vmem:[%s3156_s3 + $0x78] sm:$0xff]  }
 0x11e   : > { %2200 = vmatprep.subr.bf16.mxu1 %v2448_v44  ;;  %2244 = vmatprep.subr.bf16.mxu0 %v2482_v2  ;;  %v2465_v44 = vld [vmem:[%s3156_s3 + $0x110] sm:$0xff]  }
 0x11f   : > { %2245 = vmatpush3.bf16.msra.mxu0 %v2483_v3 }
 0x121   : > { %2201 = vmatpush3.bf16.msra.mxu1 %v2449_v45  ;;  %v2468_v45 = vld [vmem:[%s3156_s3 + $0x158] sm:$0xff]  }
 0x122   : > { %2202 = vmatprep.subr.bf16.mxu1 %v2450_v46 }
 0x124   : > { %1990 = vmatmul.mubr.msk.bf16.gmra.mrb[12].mxu1 %vm588_vm0, %v2437_v47 }
 0x125   : > { %2203 = vmatpush3.bf16.msra.mxu1 %v2451_v48 }
 0x126   : > { %2204 = vmatprep.subr.bf16.mxu1 %v2452_v49 }
 0x129   : > { %2205 = vmatpush3.bf16.msra.mxu1 %v2453_v50 }
 0x12a   : > { %2270 = vmatprep.subr.bf16.mxu1 %v2456_v53 }
 0x1df   : > { %v2743_v6 = vpop.f32.mrb[0].mxu1 }
 0x1e0   : > { %v2745_v7 = vpop.f32.mrb[1].mxu1  ;;  %v674_v8 = vrot.slane %v2743_v6, 7  ;;  %v723_v9 = vrot.slane %v2743_v6, 1 }
 0x1e1   : > { %v639_v10 = vpop.f32.mrb[2].mxu1  ;;  %v675_v11 = vrot.slane %v2745_v7, 7  ;;  %v724_v16 = vrot.slane %v2745_v7, 1 }
 0x1e2   : > { %v676_v12 = vrot.slane %v639_v10, 7  ;;  %v725_v13 = vrot.slane %v639_v10, 1  ;;  %v812_v14 = vpack.c.bf16 %v639_v10, %v2743_v6  ;;  %v641_v15 = vpop.f32.mrb[3].mxu1  ;;  %v2486_v6 = vld [vmem:[%s3159_s6 + $0x20] sm:$0xff]  }
 0x1e3   : > { %v677_v17 = vrot.slane %v641_v15, 7  ;;  %v726_v18 = vrot.slane %v641_v15, 1  ;;  %v813_v19 = vpack.c.bf16 %v641_v15, %v2745_v7 }
 0x1e4   : > { %v2762_v21 = vsel %vm690_vm1, %v674_v8, %v676_v12  ;;  %v2768_v22 = vsel %vm739_vm2, %v723_v9, %v725_v13 }
 0x1e5   : > { %981 = vmatprep.mubr.bf16.mxu1 %v813_v19  ;;  %v2777_v24 = vsel %vm739_vm2, %v724_v16, %v726_v18  ;;  %v2783_v25 = vsel %vm690_vm1, %v675_v11, %v677_v17  ;;  %v2476_v19 = vld [vmem:[%s3156_s3 + $0x168] sm:$0xff]  }
 0x1e6   : > { %982 = vmatmul.mubr.bf16.vlgmr.msra.gmra.mrb[16].mxu1 %v812_v14 }
 0x1e7   : > { %2271 = vmatpush3.bf16.msra.mxu1 %v2457_v20  ;;  %v645_v26 = vpop.f32.mrb[4].mxu1 }
 0x1e8   : > { %v678_v28 = vrot.slane %v645_v26, 7  ;;  %v727_v29 = vrot.slane %v645_v26, 1  ;;  %v647_v30 = vpop.f32.mrb[5].mxu1  ;;  %2272 = vmatprep.subr.bf16.mxu1 %v2460_v23 }
 0x1e9   : > { %v679_v32 = vrot.slane %v647_v30, 7  ;;  %v728_v33 = vrot.slane %v647_v30, 1  ;;  %v649_v34 = vpop.f32.mrb[6].mxu1 }
 0x1ea   : > { %v2793_v35 = vsel %vm739_vm2, %v725_v13, %v727_v29  ;;  %v680_v36 = vrot.slane %v649_v34, 7  ;;  %v729_v37 = vrot.slane %v649_v34, 1  ;;  %v814_v38 = vpack.c.bf16 %v649_v34, %v645_v26  ;;  %v651_v39 = vpop.f32.mrb[7].mxu1 }
 0x1eb   : > { %v1175_v40 = vpack.c.bf16 %v2793_v35, %v2768_v22  ;;  %v681_v41 = vrot.slane %v651_v39, 7  ;;  %v730_v42 = vrot.slane %v651_v39, 1  ;;  %v815_v43 = vpack.c.bf16 %v651_v39, %v647_v30  ;;  %2273 = vmatpush3.bf16.msra.mxu1 %v2461_v27  ;;  %v2480_v39 = vld [vmem:[%s3156_s3 + $0x170] sm:$0xff]   ;;  %v2488_v35 = vld [vmem:[%s3159_s6] sm:$0xff]  }
 0x1ec   : > { %2274 = vmatprep.subr.bf16.mxu1 %v2464_v31  ;;  %v2805_v46 = vsel %vm739_vm2, %v726_v18, %v728_v33  ;;  %v2809_v47 = vsel %vm690_vm1, %v677_v17, %v679_v32  ;;  %v2813_v48 = vsel %vm690_vm1, %v678_v28, %v680_v36  ;;  %v2817_v49 = vsel %vm690_vm1, %v676_v12, %v678_v28  ;;  %v2473_v17 = vld [vmem:[%s3156_s3 + $0x120] sm:$0xff]   ;;  %v2489_v22 = vld [vmem:[%s3159_s6 + $0x30] sm:$0xff]  }
 0x1ed   : > { %989 = vmatprep.mubr.bf16.mxu1 %v815_v43  ;;  %v1176_v50 = vpack.c.bf16 %v2805_v46, %v2777_v24  ;;  %v2823_v51 = vsel %vm690_vm1, %v679_v32, %v681_v41  ;;  %v2827_v52 = vsel %vm739_vm2, %v728_v33, %v730_v42  ;;  %v774_v53 = vpack.c.bf16 %v2813_v48, %v2817_v49  ;;  %v2493_v48 = vld [vmem:[%s3159_s6 + $0x18] sm:$0xff]   ;;  %v3012_v49 = vld [vmem:[%s3159_s6 + $0x40] sm:$0xff]  }
 0x1ee   : > { %990 = vmatmul.mubr.bf16.gmra.mrb[20].mxu1 %v814_v38  ;;  %v775_v54 = vpack.c.bf16 %v2823_v51, %v2809_v47  ;;  %v2835_v55 = vsel %vm739_vm2, %v727_v29, %v729_v37  ;;  %2350 = vmatprep.subr.bf16.mxu0 %v2488_v35  ;;  %v2492_v47 = vld [vmem:[%s3159_s6 + $0x10] sm:$0xff]  }
 0x1ef   : > { %2275 = vmatpush3.bf16.msra.mxu1 %v2465_v44  ;;  %v655_v56 = vpop.f32.mrb[8].mxu1 }
 0x1f0   : > { %v731_v58 = vrot.slane %v655_v56, 1  ;;  %v657_v59 = vpop.f32.mrb[9].mxu1  ;;  %2276 = vmatprep.subr.bf16.mxu1 %v2468_v45  ;;  %v682_v61 = vrot.slane %v655_v56, 7 }
 0x1f1   : > { %v683_v62 = vrot.slane %v657_v59, 7  ;;  %v732_v63 = vrot.slane %v657_v59, 1  ;;  %v2844_v0 = vpop.f32.mrb[10].mxu1 }
 0x1f2   : > { %v684_v2 = vrot.slane %v2844_v0, 7  ;;  %v733_v3 = vrot.slane %v2844_v0, 1  ;;  %v816_v4 = vpack.c.bf16 %v2844_v0, %v655_v56  ;;  %v661_v10 = vpop.f32.mrb[11].mxu1  ;;  %v2852_v12 = vsel %vm739_vm2, %v729_v37, %v731_v58  ;;  %v2477_v37 = vld [vmem:[%s3156_s3 + $0x128] sm:$0xff]  }
 0x1f3   : > { %v685_v13 = vrot.slane %v661_v10, 7  ;;  %v734_v14 = vrot.slane %v661_v10, 1  ;;  %v817_v15 = vpack.c.bf16 %v661_v10, %v657_v59  ;;  %2277 = vmatpush3.bf16.msra.mxu1 %v2469_v57  ;;  %v2859_v18 = vsel %vm739_vm2, %v730_v42, %v732_v63  ;;  %v2481_v10 = vld [vmem:[%s3156_s3 + $0x130] sm:$0xff]  }
 0x1f4   : > { %2278 = vmatprep.subr.bf16.mxu1 %v2472_v60  ;;  %v1178_v20 = vpack.c.bf16 %v2859_v18, %v2827_v52  ;;  %v2868_v23 = vsel %vm690_vm1, %v681_v41, %v683_v62  ;;  %v1177_v26 = vpack.c.bf16 %v2852_v12, %v2835_v55  ;;  %v2876_v27 = vsel %vm690_vm1, %v682_v61, %v684_v2 }
 0x1f5   : > { %997 = vmatprep.mubr.bf16.mxu1 %v817_v15  ;;  %v2880_v28 = vsel %vm690_vm1, %v683_v62, %v685_v13  ;;  %v2884_v29 = vsel %vm739_vm2, %v732_v63, %v734_v14  ;;  %v2888_v30 = vsel %vm690_vm1, %v680_v36, %v682_v61  ;;  %v2892_v31 = vsel %vm739_vm2, %v731_v58, %v733_v3 }
 0x1f6   : > { %998 = vmatmul.mubr.bf16.gmra.mrb[24].mxu1 %v816_v4  ;;  %v777_v32 = vpack.c.bf16 %v2880_v28, %v2868_v23  ;;  %v776_v33 = vpack.c.bf16 %v2876_v27, %v2888_v30  ;;  %v2507_v41 = vmov 0.0  }
 0x1f7   : > { %2279 = vmatpush3.bf16.msra.mxu1 %v2473_v17  ;;  %v665_v34 = vpop.f32.mrb[12].mxu1  ;;  %v2906_v42 = vsel %vm343_vm3, 1.0, %v2507_v41  ;;  %v2908_v57 = vsel %vm374_vm4, 1.0, %v2507_v41  ;;  %v2485_v41 = vld [vmem:[%s3156_s3 + $0x138] sm:$0xff]  }
 0x1f8   : > { %v735_v36 = vrot.slane %v665_v34, 1  ;;  %v667_v38 = vpop.f32.mrb[13].mxu1  ;;  %2280 = vmatprep.subr.bf16.mxu1 %v2476_v19  ;;  %v686_v43 = vrot.slane %v665_v34, 7 }
 0x1f9   : > { %v687_v44 = vrot.slane %v667_v38, 7  ;;  %v736_v45 = vrot.slane %v667_v38, 1  ;;  %v669_v56 = vpop.f32.mrb[14].mxu1 }
 0x1fa   : > { %v688_v58 = vrot.slane %v669_v56, 7  ;;  %v737_v59 = vrot.slane %v669_v56, 1  ;;  %v818_v60 = vpack.c.bf16 %v669_v56, %v665_v34  ;;  %v671_v61 = vpop.f32.mrb[15].mxu1  ;;  %v742_v62 = vsel %vm739_vm2, %v733_v3, %v735_v36  ;;  %v2484_v3 = vld [vmem:[%s3156_s3 + $0x178] sm:$0xff]  }
 0x1fb   : > { %v689_v63 = vrot.slane %v671_v61, 7  ;;  %v738_v1 = vrot.slane %v671_v61, 1  ;;  %v819_v4 = vpack.c.bf16 %v671_v61, %v667_v38  ;;  %2281 = vmatpush3.bf16.msra.mxu1 %v2477_v37  ;;  %v743_v15 = vsel %vm739_vm2, %v734_v14, %v736_v45 }
 0x1fc   : > { %v705_v17 = vsel %vm690_vm1, %v688_v58, %v674_v8  ;;  %2282 = vmatprep.subr.bf16.mxu1 %v2480_v39  ;;  %v1180_v19 = vpack.c.bf16 %v743_v15, %v2884_v29  ;;  %v694_v34 = vsel %vm690_vm1, %v685_v13, %v687_v44  ;;  %v1179_v37 = vpack.c.bf16 %v742_v62, %v2892_v31 }
 0x1fd   : > { %1005 = vmatprep.mubr.bf16.mxu1 %v819_v4  ;;  %v706_v14 = vsel %vm690_vm1, %v689_v63, %v675_v11  ;;  %v707_v8 = vmul.f32 %v2906_v42, %v705_v17  ;;  %v692_v38 = vsel %vm690_vm1, %v687_v44, %v689_v63  ;;  %v741_v39 = vsel %vm739_vm2, %v736_v45, %v738_v1 }
 0x1fe   : > { %1006 = vmatmul.mubr.bf16.gmra.mrb[28].mxu1 %v818_v60  ;;  %v708_v29 = vmul.f32 %v2906_v42, %v706_v14  ;;  %v779_v13 = vpack.c.bf16 %v692_v38, %v694_v34  ;;  %v755_v31 = vsel %vm739_vm2, %v738_v1, %v724_v16  ;;  %v691_v11 = vsel %vm690_vm1, %v686_v43, %v688_v58 }
 0x1ff   : > { %2283 = vmatpush3.bf16.msra.mxu1 %v2481_v10  ;;  %1344 = vmatprep.mubr.bf16.mxu1 %v1176_v50  ;;  %v772_v44 = vpack.c.bf16 %v2762_v21, %v707_v8  ;;  %v771_v45 = vmul.f32 %v2908_v57, %v755_v31  ;;  %v693_v7 = vsel %vm690_vm1, %v684_v2, %v686_v43 }
 0x200   : > { %2284 = vmatprep.subr.bf16.mxu1 %v2484_v3  ;;  %v773_v16 = vpack.c.bf16 %v2783_v25, %v708_v29  ;;  %v778_v56 = vpack.c.bf16 %v691_v11, %v693_v7  ;;  %v740_v24 = vsel %vm739_vm2, %v735_v36, %v737_v59  ;;  %v754_v46 = vsel %vm739_vm2, %v737_v59, %v723_v9  ;;  %v2487_v9 = vld [vmem:[%s3159_s6 + $0x28] sm:$0xff]   ;;  %v2490_v25 = vld [vmem:[%s3159_s6 + $0x38] sm:$0xff]   ;;  %v3031_v11 = vld [vmem:[%s3158_s5] ss:$0 sm:$0xff] }
 0x201   : > { %v1182_v21 = vpack.c.bf16 %v771_v45, %v741_v39  ;;  %v770_v50 = vmul.f32 %v2908_v57, %v754_v46  ;;  %v3026_v39 = vld [vmem:[%s3157_s4] ss:$0 sm:$0xff] }
 0x202   : > { %1142 = vmatprep.mubr.bf16.mxu0 %v773_v16 }
 0x203   : > { %2285 = vmatpush3.bf16.msra.mxu1 %v2485_v41  ;;  %1143 = vmatmul.mubr.bf16.vlgmr.msra.gmra.mrb[8].mxu0 %v772_v44  ;;  %v1181_v0 = vpack.c.bf16 %v770_v50, %v740_v24 }
 0x204   : > { %1150 = vmatprep.mubr.bf16.mxu0 %v775_v54  ;;  %2334 = vmatprep.subr.bf16.mxu1 %v2486_v6 }
 0x205   : > { %2351 = vmatpush3.bf16.msra.mxu0 %v2488_v35 }
 0x206   : > { %1345 = vmatmul.mubr.bf16.vlgmr.msra.gmra.mrb[32].mxu1 %v1175_v40  ;;  %v2491_v40 = vld [vmem:[%s3159_s6 + $0x8] sm:$0xff]  }
 0x207   : > { %1352 = vmatprep.mubr.bf16.mxu1 %v1178_v20  ;;  %2335 = vmatpush3.bf16.msra.mxu1 %v2486_v6 }
 0x208   : > { %2336 = vmatprep.subr.bf16.mxu1 %v2487_v9  ;;  %2352 = vmatprep.subr.bf16.mxu0 %v2491_v40 }
 0x209   : > { %2353 = vmatpush3.bf16.msra.mxu0 %v2491_v40 }
 0x20a   : > { %2354 = vmatprep.subr.bf16.mxu0 %v2492_v47 }
 0x20b   : > { %1151 = vmatmul.mubr.bf16.gmra.mrb[12].mxu0 %v774_v53  ;;  %2337 = vmatpush3.bf16.msra.mxu1 %v2487_v9 }
 0x20c   : > { %1158 = vmatprep.mubr.bf16.mxu0 %v777_v32  ;;  %2338 = vmatprep.subr.bf16.mxu1 %v2489_v22 }
 0x20d   : > { %2355 = vmatpush3.bf16.msra.mxu0 %v2492_v47 }
 0x20e   : > { %1353 = vmatmul.mubr.bf16.gmra.mrb[36].mxu1 %v1177_v26  ;;  %2356 = vmatprep.subr.bf16.mxu0 %v2493_v48 }
 0x20f   : > { %1360 = vmatprep.mubr.bf16.mxu1 %v1180_v19  ;;  %2339 = vmatpush3.bf16.msra.mxu1 %v2489_v22 }
 0x210   : > { %2340 = vmatprep.subr.bf16.mxu1 %v2490_v25 }
 0x211   : > { %2357 = vmatpush3.bf16.msra.mxu0 %v2493_v48 }
 0x212   : > { %2366 = vmatprep.subr.bf16.mxu0 %v3012_v49 }
 0x213   : > { %1159 = vmatmul.mubr.bf16.gmra.mrb[16].mxu0 %v776_v33  ;;  %2341 = vmatpush3.bf16.msra.mxu1 %v2490_v25 }
 0x214   : > { %1166 = vmatprep.mubr.bf16.mxu0 %v779_v13 }
 0x216   : > { %1361 = vmatmul.mubr.bf16.gmra.mrb[40].mxu1 %v1179_v37 }
 0x217   : > { %1368 = vmatprep.mubr.bf16.mxu1 %v1182_v21 }
 0x21b   : > { %1167 = vmatmul.mubr.bf16.gmra.mrb[20].mxu0 %v778_v56 }
 0x21e   : > { %1369 = vmatmul.mubr.bf16.gmra.mrb[44].mxu1 %v1181_v0 }
 0x2b9   : > { %v2206_v51 = vpop.f32.mrb[16].mxu1 }
 0x2ba   : > { %v2207_v52 = vpop.f32.mrb[17].mxu1 }
 0x2bb   : > { %v2208_v53 = vadd.f32 %v2207_v52, %v2206_v51  ;;  %v2209_v54 = vpop.f32.mrb[18].mxu1 }
 0x2bc   : > { %v2210_v55 = vpop.f32.mrb[19].mxu1 }
 0x2bd   : > { %v2211_v2 = vadd.f32 %v2210_v55, %v2209_v54 }
 0x2c1   : > { %v2212_v12 = vpop.f32.mrb[20].mxu1 }
 0x2c2   : > { %v2213_v18 = vpop.f32.mrb[21].mxu1 }
 0x2c3   : > { %v2214_v20 = vadd.f32 %v2213_v18, %v2212_v12  ;;  %v2215_v23 = vpop.f32.mrb[22].mxu1 }
 0x2c4   : > { %v2216_v26 = vpop.f32.mrb[23].mxu1 }
 0x2c5   : > { %v2217_v27 = vadd.f32 %v2216_v26, %v2215_v23 }
 0x2c9   : > { %v2218_v28 = vpop.f32.mrb[24].mxu1 }
 0x2ca   : > { %v2219_v30 = vpop.f32.mrb[25].mxu1 }
 0x2cb   : > { %v3015_v32 = vadd.f32 %v2219_v30, %v2218_v28  ;;  %v2221_v33 = vpop.f32.mrb[26].mxu1 }
 0x2cc   : > { %v2222_v36 = vpop.f32.mrb[27].mxu1 }
 0x2cd   : > { %v3017_v43 = vadd.f32 %v2222_v36, %v2221_v33 }
 0x2d1   : > { %v2224_v58 = vpop.f32.mrb[28].mxu1 }
 0x2d2   : > { %v2225_v59 = vpop.f32.mrb[29].mxu1 }
 0x2d3   : > { %v3019_v60 = vadd.f32 %v2225_v59, %v2224_v58  ;;  %v2227_v61 = vpop.f32.mrb[30].mxu1 }
 0x2d4   : > { %v2228_v62 = vpop.f32.mrb[31].mxu1 }
 0x2d5   : > { %v3021_v63 = vadd.f32 %v2228_v62, %v2227_v61 }
 0x2d6   : > { %v2246_v1 = vpop.f32.mrb[8].mxu0 }
 0x2d7   : > { %v2247_v4 = vpop.f32.mrb[9].mxu0 }
 0x2d8   : > { %v2248_v10 = vadd.f32 %v2247_v4, %v2246_v1  ;;  %v2249_v15 = vpop.f32.mrb[10].mxu0 }
 0x2d9   : > { %v2250_v17 = vpop.f32.mrb[11].mxu0  ;;  %v2286_v3 = vpop.f32.mrb[32].mxu1 }
 0x2da   : > { %v1145_v19 = vadd.f32 %v2248_v10, %v2208_v53  ;;  %v2251_v34 = vadd.f32 %v2250_v17, %v2249_v15  ;;  %v2287_v37 = vpop.f32.mrb[33].mxu1 }
 0x2db   : > { %v2288_v14 = vadd.f32 %v2287_v37, %v2286_v3  ;;  %v2289_v8 = vpop.f32.mrb[34].mxu1 }
 0x2dc   : > { %v1148_v38 = vadd.f32 %v2251_v34, %v2211_v2  ;;  %v2290_v29 = vpop.f32.mrb[35].mxu1 }
 0x2dd   : > { %v1377_v13 = vadd.f32 %v2288_v14, %v1145_v19  ;;  %v2291_v31 = vadd.f32 %v2290_v29, %v2289_v8 }
 0x2de   : > { %v2252_v41 = vpop.f32.mrb[12].mxu0 }
 0x2df   : > { %v1392_v44 = vmul.f32 %v3026_v39, %v1377_v13  ;;  %v1378_v45 = vadd.f32 %v2291_v31, %v1148_v38  ;;  %v2253_v7 = vpop.f32.mrb[13].mxu0 }
 0x2e0   : > { %v2254_v16 = vadd.f32 %v2253_v7, %v2252_v41  ;;  %v2255_v56 = vpop.f32.mrb[14].mxu0 }
 0x2e1   : > { %v1407_v24 = vadd.f32 %v3031_v11, %v1392_v44  ;;  %v1393_v46 = vmul.f32 %v3026_v39, %v1378_v45  ;;  %v2256_v21 = vpop.f32.mrb[15].mxu0  ;;  %v2292_v50 = vpop.f32.mrb[36].mxu1 }
 0x2e2   : > { %v1153_v0 = vadd.f32 %v2254_v16, %v2214_v20  ;;  %v2257_v6 = vadd.f32 %v2256_v21, %v2255_v56  ;;  %v2293_v9 = vpop.f32.mrb[37].mxu1 }
 0x2e3   : > { %v3036_v22 = vmax.f32 %v1407_v24, 0.0  ;;  %v1408_v25 = vadd.f32 %v3031_v11, %v1393_v46  ;;  %v2294_v35 = vadd.f32 %v2293_v9, %v2292_v50  ;;  %v2295_v40 = vpop.f32.mrb[38].mxu1 }
 0x2e4   : > { %v1156_v47 = vadd.f32 %v2257_v6, %v2217_v27  ;;  %v2296_v48 = vpop.f32.mrb[39].mxu1 }
 0x2e5   : > { %v1416_v51 = vmax.f32 %v1408_v25, 0.0  ;;  %v1379_v52 = vadd.f32 %v2294_v35, %v1153_v0  ;;  %v1423_v53 = vrot.slane %v3036_v22, 7  ;;  %v1447_v54 = vrot.slane %v3036_v22, 1 }
 0x2e6   : > { %v2297_v55 = vadd.f32 %v2296_v48, %v2295_v40  ;;  %v2258_v2 = vpop.f32.mrb[16].mxu0 }
 0x2e7   : > { %v1424_v12 = vrot.slane %v1416_v51, 7  ;;  %v1448_v18 = vrot.slane %v1416_v51, 1  ;;  %v1394_v20 = vmul.f32 %v3026_v39, %v1379_v52  ;;  %v2259_v23 = vpop.f32.mrb[17].mxu0  ;;  %v1483_v26 = vpack.c.bf16 %v1416_v51, %v3036_v22 }
 0x2e8   : > { %v1380_v28 = vadd.f32 %v2297_v55, %v1156_v47  ;;  %v2260_v30 = vadd.f32 %v2259_v23, %v2258_v2  ;;  %v2261_v27 = vpop.f32.mrb[18].mxu0 }
 0x2e9   : > { %v1409_v33 = vadd.f32 %v3031_v11, %v1394_v20  ;;  %v2262_v36 = vpop.f32.mrb[19].mxu0  ;;  %v2298_v58 = vpop.f32.mrb[40].mxu1  ;;  %2342 = vmatprep.mubr.msk.bf16.mxu1 %vm1520_vm5, %v1483_v26  ;;  %v3049_v59 = vsel %vm690_vm1, %v1423_v53, %v1424_v12  ;;  %v3055_v61 = vsel %vm739_vm2, %v1447_v54, %v1448_v18 }
 0x2ea   : > { %v1395_v62 = vmul.f32 %v3026_v39, %v1380_v28  ;;  %v1161_v1 = vadd.f32 %v2260_v30, %v3015_v32  ;;  %v2263_v4 = vadd.f32 %v2262_v36, %v2261_v27  ;;  %v2299_v10 = vpop.f32.mrb[41].mxu1 }
 0x2eb   : > { %v1417_v15 = vmax.f32 %v1409_v33, 0.0  ;;  %v2300_v17 = vadd.f32 %v2299_v10, %v2298_v58  ;;  %v2301_v3 = vpop.f32.mrb[42].mxu1 }
 0x2ec   : > { %v1410_v19 = vadd.f32 %v3031_v11, %v1395_v62  ;;  %v1164_v34 = vadd.f32 %v2263_v4, %v3017_v43  ;;  %v2302_v37 = vpop.f32.mrb[43].mxu1 }
 0x2ed   : > { %v1425_v14 = vrot.slane %v1417_v15, 7  ;;  %v1449_v8 = vrot.slane %v1417_v15, 1  ;;  %v1381_v38 = vadd.f32 %v2300_v17, %v1161_v1  ;;  %v2303_v29 = vadd.f32 %v2302_v37, %v2301_v3 }
 0x2ee   : > { %v1418_v13 = vmax.f32 %v1410_v19, 0.0  ;;  %v2264_v31 = vpop.f32.mrb[20].mxu0 }
 0x2ef   : > { %v3063_v41 = vsel %vm690_vm1, %v1424_v12, %v1425_v14  ;;  %v1396_v32 = vmul.f32 %v3026_v39, %v1381_v38  ;;  %v1382_v44 = vadd.f32 %v2303_v29, %v1164_v34  ;;  %v2265_v45 = vpop.f32.mrb[21].mxu0  ;;  %v3068_v7 = vsel %vm739_vm2, %v1448_v18, %v1449_v8 }
 0x2f0   : > { %v1426_v43 = vrot.slane %v1418_v13, 7  ;;  %v1450_v16 = vrot.slane %v1418_v13, 1  ;;  %v1484_v56 = vpack.c.bf16 %v1418_v13, %v1417_v15  ;;  %v2266_v24 = vadd.f32 %v2265_v45, %v2264_v31  ;;  %v2267_v46 = vpop.f32.mrb[22].mxu0 }
 0x2f1   : > { %v1411_v21 = vadd.f32 %v3031_v11, %v1396_v32  ;;  %v1397_v50 = vmul.f32 %v3026_v39, %v1382_v44  ;;  %v2268_v0 = vpop.f32.mrb[23].mxu0  ;;  %v2304_v6 = vpop.f32.mrb[44].mxu1  ;;  %v1699_v9 = vpack.c.bf16 %v3068_v7, %v3055_v61  ;;  %v2145_v61 = vld [vmem:[%s3160_s7] ss:$0 sm:$0xff] }
 0x2f2   : > { %v1435_v25 = vsel %vm690_vm1, %v1425_v14, %v1426_v43  ;;  %v3078_v35 = vsel %vm739_vm2, %v1449_v8, %v1450_v16  ;;  %v1169_v40 = vadd.f32 %v2266_v24, %v3019_v60  ;;  %v2269_v47 = vadd.f32 %v2268_v0, %v2267_v46  ;;  %2343 = vmatmul.mubr.msk.bf16.vlgmr.msra.gmra.mrb[48].mxu1 %vm1520_vm5, %v1484_v56  ;;  %v2305_v48 = vpop.f32.mrb[45].mxu1 }
 0x2f3   : > { %v1472_v51 = vpack.c.bf16 %v1435_v25, %v3063_v41  ;;  %v1419_v52 = vmax.f32 %v1411_v21, 0.0  ;;  %v1412_v55 = vadd.f32 %v3031_v11, %v1397_v50  ;;  %v2306_v2 = vadd.f32 %v2305_v48, %v2304_v6  ;;  %v2307_v12 = vpop.f32.mrb[46].mxu1 }
 0x2f4   : > { %v1172_v18 = vadd.f32 %v2269_v47, %v3021_v63  ;;  %v2308_v20 = vpop.f32.mrb[47].mxu1 }
 0x2f5   : > { %v1427_v23 = vrot.slane %v1419_v52, 7  ;;  %v1451_v26 = vrot.slane %v1419_v52, 1  ;;  %v1420_v28 = vmax.f32 %v1412_v55, 0.0  ;;  %v1383_v30 = vadd.f32 %v2306_v2, %v1169_v40 }
 0x2f6   : > { %v2309_v27 = vadd.f32 %v2308_v20, %v2307_v12 }
 0x2f7   : > { %v1458_v60 = vsel %vm739_vm2, %v1450_v16, %v1451_v26  ;;  %v1428_v33 = vrot.slane %v1420_v28, 7  ;;  %v1452_v36 = vrot.slane %v1420_v28, 1  ;;  %v1398_v58 = vmul.f32 %v3026_v39, %v1383_v30 }
 0x2f8   : > { %v1700_v62 = vpack.c.bf16 %v1458_v60, %v3078_v35  ;;  %v1384_v1 = vadd.f32 %v2309_v27, %v1172_v18  ;;  %v1485_v4 = vpack.c.bf16 %v1420_v28, %v1419_v52  ;;  %v1434_v63 = vsel %vm690_vm1, %v1426_v43, %v1427_v23  ;;  %v2146_v35 = vld [vmem:[%s3161_s8] ss:$0 sm:$0xff] }
 0x2f9   : > { %v1413_v10 = vadd.f32 %v3031_v11, %v1398_v58  ;;  %v1433_v15 = vsel %vm690_vm1, %v1427_v23, %v1428_v33  ;;  %v1457_v17 = vsel %vm739_vm2, %v1451_v26, %v1452_v36 }
 0x2fa   : > { %v1399_v3 = vmul.f32 %v3026_v39, %v1384_v1  ;;  %2346 = vmatprep.mubr.msk.bf16.mxu1 %vm1520_vm5, %v1485_v4  ;;  %v1473_v19 = vpack.c.bf16 %v1433_v15, %v1434_v63 }
 0x2fb   : > { %v1421_v34 = vmax.f32 %v1413_v10, 0.0 }
 0x2fc   : > { %v1414_v37 = vadd.f32 %v3031_v11, %v1399_v3 }
 0x2fd   : > { %v1429_v14 = vrot.slane %v1421_v34, 7  ;;  %v1453_v8 = vrot.slane %v1421_v34, 1 }
 0x2fe   : > { %v1422_v38 = vmax.f32 %v1414_v37, 0.0 }
 0x2ff   : > { %v1432_v29 = vsel %vm690_vm1, %v1428_v33, %v1429_v14  ;;  %v1456_v13 = vsel %vm739_vm2, %v1452_v36, %v1453_v8 }
 0x300   : > { %v1430_v31 = vrot.slane %v1422_v38, 7  ;;  %v1454_v41 = vrot.slane %v1422_v38, 1  ;;  %v1486_v32 = vpack.c.bf16 %v1422_v38, %v1421_v34  ;;  %v1701_v44 = vpack.c.bf16 %v1456_v13, %v1457_v17 }
 0x302   : > { %2347 = vmatmul.mubr.msk.bf16.gmra.mrb[52].mxu1 %vm1520_vm5, %v1486_v32  ;;  %v1438_v39 = vsel %vm690_vm1, %v1430_v31, %v1423_v53  ;;  %v1431_v11 = vsel %vm690_vm1, %v1429_v14, %v1430_v31  ;;  %v1455_v45 = vsel %vm739_vm2, %v1453_v8, %v1454_v41  ;;  %v1462_v43 = vsel %vm739_vm2, %v1454_v41, %v1447_v54  ;;  %v2495_v53 = vld [vmem:[%s3159_s6 + $0x48] sm:$0xff]  }
 0x303   : > { %v1439_v16 = vmul.f32 %v2906_v42, %v1438_v39  ;;  %v1474_v56 = vpack.c.bf16 %v1431_v11, %v1432_v29  ;;  %v1470_v24 = vmul.f32 %v2908_v57, %v1462_v43  ;;  %v2497_v42 = vld [vmem:[%s3159_s6 + $0x58] sm:$0xff]  }
 0x305   : > { %v1471_v46 = vpack.c.bf16 %v3049_v59, %v1439_v16  ;;  %v1702_v21 = vpack.c.bf16 %v1470_v24, %v1455_v45 }
 0x307   : > { %2358 = vmatprep.mubr.msk.bf16.mxu0 %vm1520_vm5, %v1471_v46 }
 0x308   : > { %2359 = vmatmul.mubr.msk.bf16.vlgmr.msra.gmra.mrb[24].mxu0 %vm1520_vm5, %v1472_v51 }
 0x309   : > { %2367 = vmatpush3.bf16.msra.mxu0 %v3012_v49  ;;  %2362 = vmatprep.mubr.msk.bf16.mxu0 %vm1520_vm5, %v1473_v19 }
 0x30a   : > { %2368 = vmatprep.subr.bf16.mxu0 %v2495_v53 }
 0x30d   : > { %2369 = vmatpush3.bf16.msra.mxu0 %v2495_v53 }
 0x30e   : > { %2370 = vmatprep.subr.bf16.mxu0 %v2496_v5 }
 0x310   : > { %2363 = vmatmul.mubr.msk.bf16.gmra.mrb[28].mxu0 %vm1520_vm5, %v1474_v56 }
 0x311   : > { %2371 = vmatpush3.bf16.msra.mxu0 %v2496_v5  ;;  %2374 = vmatprep.mubr.msk.bf16.mxu0 %vm1520_vm5, %v1699_v9 }
 0x312   : > { %2372 = vmatprep.subr.bf16.mxu0 %v2497_v42 }
 0x315   : > { %2373 = vmatpush3.bf16.msra.mxu0 %v2497_v42 }
 0x318   : > { %2375 = vmatmul.mubr.msk.bf16.vlgmr.msra.gmra.mrb[24].mxu0 %vm1520_vm5, %v1700_v62 }
 0x319   : > { %2378 = vmatprep.mubr.msk.bf16.mxu0 %vm1520_vm5, %v1701_v44 }
 0x320   : > { %2379 = vmatmul.mubr.msk.bf16.gmra.mrb[28].mxu0 %vm1520_vm5, %v1702_v21 }
 0x3c5   : > { %v2344_v57 = vpop.f32.mrb[48].mxu1 }
 0x3c6   : > { %v1567_v49 = vpop.f32.mrb[49].mxu1 }
 0x3c7   : > { %v2345_v22 = vpop.f32.mrb[50].mxu1 }
 0x3c8   : > { %v1570_v54 = vpop.f32.mrb[51].mxu1 }
 0x3d5   : > { %v2348_v59 = vpop.f32.mrb[52].mxu1 }
 0x3d6   : > { %v1583_v50 = vpop.f32.mrb[53].mxu1 }
 0x3d7   : > { %v2349_v0 = vpop.f32.mrb[54].mxu1 }
 0x3d8   : > { %v1586_v6 = vpop.f32.mrb[55].mxu1 }
 0x3eb   : > { %v2376_v25 = vpop.f32.mrb[24].mxu0 }
 0x3ec   : > { %v2382_v7 = vadd.f32 %v2376_v25, %v2344_v57  ;;  %v1782_v9 = vpop.f32.mrb[25].mxu0 }
 0x3ed   : > { %v2383_v40 = vadd.f32 %v1782_v9, %v1567_v49  ;;  %v2377_v47 = vpop.f32.mrb[26].mxu0 }
 0x3ee   : > { %v1830_v48 = vmul.f32 %v2382_v7, %v2145_v61  ;;  %v2384_v51 = vadd.f32 %v2377_v47, %v2345_v22  ;;  %v1785_v52 = vpop.f32.mrb[27].mxu0 }
 0x3ef   : > { %v1828_v55 = vmul.f32 %v2383_v40, %v2145_v61  ;;  %v2385_v2 = vadd.f32 %v1785_v52, %v1570_v54 }
 0x3f0   : > { %v1845_v12 = vadd.f32 %v2146_v35, %v1830_v48  ;;  %v1831_v18 = vmul.f32 %v2384_v51, %v2145_v61 }
 0x3f1   : > { %v1843_v20 = vadd.f32 %v2146_v35, %v1828_v55  ;;  %v1829_v23 = vmul.f32 %v2385_v2, %v2145_v61 }
 0x3f2   : > { %v1846_v26 = vadd.f32 %v2146_v35, %v1831_v18  ;;  %v1853_v27 = vmax.f32 %v1845_v12, 0.0 }
 0x3f3   : > { %v1844_v28 = vadd.f32 %v2146_v35, %v1829_v23  ;;  %v2380_v30 = vpop.f32.mrb[28].mxu0  ;;  %v1851_v58 = vmax.f32 %v1843_v20, 0.0 }
 0x3f4   : > { %v1854_v60 = vmax.f32 %v1846_v26, 0.0  ;;  %v2386_v33 = vadd.f32 %v2380_v30, %v2348_v59  ;;  %v1798_v36 = vpop.f32.mrb[29].mxu0 }
 0x3f5   : > { %v1852_v62 = vmax.f32 %v1844_v28, 0.0  ;;  %v2387_v1 = vadd.f32 %v1798_v36, %v1583_v50  ;;  %v2381_v4 = vpop.f32.mrb[30].mxu0 }
 0x3f6   : > { %v2175_v63 = vpack.c.bf16 %v1854_v60, %v1853_v27  ;;  %v1834_v10 = vmul.f32 %v2386_v33, %v2145_v61  ;;  %v2388_v15 = vadd.f32 %v2381_v4, %v2349_v0  ;;  %v1801_v17 = vpop.f32.mrb[31].mxu0 }
 0x3f7   : > { %v2170_v3 = vpack.c.bf16 %v1852_v62, %v1851_v58  ;;  %v1832_v19 = vmul.f32 %v2387_v1, %v2145_v61  ;;  %v2389_v34 = vadd.f32 %v1801_v17, %v1586_v6 }
 0x3f8   : > { %2187 = vst [vmem:[%s332_s15 + $0x8] sm:$0xff] %v2175_v63   ;;  %v1849_v37 = vadd.f32 %v2146_v35, %v1834_v10  ;;  %v1835_v14 = vmul.f32 %v2388_v15, %v2145_v61 }
 0x3f9   : > { %2171 = vst [vmem:[%s332_s15] sm:$0xff] %v2170_v3   ;;  %v1847_v8 = vadd.f32 %v2146_v35, %v1832_v19  ;;  %v1833_v38 = vmul.f32 %v2389_v34, %v2145_v61 }
 0x3fa   : > { %v1850_v29 = vadd.f32 %v2146_v35, %v1835_v14  ;;  %v1857_v31 = vmax.f32 %v1849_v37, 0.0 }
 0x3fb   : > { %v1848_v13 = vadd.f32 %v2146_v35, %v1833_v38  ;;  %v1855_v32 = vmax.f32 %v1847_v8, 0.0 }
 0x3fc   : > { %v1858_v41 = vmax.f32 %v1850_v29, 0.0 }
 0x3fd   : > { %v1856_v44 = vmax.f32 %v1848_v13, 0.0 }
 0x3fe   : > { %v2185_v39 = vpack.c.bf16 %v1858_v41, %v1857_v31 }
 0x3ff   : > { %v2180_v11 = vpack.c.bf16 %v1856_v44, %v1855_v32 }
 0x400   : > { %2189 = vst [vmem:[%s332_s15 + $0x18] sm:$0xff] %v2185_v39  }
 0x401   : > { %2188 = vst [vmem:[%s332_s15 + $0x10] sm:$0xff] %v2180_v11  }
 0x402 PF: > { %s19_s30 = sadd.s32 1, %s2504_s30  }
 0x403   : > { %p16_p4 = scmp.ge.s32.totalorder %s19_s30, 4  }
 0x405   :  { %18 = sbr.rel (!%p16_p4) target bundleno = 1 (0x1), region = 90 }

// kernel: _lambda_.6
= control target key start
LH: loop header
LB: loop body
LE: loop exit
PB: predicated region body
PF: predicated region fallthrough
CT: control target
= control target key end

     0   :  { %s3245_s17 = smov 0   ;;  %s3907_s0 = inlined_call_operand.vmem [shape: bf16[2,16,128], index: 0, kind: input, shape index: {}]   ;;  %s3908_s1 = inlined_call_operand.vmem [shape: bf16[2,32,256], index: 1, kind: input, shape index: {}]   ;;  %s3909_s2 = inlined_call_operand.vmem [shape: bf16[32,16], index: 2, kind: input, shape index: {}]   ;;  %s3910_s3 = inlined_call_operand.vmem [shape: bf16[128,256], index: 3, kind: input, shape index: {}]   ;;  %s3911_s4 = inlined_call_operand.vmem [shape: bf16[3,256,128], index: 4, kind: input, shape index: {}]   ;;  %s3912_s5 = inlined_call_operand.vmem [shape: bf16[3,256,128], index: 5, kind: input, shape index: {}]   ;;  %s3913_s6 = inlined_call_operand.vmem [shape: f32[1,128], index: 6, kind: input, shape index: {}]   ;;  %s3914_s7 = inlined_call_operand.vmem [shape: f32[1,128], index: 7, kind: input, shape index: {}]   ;;  %s3915_s8 = inlined_call_operand.vmem [shape: bf16[3,128,128], index: 8, kind: input, shape index: {}]   ;;  %s3916_s9 = inlined_call_operand.vmem [shape: f32[1,128], index: 9, kind: input, shape index: {}]   ;;  %s3917_s10 = inlined_call_operand.vmem [shape: f32[1,128], index: 10, kind: input, shape index: {}]   ;;  %s3918_s11 = inlined_call_operand.vmem [shape: bf16[2,32,128], index: 11, kind: output, shape index: {}]  }
   0x1 LB: > { %s2402_s18 = sadd.s32 4294967295, %s3181_s17   ;;  %p2406_p0 = scmp.ge.s32.totalorder %s3181_s17, 1  ;;  %s3181_s17 = sphi %s3245_s17, %s21_s17  }
   0x2   : > { %p347_p1 = scmp.lt.s32.totalorder %s3181_s17, 3 }
   0x4   : > { %p348_p2 = pnand %p2406_p0, %p347_p1 }
   0x5   : > { %v3024_v0 = vld [vmem:[%s3910_s3 + $0x4] ss:$8 sps:$4 sm:$0xff] (!%p348_p2)   ;;  %p392_p3 = scmp.lt.s32.totalorder (!%p348_p2), %s2402_s18, 1  ;;  %v3026_v1 = vld [vmem:[%s3910_s3] ss:$8 sps:$4 sm:$0xff] (!%p348_p2)   ;;  %v3183_v2 = vmov (!%p348_p2), 0   ;;  %v408_v60 = vlaneseq (!%p348_p2) }
   0x6   : > { %351 = sbr.rel (%p348_p2) target bundleno = 1056 (0x420), region = 64  ;;  %573 = vmatprep.mubr.bf16.mxu0 (!%p348_p2), %v3183_v2  ;;  %639 = vmatprep.mubr.bf16.mxu1 (!%p348_p2), %v3183_v2  ;;  %v3027_v3 = vld [vmem:[%s3910_s3 + $0x14] ss:$8 sps:$4 sm:$0xff] (!%p348_p2)   ;;  %v3029_v4 = vld [vmem:[%s3910_s3 + $0x10] ss:$8 sps:$4 sm:$0xff] (!%p348_p2)   ;;  %v3059_v18 = vld [vmem:[%s3911_s4 + $0x40] sm:$0xff] (!%p348_p2)  }
   0x7   : > { %541 = vmatprep.subr.bf16.mxu0 (!%p348_p2), %v3024_v0  ;;  %v3030_v5 = vld [vmem:[%s3910_s3 + $0x24] ss:$8 sps:$4 sm:$0xff] (!%p348_p2)   ;;  %v3032_v6 = vld [vmem:[%s3910_s3 + $0x20] ss:$8 sps:$4 sm:$0xff] (!%p348_p2)   ;;  %v3033_v7 = vld [vmem:[%s3910_s3 + $0x34] ss:$8 sps:$4 sm:$0xff] (!%p348_p2)  }
   0x8   : > { %542 = vmatpush1.bf16.msra.mxu0 (!%p348_p2), %v3026_v1  ;;  %v3035_v8 = vld [vmem:[%s3910_s3 + $0x30] ss:$8 sps:$4 sm:$0xff] (!%p348_p2)   ;;  %v3036_v9 = vld [vmem:[%s3910_s3 + $0x44] ss:$8 sps:$4 sm:$0xff] (!%p348_p2)   ;;  %v3038_v10 = vld [vmem:[%s3910_s3 + $0x40] ss:$8 sps:$4 sm:$0xff] (!%p348_p2)  }
   0x9   : > { %543 = vmatprep.subr.bf16.mxu0 (!%p348_p2), %v3027_v3  ;;  %v3039_v11 = vld [vmem:[%s3910_s3 + $0x54] ss:$8 sps:$4 sm:$0xff] (!%p348_p2)   ;;  %v3041_v12 = vld [vmem:[%s3910_s3 + $0x50] ss:$8 sps:$4 sm:$0xff] (!%p348_p2)   ;;  %v3042_v13 = vld [vmem:[%s3910_s3 + $0x64] ss:$8 sps:$4 sm:$0xff] (!%p348_p2)  }
   0xa   : > { %v3044_v14 = vld [vmem:[%s3910_s3 + $0x60] ss:$8 sps:$4 sm:$0xff] (!%p348_p2)   ;;  %v3045_v15 = vld [vmem:[%s3910_s3 + $0x74] ss:$8 sps:$4 sm:$0xff] (!%p348_p2)   ;;  %v3047_v16 = vld [vmem:[%s3910_s3 + $0x70] ss:$8 sps:$4 sm:$0xff] (!%p348_p2)  }
   0xb   : > { %v3060_v19 = vld [vmem:[%s3911_s4] sm:$0xff] (!%p348_p2)   ;;  %v3063_v20 = vld [vmem:[%s3911_s4 + $0x48] sm:$0xff] (!%p348_p2)   ;;  %v3067_v22 = vld [vmem:[%s3911_s4 + $0x50] sm:$0xff] (!%p348_p2)   ;;  %vm600_vm0 = vcmask (!%p348_p2), 130048   ;;  %v3418_v61 = vshrl.u32 (!%p348_p2), %v408_v60, 7 }
   0xc   : > { %544 = vmatpush1.bf16.msra.mxu0 (!%p348_p2), %v3029_v4  ;;  %v3064_v21 = vld [vmem:[%s3911_s4 + $0x8] sm:$0xff] (!%p348_p2)   ;;  %v3068_v23 = vld [vmem:[%s3911_s4 + $0x10] sm:$0xff] (!%p348_p2)   ;;  %v3071_v24 = vld [vmem:[%s3911_s4 + $0x58] sm:$0xff] (!%p348_p2)  }
   0xd   : > { %s3920_s18 = smov (!%p392_p3, %s2402_s18), 1  ;;  %545 = vmatprep.subr.bf16.mxu0 %v3030_v5  ;;  %v3051_v31 = vld [vmem:[%s3911_s4 + $0xc0] sm:$0xff]   ;;  %v3053_v34 = vld [vmem:[%s3911_s4 + $0xc8] sm:$0xff]   ;;  %v3055_v36 = vld [vmem:[%s3911_s4 + $0xd0] sm:$0xff]   ;;  %vm668_vm1 = vcmp.lt.s32.totalorder %v3418_v61, 1  ;;  %vm693_vm2 = vcmp.lt.s32.totalorder %v3418_v61, 7 }
   0xe   : > { %s2730_s29 = sshll.u32 %s3920_s18, 3  ;;  %v3049_v32 = vld [vmem:[%s3909_s2] sm:$0xff]   ;;  %v3054_v35 = vld [vmem:[%s3911_s4 + $0x88] sm:$0xff]   ;;  %v3056_v38 = vld [vmem:[%s3911_s4 + $0x90] sm:$0xff]   ;;  %v412_v3 = vadd.s32 24, %v3418_v61  ;;  %vm413_vm3 = vcmp.gt.s32.totalorder %v3418_v61, 0 }
   0xf   : > { %s396_s19 = scalar_lea.vmem %s3907_s0, %s2730_s29  ;;  %v3052_v33 = vld [vmem:[%s3911_s4 + $0x80] sm:$0xff]   ;;  %v3050_v37 = vld [vmem:[%s3909_s2 + $0x8] sm:$0xff]   ;;  %v3057_v39 = vld [vmem:[%s3911_s4 + $0xd8] sm:$0xff]   ;;  %s2731_s25 = sshll.u32 %s3920_s18, 5 }
  0x10   : > { %546 = vmatpush1.bf16.msra.mxu0 %v3032_v6  ;;  %v3048_v17 = vld [vmem:[%s396_s19] sm:$0xff]   ;;  %v3058_v40 = vld [vmem:[%s3911_s4 + $0x98] sm:$0xff]   ;;  %v3065_v43 = vld [vmem:[%s3911_s4 + $0xe8] sm:$0xff]   ;;  %vm428_vm4 = vcmp.lt.s32.totalorder %v412_v3, 31  ;;  %s3541_s14 = scalar_lea.vmem %s3908_s1, %s2731_s25  ;;  %s2732_s26 = sshll.u32 %s3920_s18, 4 }
  0x11   : > { %547 = vmatprep.subr.bf16.mxu0 %v3033_v7  ;;  %v3061_v41 = vld [vmem:[%s3911_s4 + $0xe0] sm:$0xff]   ;;  %v3066_v44 = vld [vmem:[%s3911_s4 + $0xa8] sm:$0xff]   ;;  %v3069_v45 = vld [vmem:[%s3911_s4 + $0xf0] sm:$0xff]   ;;  %s406_s28 = scalar_lea.vmem %s3918_s11, %s2732_s26 }
  0x12   : > { %v3062_v42 = vld [vmem:[%s3911_s4 + $0xa0] sm:$0xff]   ;;  %v3070_v46 = vld [vmem:[%s3911_s4 + $0xb0] sm:$0xff]   ;;  %v3072_v47 = vld [vmem:[%s3911_s4 + $0x18] sm:$0xff]  }
  0x13   : > { %v3073_v48 = vld [vmem:[%s3911_s4 + $0xf8] sm:$0xff]   ;;  %v3075_v50 = vld [vmem:[%s3911_s4 + $0x60] sm:$0xff]   ;;  %v3078_v53 = vld [vmem:[%s3911_s4 + $0x68] sm:$0xff]  }
  0x14   : > { %548 = vmatpush1.bf16.msra.mxu0 %v3035_v8  ;;  %v3074_v49 = vld [vmem:[%s3911_s4 + $0xb8] sm:$0xff]   ;;  %v3076_v51 = vld [vmem:[%s3911_s4 + $0x20] sm:$0xff]   ;;  %v3080_v54 = vld [vmem:[%s3911_s4 + $0x28] sm:$0xff]  }
  0x15   : > { %549 = vmatprep.subr.bf16.mxu0 %v3036_v9  ;;  %v3077_v52 = vld [vmem:[%s3911_s4 + $0x140] sm:$0xff]   ;;  %v3082_v55 = vld [vmem:[%s3911_s4 + $0x70] sm:$0xff]   ;;  %v3086_v57 = vld [vmem:[%s3911_s4 + $0x78] sm:$0xff]  }
  0x16   : > { %v3084_v56 = vld [vmem:[%s3911_s4 + $0x30] sm:$0xff]   ;;  %v3088_v58 = vld [vmem:[%s3911_s4 + $0x38] sm:$0xff]   ;;  %v3091_v59 = vld [vmem:[%s3912_s5 + $0xc0] sm:$0xff]  }
  0x17   : > { %v3095_v3 = vld [vmem:[%s3912_s5 + $0xc8] sm:$0xff]   ;;  %v3170_v61 = vld [vmem:[%s3915_s8 + $0x98] sm:$0xff]  }
  0x18   : > { %550 = vmatpush1.bf16.msra.mxu0 %v3038_v10 }
  0x19   : > { %551 = vmatprep.subr.bf16.mxu0 %v3039_v11 }
  0x1c   : > { %552 = vmatpush1.bf16.msra.mxu0 %v3041_v12 }
  0x1d   : > { %553 = vmatprep.subr.bf16.mxu0 %v3042_v13  ;;  %v3079_v13 = vld [vmem:[%s3911_s4 + $0x100] sm:$0xff]  }
  0x20   : > { %554 = vmatpush1.bf16.msra.mxu0 %v3044_v14 }
  0x21   : > { %555 = vmatprep.subr.bf16.mxu0 %v3045_v15 }
  0x24   : > { %556 = vmatpush1.bf16.msra.mxu0 %v3047_v16  ;;  %v3081_v16 = vld [vmem:[%s3911_s4 + $0x148] sm:$0xff]  }
  0x25   : > { %2776 = vmatprep.subr.bf16.mxu0 %v3059_v18 }
  0x27   : > { %574 = vmatmul.mubr.bf16.vlgmr.msra.gmra.mrb[0].mxu0 %v3048_v17 }
  0x28   : > { %2777 = vmatpush3.bf16.msra.mxu0 %v3060_v19 }
  0x29   : > { %2778 = vmatprep.subr.bf16.mxu0 %v3063_v20  ;;  %v3083_v20 = vld [vmem:[%s3911_s4 + $0x108] sm:$0xff]  }
  0x2c   : > { %2779 = vmatpush3.bf16.msra.mxu0 %v3064_v21 }
  0x2d   : > { %2780 = vmatprep.subr.bf16.mxu0 %v3067_v22 }
  0x30   : > { %2781 = vmatpush3.bf16.msra.mxu0 %v3068_v23  ;;  %v3184_v23 = vmov 0.0  }
  0x31   : > { %2782 = vmatprep.subr.bf16.mxu0 %v3071_v24  ;;  %v3462_v24 = vsel %vm413_vm3, 1.0, %v3184_v23 }
  0x34   : > { %2783 = vmatpush3.bf16.msra.mxu0 %v3072_v47 }
  0x35   : > { %2784 = vmatprep.subr.bf16.mxu0 %v3075_v50 }
  0x38   : > { %2785 = vmatpush3.bf16.msra.mxu0 %v3076_v51 }
  0x39   : > { %2786 = vmatprep.subr.bf16.mxu0 %v3078_v53 }
  0x3c   : > { %2787 = vmatpush3.bf16.msra.mxu0 %v3080_v54  ;;  %v3090_v54 = vld [vmem:[%s3911_s4 + $0x118] sm:$0xff]  }
  0x3d   : > { %2788 = vmatprep.subr.bf16.mxu0 %v3082_v55 }
  0x40   : > { %2789 = vmatpush3.bf16.msra.mxu0 %v3084_v56 }
  0x41   : > { %2790 = vmatprep.subr.bf16.mxu0 %v3086_v57 }
  0x44   : > { %2791 = vmatpush3.bf16.msra.mxu0 %v3088_v58 }
  0x45   : > { %2832 = vmatprep.subr.bf16.mxu0 %v3091_v59  ;;  %v3092_v59 = vld [vmem:[%s3912_s5 + $0x80] sm:$0xff]  }
  0xfa   : > { %v575_v25 = vpop.f32.mrb[0].mxu0 }
  0xfb   : > { %v577_v26 = vpop.f32.mrb[1].mxu0 }
  0xfc   : > { %v579_v27 = vpop.f32.mrb[2].mxu0 }
  0xfd   : > { %v588_v28 = vpack.c.bf16 %v579_v27, %v575_v25  ;;  %v581_v29 = vpop.f32.mrb[3].mxu0  ;;  %v3085_v25 = vld [vmem:[%s3911_s4 + $0x150] sm:$0xff]  }
  0xfe   : > { %v589_v30 = vpack.c.bf16 %v581_v29, %v577_v26 }
 0x100   : > { %607 = vmatprep.subr.bf16.mxu1 %v589_v30  ;;  %v3467_v30 = vsel %vm428_vm4, 1.0, %v3184_v23  ;;  %v3107_v23 = vld [vmem:[%s3912_s5 + $0xe0] sm:$0xff]  }
 0x101   : > { %608 = vmatpush1.bf16.msra.mxu1 %v588_v28 }
 0x102   : > { %2748 = vmatprep.subr.bf16.mxu1 %v3051_v31 }
 0x104   : > { %2434 = vmatmul.mubr.msk.bf16.vlgmr.msra.gmra.mrb[0].mxu1 %vm600_vm0, %v3049_v32 }
 0x105   : > { %649 = vmatprep.mubr.bf16.mxu1 %v3183_v2  ;;  %2749 = vmatpush3.bf16.msra.mxu1 %v3052_v33 }
 0x106   : > { %2750 = vmatprep.subr.bf16.mxu1 %v3053_v34 }
 0x109   : > { %2751 = vmatpush3.bf16.msra.mxu1 %v3054_v35 }
 0x10a   : > { %2752 = vmatprep.subr.bf16.mxu1 %v3055_v36 }
 0x10c   : > { %2435 = vmatmul.mubr.msk.bf16.gmra.mrb[4].mxu1 %vm600_vm0, %v3050_v37 }
 0x10d   : > { %2753 = vmatpush3.bf16.msra.mxu1 %v3056_v38 }
 0x10e   : > { %2754 = vmatprep.subr.bf16.mxu1 %v3057_v39 }
 0x111   : > { %2755 = vmatpush3.bf16.msra.mxu1 %v3058_v40  ;;  %v3087_v40 = vld [vmem:[%s3911_s4 + $0x110] sm:$0xff]  }
 0x112   : > { %2756 = vmatprep.subr.bf16.mxu1 %v3061_v41 }
 0x115   : > { %2757 = vmatpush3.bf16.msra.mxu1 %v3062_v42 }
 0x116   : > { %2758 = vmatprep.subr.bf16.mxu1 %v3065_v43  ;;  %v3089_v43 = vld [vmem:[%s3911_s4 + $0x158] sm:$0xff]  }
 0x119   : > { %2759 = vmatpush3.bf16.msra.mxu1 %v3066_v44 }
 0x11a   : > { %2760 = vmatprep.subr.bf16.mxu1 %v3069_v45 }
 0x11d   : > { %2761 = vmatpush3.bf16.msra.mxu1 %v3070_v46 }
 0x11e   : > { %2762 = vmatprep.subr.bf16.mxu1 %v3073_v48 }
 0x121   : > { %2763 = vmatpush3.bf16.msra.mxu1 %v3074_v49 }
 0x122   : > { %2804 = vmatprep.subr.bf16.mxu1 %v3077_v52 }
 0x1d7   : > { %v3420_v62 = vpop.f32.mrb[0].mxu1 }
 0x1d8   : > { %v3422_v63 = vpop.f32.mrb[1].mxu1  ;;  %v660_v0 = vrot.slane %v3420_v62, 7  ;;  %v685_v1 = vrot.slane %v3420_v62, 1 }
 0x1d9   : > { %v3427_v2 = vpop.f32.mrb[2].mxu1  ;;  %v661_v4 = vrot.slane %v3422_v63, 7  ;;  %v686_v9 = vrot.slane %v3422_v63, 1 }
 0x1da   : > { %v662_v5 = vrot.slane %v3427_v2, 7  ;;  %v687_v6 = vrot.slane %v3427_v2, 1  ;;  %v746_v7 = vpack.c.bf16 %v3427_v2, %v3420_v62  ;;  %v647_v8 = vpop.f32.mrb[3].mxu1  ;;  %v3093_v2 = vld [vmem:[%s3911_s4 + $0x160] sm:$0xff]  }
 0x1db   : > { %v663_v10 = vrot.slane %v647_v8, 7  ;;  %v688_v11 = vrot.slane %v647_v8, 1  ;;  %v747_v12 = vpack.c.bf16 %v647_v8, %v3422_v63  ;;  %v3094_v62 = vld [vmem:[%s3911_s4 + $0x120] sm:$0xff]   ;;  %v3099_v8 = vld [vmem:[%s3912_s5 + $0xd0] sm:$0xff]  }
 0x1dc   : > { %v3443_v14 = vsel %vm668_vm1, %v660_v0, %v662_v5  ;;  %v3449_v15 = vsel %vm693_vm2, %v685_v1, %v687_v6 }
 0x1dd   : > { %911 = vmatprep.mubr.bf16.mxu1 %v747_v12  ;;  %v699_v17 = vsel %vm693_vm2, %v686_v9, %v688_v11  ;;  %v674_v18 = vsel %vm668_vm1, %v661_v4, %v663_v10  ;;  %v3100_v12 = vld [vmem:[%s3912_s5 + $0x90] sm:$0xff]  }
 0x1de   : > { %912 = vmatmul.mubr.bf16.vlgmr.msra.gmra.mrb[8].mxu1 %v746_v7  ;;  %v3097_v7 = vld [vmem:[%s3911_s4 + $0x168] sm:$0xff]  }
 0x1df   : > { %2805 = vmatpush3.bf16.msra.mxu1 %v3079_v13  ;;  %v651_v19 = vpop.f32.mrb[4].mxu1  ;;  %v3101_v13 = vld [vmem:[%s3911_s4 + $0x170] sm:$0xff]  }
 0x1e0   : > { %v689_v21 = vrot.slane %v651_v19, 1  ;;  %v653_v22 = vpop.f32.mrb[5].mxu1  ;;  %2806 = vmatprep.subr.bf16.mxu1 %v3081_v16  ;;  %v664_v26 = vrot.slane %v651_v19, 7  ;;  %v3571_v16 = vld [vmem:[%s3541_s14 + $0x18] sm:$0xff] }
 0x1e1   : > { %v665_v27 = vrot.slane %v653_v22, 7  ;;  %v690_v28 = vrot.slane %v653_v22, 1  ;;  %v655_v29 = vpop.f32.mrb[6].mxu1 }
 0x1e2   : > { %v3471_v31 = vsel %vm693_vm2, %v687_v6, %v689_v21  ;;  %v666_v32 = vrot.slane %v655_v29, 7  ;;  %v691_v33 = vrot.slane %v655_v29, 1  ;;  %v748_v34 = vpack.c.bf16 %v655_v29, %v651_v19  ;;  %v657_v35 = vpop.f32.mrb[7].mxu1  ;;  %v3096_v6 = vld [vmem:[%s3912_s5 + $0x88] sm:$0xff]   ;;  %v3104_v19 = vld [vmem:[%s3912_s5 + $0x98] sm:$0xff]  }
 0x1e3   : > { %v1073_v36 = vpack.c.bf16 %v3471_v31, %v3449_v15  ;;  %v667_v37 = vrot.slane %v657_v35, 7  ;;  %v692_v38 = vrot.slane %v657_v35, 1  ;;  %v749_v39 = vpack.c.bf16 %v657_v35, %v653_v22  ;;  %2807 = vmatpush3.bf16.msra.mxu1 %v3083_v20  ;;  %v3105_v20 = vld [vmem:[%s3911_s4 + $0x178] sm:$0xff]   ;;  %v3112_v35 = vld [vmem:[%s3912_s5 + $0xa8] sm:$0xff]   ;;  %v3117_v15 = vld [vmem:[%s3912_s5 + $0x50] sm:$0xff]  }
 0x1e4   : > { %v675_v41 = vsel %vm668_vm1, %v666_v32, %v660_v0  ;;  %2808 = vmatprep.subr.bf16.mxu1 %v3085_v25  ;;  %v697_v42 = vsel %vm693_vm2, %v688_v11, %v690_v28  ;;  %v672_v44 = vsel %vm668_vm1, %v663_v10, %v665_v27  ;;  %v669_v45 = vsel %vm668_vm1, %v664_v26, %v666_v32  ;;  %v3556_v10 = vld [vmem:[%s3541_s14 + $0x8] sm:$0xff]  ;;  %v3106_v25 = vld [vmem:[%s3911_s4 + $0x138] sm:$0xff]  }
 0x1e5   : > { %v677_v46 = vmul.f32 %v3462_v24, %v675_v41  ;;  %919 = vmatprep.mubr.bf16.mxu1 %v749_v39  ;;  %v1074_v47 = vpack.c.bf16 %v697_v42, %v699_v17  ;;  %v676_v48 = vsel %vm668_vm1, %v667_v37, %v661_v4  ;;  %v670_v49 = vsel %vm668_vm1, %v665_v27, %v667_v37  ;;  %v3098_v11 = vld [vmem:[%s3911_s4 + $0x128] sm:$0xff]   ;;  %v3109_v27 = vld [vmem:[%s3912_s5 + $0x40] sm:$0xff]  }
 0x1e6   : > { %920 = vmatmul.mubr.bf16.gmra.mrb[12].mxu1 %v748_v34  ;;  %v678_v50 = vmul.f32 %v3462_v24, %v676_v48  ;;  %v713_v51 = vpack.c.bf16 %v670_v49, %v672_v44  ;;  %v671_v52 = vsel %vm668_vm1, %v662_v5, %v664_v26  ;;  %v3499_v53 = vsel %vm693_vm2, %v690_v28, %v692_v38  ;;  %v3108_v26 = vld [vmem:[%s3912_s5 + $0xa0] sm:$0xff]   ;;  %v3113_v37 = vld [vmem:[%s3912_s5 + $0x48] sm:$0xff]   ;;  %v3119_v44 = vld [vmem:[%s3912_s5 + $0x10] sm:$0xff]  }
 0x1e7   : > { %2809 = vmatpush3.bf16.msra.mxu1 %v3087_v40  ;;  %1238 = vmatprep.mubr.bf16.mxu1 %v1074_v47  ;;  %v710_v55 = vpack.c.bf16 %v3443_v14, %v677_v46  ;;  %v712_v56 = vpack.c.bf16 %v669_v45, %v671_v52  ;;  %v701_v57 = vsel %vm693_vm2, %v692_v38, %v686_v9  ;;  %v3553_v9 = vld [vmem:[%s3541_s14] sm:$0xff]  ;;  %v3103_v14 = vld [vmem:[%s3912_s5 + $0xd8] sm:$0xff]   ;;  %v1270_v22 = vunpack.c.h.bf16 %v3571_v16  ;;  %v3114_v40 = vld [vmem:[%s3912_s5 + $0xf0] sm:$0xff]  }
 0x1e8   : > { %2810 = vmatprep.subr.bf16.mxu1 %v3089_v43  ;;  %v711_v58 = vpack.c.bf16 %v674_v18, %v678_v50  ;;  %v3511_v60 = vmul.f32 %v3467_v30, %v701_v57  ;;  %v3515_v63 = vsel %vm693_vm2, %v689_v21, %v691_v33  ;;  %v700_v0 = vsel %vm693_vm2, %v691_v33, %v685_v1  ;;  %v3102_v18 = vld [vmem:[%s3911_s4 + $0x130] sm:$0xff]   ;;  %v3110_v33 = vld [vmem:[%s3912_s5 + $0xe8] sm:$0xff]   ;;  %v3111_v34 = vld [vmem:[%s3912_s5] sm:$0xff]  }
 0x1e9   : > { %v3529_v4 = vmul.f32 %v3467_v30, %v700_v0  ;;  %v2581_v17 = vcombine.high %v3553_v9, %v3556_v10  ;;  %v1264_v21 = vunpack.c.h.bf16 %v3553_v9  ;;  %v1266_v28 = vunpack.c.h.bf16 %v3556_v10  ;;  %v3115_v41 = vld [vmem:[%s3912_s5 + $0x8] sm:$0xff]   ;;  %v3116_v43 = vld [vmem:[%s3912_s5 + $0xb0] sm:$0xff]   ;;  %v3120_v46 = vld [vmem:[%s3912_s5 + $0xb8] sm:$0xff]  }
 0x1ea   : > { %1056 = vmatprep.mubr.bf16.mxu0 %v711_v58  ;;  %v1076_v5 = vpack.c.bf16 %v3511_v60, %v3499_v53  ;;  %v3601_v32 = vrot.slane %v1270_v22, 7  ;;  %v3122_v47 = vld [vmem:[%s3912_s5 + $0x58] sm:$0xff]   ;;  %v3125_v48 = vld [vmem:[%s3912_s5 + $0x140] sm:$0xff]   ;;  %v3655_v49 = vld [vmem:[%s3541_s14 + $0x10] sm:$0xff]  ;;  %v2580_v50 = vcombine.low %v3553_v9, %v3556_v10  ;;  %v1263_v60 = vunpack.c.l.bf16 %v3553_v9 }
 0x1eb   : > { %2811 = vmatpush3.bf16.msra.mxu1 %v3090_v54  ;;  %1057 = vmatmul.mubr.bf16.vlgmr.msra.gmra.mrb[4].mxu0 %v710_v55  ;;  %v1075_v1 = vpack.c.bf16 %v3529_v4, %v3515_v63  ;;  %v1272_v29 = vrot.slane %v1264_v21, 7  ;;  %v3615_v38 = vrot.slane %v1266_v28, 7  ;;  %v3126_v52 = vld [vmem:[%s3912_s5 + $0x100] sm:$0xff]   ;;  %v1268_v54 = vunpack.c.h.bf16 %v3655_v49  ;;  %v3129_v55 = vld [vmem:[%s3912_s5 + $0x148] sm:$0xff]   ;;  %v3133_v4 = vld [vmem:[%s3912_s5 + $0x150] sm:$0xff]  }
 0x1ec   : > { %2833 = vmatpush3.bf16.msra.mxu0 %v3092_v59  ;;  %1064 = vmatprep.mubr.bf16.mxu0 %v713_v51  ;;  %v3124_v51 = vld [vmem:[%s3912_s5 + $0x18] sm:$0xff]   ;;  %v3127_v53 = vld [vmem:[%s3912_s5 + $0x60] sm:$0xff]   ;;  %v3677_v57 = vrot.slane %v1264_v21, 1  ;;  %v1298_v58 = vrot.slane %v1266_v28, 1  ;;  %v1269_v63 = vunpack.c.l.bf16 %v3571_v16 }
 0x1ed   : > { %2812 = vmatprep.subr.bf16.mxu1 %v3093_v2  ;;  %2834 = vmatprep.subr.bf16.mxu0 %v3095_v3  ;;  %v1286_v39 = vsel %vm668_vm1, %v3601_v32, %v1272_v29  ;;  %v1284_v31 = vsel %vm668_vm1, %v1272_v29, %v3615_v38  ;;  %v3679_v59 = vrot.slane %v1268_v54, 1  ;;  %v3128_v0 = vld [vmem:[%s3912_s5 + $0x20] sm:$0xff]   ;;  %v3130_v2 = vld [vmem:[%s3912_s5 + $0x108] sm:$0xff]   ;;  %v3139_v21 = vld [vmem:[%s3912_s5 + $0x78] sm:$0xff]   ;;  %v1267_v29 = vunpack.c.l.bf16 %v3655_v49 }
 0x1ee   : > { %v1288_v42 = vmul.f32 %v3462_v24, %v1286_v39  ;;  %v3131_v3 = vld [vmem:[%s3912_s5 + $0x68] sm:$0xff]   ;;  %v3150_v9 = vld [vmem:[%s3912_s5 + $0x138] sm:$0xff]  }
 0x1ef   : > { %2813 = vmatpush3.bf16.msra.mxu1 %v3094_v62  ;;  %v1308_v62 = vsel %vm693_vm2, %v3677_v57, %v1298_v58 }
 0x1f0   : > { %2835 = vmatpush3.bf16.msra.mxu0 %v3096_v6  ;;  %2814 = vmatprep.subr.bf16.mxu1 %v3097_v7  ;;  %v1320_v45 = vpack.c.bf16 %v1284_v31, %v1288_v42  ;;  %v1271_v6 = vrot.slane %v1263_v60, 7  ;;  %v3132_v7 = vld [vmem:[%s3912_s5 + $0x28] sm:$0xff]   ;;  %v1295_v31 = vrot.slane %v1263_v60, 1  ;;  %v3153_v60 = vld [vmem:[%s3915_s8] sm:$0xff]  }
 0x1f1   : > { %2836 = vmatprep.subr.bf16.mxu0 %v3099_v8  ;;  %v1277_v8 = vrot.slane %v1269_v63, 7  ;;  %v3146_v42 = vld [vmem:[%s3912_s5 + $0x128] sm:$0xff]  }
 0x1f3   : > { %2815 = vmatpush3.bf16.msra.mxu1 %v3098_v11  ;;  %1065 = vmatmul.mubr.bf16.gmra.mrb[8].mxu0 %v712_v56  ;;  %v2583_v56 = vcombine.high %v3655_v49, %v3571_v16  ;;  %v2582_v11 = vcombine.low %v3655_v49, %v3571_v16 }
 0x1f4   : > { %2837 = vmatpush3.bf16.msra.mxu0 %v3100_v12  ;;  %2816 = vmatprep.subr.bf16.mxu1 %v3101_v13  ;;  %v3135_v12 = vld [vmem:[%s3912_s5 + $0x70] sm:$0xff]   ;;  %v3137_v13 = vld [vmem:[%s3912_s5 + $0x158] sm:$0xff]  }
 0x1f5   : > { %2838 = vmatprep.subr.bf16.mxu0 %v3103_v14  ;;  %1536 = vmatprep.mubr.bf16.mxu0 %v2581_v17 }
 0x1f7   : > { %2817 = vmatpush3.bf16.msra.mxu1 %v3102_v18  ;;  %v3136_v18 = vld [vmem:[%s3912_s5 + $0x30] sm:$0xff]  }
 0x1f8   : > { %2839 = vmatpush3.bf16.msra.mxu0 %v3104_v19  ;;  %2818 = vmatprep.subr.bf16.mxu1 %v3105_v20  ;;  %v1285_v19 = vsel %vm668_vm1, %v1277_v8, %v1271_v6  ;;  %v3138_v20 = vld [vmem:[%s3912_s5 + $0x118] sm:$0xff]  }
 0x1f9   : > { %2840 = vmatprep.subr.bf16.mxu0 %v3107_v23  ;;  %v1276_v23 = vrot.slane %v1268_v54, 7 }
 0x1fb   : > { %2819 = vmatpush3.bf16.msra.mxu1 %v3106_v25  ;;  %v3141_v25 = vld [vmem:[%s3912_s5 + $0x160] sm:$0xff]  }
 0x1fc   : > { %2841 = vmatpush3.bf16.msra.mxu0 %v3108_v26  ;;  %2860 = vmatprep.subr.bf16.mxu1 %v3109_v27  ;;  %v1287_v26 = vmul.f32 %v3462_v24, %v1285_v19  ;;  %v3140_v27 = vld [vmem:[%s3912_s5 + $0x38] sm:$0xff]  }
 0x1fd   : > { %2842 = vmatprep.subr.bf16.mxu0 %v3110_v33  ;;  %v3142_v33 = vld [vmem:[%s3912_s5 + $0x120] sm:$0xff]  }
 0x1fe   : > { %1239 = vmatmul.mubr.bf16.vlgmr.msra.gmra.mrb[16].mxu1 %v1073_v36  ;;  %v3118_v36 = vld [vmem:[%s3912_s5 + $0xf8] sm:$0xff]  }
 0x1ff   : > { %1246 = vmatprep.mubr.bf16.mxu1 %v1076_v5  ;;  %2861 = vmatpush3.bf16.msra.mxu1 %v3111_v34  ;;  %v1306_v5 = vsel %vm693_vm2, %v1298_v58, %v3679_v59  ;;  %v1280_v34 = vsel %vm668_vm1, %v1276_v23, %v3601_v32  ;;  %v3147_v32 = vld [vmem:[%s3912_s5 + $0x170] sm:$0xff]   ;;  %v3151_v58 = vld [vmem:[%s3915_s8 + $0x40] sm:$0xff]  }
 0x200   : > { %2843 = vmatpush3.bf16.msra.mxu0 %v3112_v35  ;;  %2862 = vmatprep.subr.bf16.mxu1 %v3113_v37  ;;  %v1699_v14 = vpack.c.bf16 %v1306_v5, %v1308_v62  ;;  %v1282_v35 = vsel %vm668_vm1, %v3615_v38, %v1276_v23  ;;  %v3144_v37 = vld [vmem:[%s3912_s5 + $0x168] sm:$0xff]   ;;  %v1302_v38 = vrot.slane %v1270_v22, 1  ;;  %v3149_v22 = vld [vmem:[%s3912_s5 + $0x178] sm:$0xff]  }
 0x201   : > { %2844 = vmatprep.subr.bf16.mxu0 %v3114_v40  ;;  %v1322_v40 = vpack.c.bf16 %v1280_v34, %v1282_v35  ;;  %v3159_v5 = vld [vmem:[%s3915_s8 + $0x18] sm:$0xff]   ;;  %v3160_v62 = vld [vmem:[%s3915_s8 + $0x68] sm:$0xff]  }
 0x203   : > { %2863 = vmatpush3.bf16.msra.mxu1 %v3115_v41  ;;  %v1275_v41 = vrot.slane %v1267_v29, 7 }
 0x204   : > { %2845 = vmatpush3.bf16.msra.mxu0 %v3116_v43  ;;  %2864 = vmatprep.subr.bf16.mxu1 %v3117_v15 }
 0x205   : > { %2846 = vmatprep.subr.bf16.mxu0 %v3118_v36  ;;  %v1279_v43 = vsel %vm668_vm1, %v1275_v41, %v1277_v8  ;;  %v3164_v8 = vld [vmem:[%s3915_s8 + $0x78] sm:$0xff]  }
 0x206   : > { %1247 = vmatmul.mubr.bf16.gmra.mrb[20].mxu1 %v1075_v1  ;;  %v1265_v1 = vunpack.c.l.bf16 %v3556_v10  ;;  %v3134_v10 = vld [vmem:[%s3912_s5 + $0x110] sm:$0xff]  }
 0x207   : > { %2865 = vmatpush3.bf16.msra.mxu1 %v3119_v44  ;;  %1681 = vmatprep.mubr.bf16.mxu1 %v1320_v45  ;;  %v3148_v44 = vld [vmem:[%s3912_s5 + $0x130] sm:$0xff]   ;;  %v1299_v45 = vrot.slane %v1267_v29, 1 }
 0x208   : > { %2847 = vmatpush3.bf16.msra.mxu0 %v3120_v46  ;;  %2866 = vmatprep.subr.bf16.mxu1 %v3122_v47  ;;  %v1273_v17 = vrot.slane %v1265_v1, 7  ;;  %v1297_v36 = vrot.slane %v1265_v1, 1  ;;  %v1310_v46 = vsel %vm693_vm2, %v1302_v38, %v3677_v57  ;;  %v3161_v1 = vld [vmem:[%s3915_s8 + $0x20] sm:$0xff]  }
 0x209   : > { %2888 = vmatprep.subr.bf16.mxu0 %v3125_v48 }
 0x20a   : > { %v1283_v28 = vsel %vm668_vm1, %v1271_v6, %v1273_v17  ;;  %v1281_v15 = vsel %vm668_vm1, %v1273_v17, %v1275_v41  ;;  %v1305_v48 = vsel %vm693_vm2, %v1297_v36, %v1299_v45  ;;  %v1307_v49 = vsel %vm693_vm2, %v1295_v31, %v1297_v36  ;;  %v3162_v6 = vld [vmem:[%s3915_s8 + $0x70] sm:$0xff]  }
 0x20b   : > { %1537 = vmatmul.mubr.bf16.vlgmr.msra.gmra.mrb[12].mxu0 %v2580_v50  ;;  %2867 = vmatpush3.bf16.msra.mxu1 %v3124_v51  ;;  %v1319_v39 = vpack.c.bf16 %v1283_v28, %v1287_v26  ;;  %v1321_v47 = vpack.c.bf16 %v1279_v43, %v1281_v15  ;;  %v1318_v50 = vmul.f32 %v3467_v30, %v1310_v46  ;;  %v1301_v51 = vrot.slane %v1269_v63, 1  ;;  %v3154_v63 = vld [vmem:[%s3915_s8 + $0x50] sm:$0xff]  }
 0x20c   : > { %2889 = vmatpush3.bf16.msra.mxu0 %v3126_v52  ;;  %2868 = vmatprep.subr.bf16.mxu1 %v3127_v53  ;;  %v1304_v52 = vsel %vm693_vm2, %v3679_v59, %v1302_v38  ;;  %v1698_v53 = vpack.c.bf16 %v1305_v48, %v1307_v49  ;;  %v3152_v59 = vld [vmem:[%s3915_s8 + $0x48] sm:$0xff]  }
 0x20d   : > { %2890 = vmatprep.subr.bf16.mxu0 %v3129_v55  ;;  %1544 = vmatprep.mubr.bf16.mxu0 %v2583_v56  ;;  %v1701_v54 = vpack.c.bf16 %v1318_v50, %v1304_v52  ;;  %v1309_v55 = vsel %vm693_vm2, %v1301_v51, %v1295_v31  ;;  %v1303_v16 = vsel %vm693_vm2, %v1299_v45, %v1301_v51 }
 0x20e   : > { %v1317_v56 = vmul.f32 %v3467_v30, %v1309_v55 }
 0x20f   : > { %2869 = vmatpush3.bf16.msra.mxu1 %v3128_v0  ;;  %v3155_v0 = vld [vmem:[%s3915_s8 + $0x8] sm:$0xff]  }
 0x210   : > { %2891 = vmatpush3.bf16.msra.mxu0 %v3130_v2  ;;  %2870 = vmatprep.subr.bf16.mxu1 %v3131_v3  ;;  %v1700_v57 = vpack.c.bf16 %v1317_v56, %v1303_v16  ;;  %v3156_v2 = vld [vmem:[%s3915_s8 + $0x58] sm:$0xff]   ;;  %v3157_v3 = vld [vmem:[%s3915_s8 + $0x10] sm:$0xff]  }
 0x211   : > { %2892 = vmatprep.subr.bf16.mxu0 %v3133_v4  ;;  %v3158_v4 = vld [vmem:[%s3915_s8 + $0x60] sm:$0xff]  }
 0x213   : > { %2871 = vmatpush3.bf16.msra.mxu1 %v3132_v7  ;;  %1545 = vmatmul.mubr.bf16.gmra.mrb[16].mxu0 %v2582_v11  ;;  %v3163_v7 = vld [vmem:[%s3915_s8 + $0x28] sm:$0xff]   ;;  %v3165_v11 = vld [vmem:[%s3915_s8 + $0x30] sm:$0xff]  }
 0x214   : > { %2893 = vmatpush3.bf16.msra.mxu0 %v3134_v10  ;;  %2872 = vmatprep.subr.bf16.mxu1 %v3135_v12  ;;  %v3166_v10 = vld [vmem:[%s3915_s8 + $0x38] sm:$0xff]   ;;  %v3845_v12 = vld [vmem:[%s3915_s8 + $0x80] sm:$0xff]  }
 0x215   : > { %2894 = vmatprep.subr.bf16.mxu0 %v3137_v13  ;;  %1863 = vmatprep.mubr.bf16.mxu0 %v1699_v14 }
 0x217   : > { %2873 = vmatpush3.bf16.msra.mxu1 %v3136_v18 }
 0x218   : > { %2895 = vmatpush3.bf16.msra.mxu0 %v3138_v20  ;;  %2874 = vmatprep.subr.bf16.mxu1 %v3139_v21 }
 0x219   : > { %2896 = vmatprep.subr.bf16.mxu0 %v3141_v25 }
 0x21b   : > { %2875 = vmatpush3.bf16.msra.mxu1 %v3140_v27 }
 0x21c   : > { %2897 = vmatpush3.bf16.msra.mxu0 %v3142_v33  ;;  %2966 = vmatprep.subr.bf16.mxu1 %v3153_v60 }
 0x21d   : > { %2898 = vmatprep.subr.bf16.mxu0 %v3144_v37 }
 0x21e   : > { %1682 = vmatmul.mubr.bf16.vlgmr.msra.gmra.mrb[24].mxu1 %v1319_v39 }
 0x21f   : > { %1689 = vmatprep.mubr.bf16.mxu1 %v1322_v40  ;;  %2967 = vmatpush3.bf16.msra.mxu1 %v3153_v60 }
 0x220   : > { %2899 = vmatpush3.bf16.msra.mxu0 %v3146_v42  ;;  %2968 = vmatprep.subr.bf16.mxu1 %v3155_v0 }
 0x221   : > { %2900 = vmatprep.subr.bf16.mxu0 %v3147_v32 }
 0x223   : > { %2969 = vmatpush3.bf16.msra.mxu1 %v3155_v0 }
 0x224   : > { %2901 = vmatpush3.bf16.msra.mxu0 %v3148_v44  ;;  %2970 = vmatprep.subr.bf16.mxu1 %v3157_v3 }
 0x225   : > { %2902 = vmatprep.subr.bf16.mxu0 %v3149_v22 }
 0x226   : > { %1690 = vmatmul.mubr.bf16.gmra.mrb[28].mxu1 %v1321_v47 }
 0x227   : > { %2971 = vmatpush3.bf16.msra.mxu1 %v3157_v3 }
 0x228   : > { %2903 = vmatpush3.bf16.msra.mxu0 %v3150_v9  ;;  %2972 = vmatprep.subr.bf16.mxu1 %v3159_v5 }
 0x229   : > { %2946 = vmatprep.subr.bf16.mxu0 %v3151_v58 }
 0x22b   : > { %1864 = vmatmul.mubr.bf16.vlgmr.msra.gmra.mrb[20].mxu0 %v1698_v53  ;;  %2973 = vmatpush3.bf16.msra.mxu1 %v3159_v5 }
 0x22c   : > { %1871 = vmatprep.mubr.bf16.mxu0 %v1701_v54  ;;  %2947 = vmatpush3.bf16.msra.mxu0 %v3151_v58 }
 0x22d   : > { %2948 = vmatprep.subr.bf16.mxu0 %v3152_v59  ;;  %2974 = vmatprep.subr.bf16.mxu1 %v3161_v1 }
 0x22f   : > { %2975 = vmatpush3.bf16.msra.mxu1 %v3161_v1 }
 0x230   : > { %2949 = vmatpush3.bf16.msra.mxu0 %v3152_v59  ;;  %2976 = vmatprep.subr.bf16.mxu1 %v3163_v7 }
 0x231   : > { %2950 = vmatprep.subr.bf16.mxu0 %v3154_v63 }
 0x233   : > { %1872 = vmatmul.mubr.bf16.gmra.mrb[24].mxu0 %v1700_v57  ;;  %2977 = vmatpush3.bf16.msra.mxu1 %v3163_v7 }
 0x234   : > { %2951 = vmatpush3.bf16.msra.mxu0 %v3154_v63  ;;  %2978 = vmatprep.subr.bf16.mxu1 %v3165_v11 }
 0x235   : > { %2952 = vmatprep.subr.bf16.mxu0 %v3156_v2 }
 0x237   : > { %2979 = vmatpush3.bf16.msra.mxu1 %v3165_v11 }
 0x238   : > { %2953 = vmatpush3.bf16.msra.mxu0 %v3156_v2  ;;  %2980 = vmatprep.subr.bf16.mxu1 %v3166_v10 }
 0x239   : > { %2954 = vmatprep.subr.bf16.mxu0 %v3158_v4 }
 0x23b   : > { %2981 = vmatpush3.bf16.msra.mxu1 %v3166_v10 }
 0x23c   : > { %2955 = vmatpush3.bf16.msra.mxu0 %v3158_v4  ;;  %2986 = vmatprep.subr.bf16.mxu1 %v3845_v12 }
 0x23d   : > { %2956 = vmatprep.subr.bf16.mxu0 %v3160_v62 }
 0x240   : > { %2957 = vmatpush3.bf16.msra.mxu0 %v3160_v62 }
 0x241   : > { %2958 = vmatprep.subr.bf16.mxu0 %v3162_v6 }
 0x244   : > { %2959 = vmatpush3.bf16.msra.mxu0 %v3162_v6 }
 0x245   : > { %2960 = vmatprep.subr.bf16.mxu0 %v3164_v8 }
 0x248   : > { %2961 = vmatpush3.bf16.msra.mxu0 %v3164_v8 }
 0x2b1   : > { %v2764_v13 = vpop.f32.mrb[8].mxu1 }
 0x2b2   : > { %v2765_v14 = vpop.f32.mrb[9].mxu1 }
 0x2b3   : > { %v2766_v17 = vadd.f32 %v2765_v14, %v2764_v13  ;;  %v2767_v18 = vpop.f32.mrb[10].mxu1 }
 0x2b4   : > { %v2768_v19 = vpop.f32.mrb[11].mxu1 }
 0x2b5   : > { %v2769_v20 = vadd.f32 %v2768_v19, %v2767_v18 }
 0x2b9   : > { %v2770_v21 = vpop.f32.mrb[12].mxu1 }
 0x2ba   : > { %v2771_v23 = vpop.f32.mrb[13].mxu1 }
 0x2bb   : > { %v2772_v25 = vadd.f32 %v2771_v23, %v2770_v21  ;;  %v2773_v26 = vpop.f32.mrb[14].mxu1 }
 0x2bc   : > { %v2774_v27 = vpop.f32.mrb[15].mxu1 }
 0x2bd   : > { %v2775_v28 = vadd.f32 %v2774_v27, %v2773_v26 }
 0x2be   : > { %v2792_v29 = vpop.f32.mrb[4].mxu0 }
 0x2bf   : > { %v2793_v33 = vpop.f32.mrb[5].mxu0 }
 0x2c0   : > { %v2794_v34 = vadd.f32 %v2793_v33, %v2792_v29  ;;  %v2795_v35 = vpop.f32.mrb[6].mxu0 }
 0x2c1   : > { %v2796_v37 = vpop.f32.mrb[7].mxu0 }
 0x2c2   : > { %v1059_v39 = vadd.f32 %v2794_v34, %v2766_v17  ;;  %v2797_v40 = vadd.f32 %v2796_v37, %v2795_v35 }
 0x2c4   : > { %v1062_v41 = vadd.f32 %v2797_v40, %v2769_v20 }
 0x2c6   : > { %v2798_v42 = vpop.f32.mrb[8].mxu0 }
 0x2c7   : > { %v2799_v32 = vpop.f32.mrb[9].mxu0 }
 0x2c8   : > { %v2800_v38 = vadd.f32 %v2799_v32, %v2798_v42  ;;  %v2801_v43 = vpop.f32.mrb[10].mxu0 }
 0x2c9   : > { %v2802_v15 = vpop.f32.mrb[11].mxu0 }
 0x2ca   : > { %v1067_v31 = vadd.f32 %v2800_v38, %v2772_v25  ;;  %v2803_v36 = vadd.f32 %v2802_v15, %v2801_v43  ;;  %v2665_v38 = vld [vmem:[%s3914_s7] ss:$0 sm:$0xff] }
 0x2cc   : > { %v1070_v44 = vadd.f32 %v2803_v36, %v2775_v28 }
 0x2d1   : > { %v2820_v45 = vpop.f32.mrb[16].mxu1 }
 0x2d2   : > { %v2821_v22 = vpop.f32.mrb[17].mxu1 }
 0x2d3   : > { %v2822_v46 = vadd.f32 %v2821_v22, %v2820_v45  ;;  %v2823_v47 = vpop.f32.mrb[18].mxu1 }
 0x2d4   : > { %v2824_v9 = vpop.f32.mrb[19].mxu1 }
 0x2d5   : > { %v1255_v48 = vadd.f32 %v2822_v46, %v1059_v39  ;;  %v2825_v49 = vadd.f32 %v2824_v9, %v2823_v47 }
 0x2d7   : > { %v1256_v50 = vadd.f32 %v2825_v49, %v1062_v41  ;;  %v2664_v41 = vld [vmem:[%s3913_s6] ss:$0 sm:$0xff] }
 0x2d9   : > { %v2826_v51 = vpop.f32.mrb[20].mxu1 }
 0x2da   : > { %v2827_v52 = vpop.f32.mrb[21].mxu1 }
 0x2db   : > { %v2828_v53 = vadd.f32 %v2827_v52, %v2826_v51  ;;  %v2829_v54 = vpop.f32.mrb[22].mxu1 }
 0x2dc   : > { %v2830_v55 = vpop.f32.mrb[23].mxu1 }
 0x2dd   : > { %v1257_v56 = vadd.f32 %v2828_v53, %v1067_v31  ;;  %v2831_v16 = vadd.f32 %v2830_v55, %v2829_v54 }
 0x2de   : > { %v2848_v57 = vpop.f32.mrb[12].mxu0 }
 0x2df   : > { %v1258_v58 = vadd.f32 %v2831_v16, %v1070_v44  ;;  %v2849_v59 = vpop.f32.mrb[13].mxu0 }
 0x2e0   : > { %v2850_v60 = vadd.f32 %v2849_v59, %v2848_v57  ;;  %v2851_v63 = vpop.f32.mrb[14].mxu0 }
 0x2e1   : > { %v2852_v0 = vpop.f32.mrb[15].mxu0 }
 0x2e2   : > { %v2853_v2 = vadd.f32 %v2852_v0, %v2851_v63 }
 0x2e6   : > { %v2854_v3 = vpop.f32.mrb[16].mxu0 }
 0x2e7   : > { %v2855_v4 = vpop.f32.mrb[17].mxu0 }
 0x2e8   : > { %v2856_v5 = vadd.f32 %v2855_v4, %v2854_v3  ;;  %v2857_v62 = vpop.f32.mrb[18].mxu0 }
 0x2e9   : > { %v2858_v1 = vpop.f32.mrb[19].mxu0 }
 0x2ea   : > { %v2859_v6 = vadd.f32 %v2858_v1, %v2857_v62 }
 0x2f1   : > { %v2876_v7 = vpop.f32.mrb[24].mxu1 }
 0x2f2   : > { %v2877_v8 = vpop.f32.mrb[25].mxu1 }
 0x2f3   : > { %v2878_v11 = vadd.f32 %v2877_v8, %v2876_v7  ;;  %v2879_v10 = vpop.f32.mrb[26].mxu1 }
 0x2f4   : > { %v2880_v13 = vpop.f32.mrb[27].mxu1 }
 0x2f5   : > { %v1684_v14 = vadd.f32 %v2878_v11, %v2850_v60  ;;  %v2881_v17 = vadd.f32 %v2880_v13, %v2879_v10 }
 0x2f7   : > { %v1687_v18 = vadd.f32 %v2881_v17, %v2853_v2 }
 0x2f9   : > { %v2882_v19 = vpop.f32.mrb[28].mxu1 }
 0x2fa   : > { %v2883_v20 = vpop.f32.mrb[29].mxu1 }
 0x2fb   : > { %v2884_v21 = vadd.f32 %v2883_v20, %v2882_v19  ;;  %v2885_v23 = vpop.f32.mrb[30].mxu1 }
 0x2fc   : > { %v2886_v25 = vpop.f32.mrb[31].mxu1 }
 0x2fd   : > { %v1692_v26 = vadd.f32 %v2884_v21, %v2856_v5  ;;  %v2887_v27 = vadd.f32 %v2886_v25, %v2885_v23 }
 0x2fe   : > { %v2904_v28 = vpop.f32.mrb[20].mxu0 }
 0x2ff   : > { %v1695_v29 = vadd.f32 %v2887_v27, %v2859_v6  ;;  %v2905_v33 = vpop.f32.mrb[21].mxu0 }
 0x300   : > { %v2906_v34 = vadd.f32 %v2905_v33, %v2904_v28  ;;  %v2907_v35 = vpop.f32.mrb[22].mxu0  ;;  %v3173_v28 = vld [vmem:[%s3915_s8 + $0xb0] sm:$0xff]  }
 0x301   : > { %v2908_v37 = vpop.f32.mrb[23].mxu0 }
 0x302   : > { %v1880_v39 = vadd.f32 %v2906_v34, %v1684_v14  ;;  %v2909_v40 = vadd.f32 %v2908_v37, %v2907_v35 }
 0x304   : > { %v1884_v42 = vadd.f32 %v1880_v39, %v1255_v48  ;;  %v1881_v32 = vadd.f32 %v2909_v40, %v1687_v18  ;;  %v2722_v40 = vld [vmem:[%s3916_s9] ss:$0 sm:$0xff] }
 0x306   : > { %v1895_v43 = vmul.f32 %v2664_v41, %v1884_v42  ;;  %v1885_v15 = vadd.f32 %v1881_v32, %v1256_v50  ;;  %v2910_v31 = vpop.f32.mrb[24].mxu0  ;;  %v2723_v32 = vld [vmem:[%s3917_s10] ss:$0 sm:$0xff] }
 0x307   : > { %v2911_v36 = vpop.f32.mrb[25].mxu0 }
 0x308   : > { %v1906_v44 = vadd.f32 %v2665_v38, %v1895_v43  ;;  %v1896_v45 = vmul.f32 %v2664_v41, %v1885_v15  ;;  %v2912_v22 = vadd.f32 %v2911_v36, %v2910_v31  ;;  %v2913_v46 = vpop.f32.mrb[26].mxu0 }
 0x309   : > { %v2914_v47 = vpop.f32.mrb[27].mxu0 }
 0x30a   : > { %v1907_v9 = vadd.f32 %v2665_v38, %v1896_v45  ;;  %v1882_v49 = vadd.f32 %v2912_v22, %v1692_v26  ;;  %v2915_v51 = vadd.f32 %v2914_v47, %v2913_v46  ;;  %v1910_v52 = vmax.f32 %v1906_v44, 0.0  ;;  %v3168_v26 = vld [vmem:[%s3915_s8 + $0x88] sm:$0xff]  }
 0x30c   : > { %v1886_v53 = vadd.f32 %v1882_v49, %v1257_v56  ;;  %v1883_v48 = vadd.f32 %v2915_v51, %v1695_v29  ;;  %v1911_v54 = vmax.f32 %v1907_v9, 0.0  ;;  %v1914_v55 = vrot.slane %v1910_v52, 7  ;;  %v3174_v29 = vld [vmem:[%s3915_s8 + $0xb8] sm:$0xff]  }
 0x30d   : > { %v1926_v50 = vrot.slane %v1910_v52, 1 }
 0x30e   : > { %v1897_v16 = vmul.f32 %v2664_v41, %v1886_v53  ;;  %v1887_v57 = vadd.f32 %v1883_v48, %v1258_v58  ;;  %v1956_v59 = vpack.c.bf16 %v1911_v54, %v1910_v52  ;;  %v1915_v60 = vrot.slane %v1911_v54, 7 }
 0x30f   : > { %v1927_v63 = vrot.slane %v1911_v54, 1 }
 0x310   : > { %v1908_v0 = vadd.f32 %v2665_v38, %v1897_v16  ;;  %v1898_v2 = vmul.f32 %v2664_v41, %v1887_v57  ;;  %2962 = vmatprep.mubr.bf16.mxu0 %v1956_v59  ;;  %v1920_v3 = vsel %vm668_vm1, %v1914_v55, %v1915_v60 }
 0x311   : > { %v1932_v4 = vsel %vm693_vm2, %v1926_v50, %v1927_v63 }
 0x312   : > { %v1912_v5 = vmax.f32 %v1908_v0, 0.0  ;;  %v1909_v56 = vadd.f32 %v2665_v38, %v1898_v2 }
 0x314   : > { %v1916_v62 = vrot.slane %v1912_v5, 7  ;;  %v1913_v1 = vmax.f32 %v1909_v56, 0.0  ;;  %v1928_v6 = vrot.slane %v1912_v5, 1 }
 0x316   : > { %v1957_v7 = vpack.c.bf16 %v1913_v1, %v1912_v5  ;;  %v1917_v58 = vrot.slane %v1913_v1, 7  ;;  %v1919_v8 = vsel %vm668_vm1, %v1915_v60, %v1916_v62  ;;  %v1931_v11 = vsel %vm693_vm2, %v1927_v63, %v1928_v6 }
 0x317   : > { %v2169_v10 = vpack.c.bf16 %v1931_v11, %v1932_v4  ;;  %v1929_v13 = vrot.slane %v1913_v1, 1 }
 0x318   : > { %2963 = vmatmul.mubr.bf16.vlgmr.msra.gmra.mrb[28].mxu0 %v1957_v7  ;;  %v1921_v14 = vsel %vm668_vm1, %v1917_v58, %v1914_v55  ;;  %v1918_v17 = vsel %vm668_vm1, %v1916_v62, %v1917_v58 }
 0x319   : > { %v1922_v18 = vmul.f32 %v3462_v24, %v1921_v14  ;;  %v1939_v19 = vpack.c.bf16 %v1918_v17, %v1919_v8  ;;  %v1930_v20 = vsel %vm693_vm2, %v1928_v6, %v1929_v13  ;;  %v1933_v21 = vsel %vm693_vm2, %v1929_v13, %v1926_v50  ;;  %v3169_v24 = vld [vmem:[%s3915_s8 + $0x90] sm:$0xff]  }
 0x31a   : > { %v1937_v23 = vmul.f32 %v3467_v30, %v1933_v21  ;;  %v3171_v30 = vld [vmem:[%s3915_s8 + $0xa0] sm:$0xff]  }
 0x31b   : > { %v1938_v25 = vpack.c.bf16 %v1920_v3, %v1922_v18 }
 0x31c   : > { %v2170_v27 = vpack.c.bf16 %v1937_v23, %v1930_v20 }
 0x31d   : > { %2982 = vmatprep.mubr.bf16.mxu1 %v1938_v25 }
 0x31e   : > { %2983 = vmatmul.mubr.bf16.vlgmr.msra.gmra.mrb[32].mxu1 %v1939_v19 }
 0x31f   : > { %2987 = vmatpush3.bf16.msra.mxu1 %v3845_v12  ;;  %3002 = vmatprep.mubr.bf16.mxu1 %v2169_v10  ;;  %v3172_v12 = vld [vmem:[%s3915_s8 + $0xa8] sm:$0xff]  }
 0x320   : > { %2988 = vmatprep.subr.bf16.mxu1 %v3168_v26 }
 0x323   : > { %2989 = vmatpush3.bf16.msra.mxu1 %v3168_v26 }
 0x324   : > { %2990 = vmatprep.subr.bf16.mxu1 %v3169_v24 }
 0x327   : > { %2991 = vmatpush3.bf16.msra.mxu1 %v3169_v24 }
 0x328   : > { %2992 = vmatprep.subr.bf16.mxu1 %v3170_v61 }
 0x32b   : > { %2993 = vmatpush3.bf16.msra.mxu1 %v3170_v61 }
 0x32c   : > { %2994 = vmatprep.subr.bf16.mxu1 %v3171_v30 }
 0x32f   : > { %2995 = vmatpush3.bf16.msra.mxu1 %v3171_v30 }
 0x330   : > { %2996 = vmatprep.subr.bf16.mxu1 %v3172_v12 }
 0x333   : > { %2997 = vmatpush3.bf16.msra.mxu1 %v3172_v12 }
 0x334   : > { %2998 = vmatprep.subr.bf16.mxu1 %v3173_v28 }
 0x337   : > { %2999 = vmatpush3.bf16.msra.mxu1 %v3173_v28 }
 0x338   : > { %3000 = vmatprep.subr.bf16.mxu1 %v3174_v29 }
 0x33b   : > { %3001 = vmatpush3.bf16.msra.mxu1 %v3174_v29 }
 0x33e   : > { %3003 = vmatmul.mubr.bf16.vlgmr.msra.gmra.mrb[32].mxu1 %v2170_v27 }
 0x3eb   : > { %v2964_v33 = vpop.f32.mrb[28].mxu0 }
 0x3ec   : > { %v2057_v34 = vpop.f32.mrb[29].mxu0 }
 0x3ed   : > { %v2965_v35 = vpop.f32.mrb[30].mxu0 }
 0x3ee   : > { %v2060_v37 = vpop.f32.mrb[31].mxu0 }
 0x411   : > { %v3004_v39 = vpop.f32.mrb[32].mxu1 }
 0x412   : > { %v3006_v41 = vadd.f32 %v3004_v39, %v2964_v33  ;;  %v2270_v42 = vpop.f32.mrb[33].mxu1 }
 0x413   : > { %v3007_v38 = vadd.f32 %v2270_v42, %v2057_v34  ;;  %v3005_v43 = vpop.f32.mrb[34].mxu1 }
 0x414   : > { %v2298_v15 = vmul.f32 %v3006_v41, %v2722_v40  ;;  %v3008_v31 = vadd.f32 %v3005_v43, %v2965_v35  ;;  %v2273_v36 = vpop.f32.mrb[35].mxu1 }
 0x415   : > { %v2296_v44 = vmul.f32 %v3007_v38, %v2722_v40  ;;  %v3009_v45 = vadd.f32 %v2273_v36, %v2060_v37 }
 0x416   : > { %v2309_v22 = vadd.f32 %v2723_v32, %v2298_v15  ;;  %v2299_v46 = vmul.f32 %v3008_v31, %v2722_v40 }
 0x417   : > { %v2307_v47 = vadd.f32 %v2723_v32, %v2296_v44  ;;  %v2297_v9 = vmul.f32 %v3009_v45, %v2722_v40 }
 0x418   : > { %v2310_v49 = vadd.f32 %v2723_v32, %v2299_v46  ;;  %v2313_v52 = vmax.f32 %v2309_v22, 0.0 }
 0x419   : > { %v2308_v51 = vadd.f32 %v2723_v32, %v2297_v9  ;;  %v2311_v48 = vmax.f32 %v2307_v47, 0.0 }
 0x41a   : > { %v2314_v53 = vmax.f32 %v2310_v49, 0.0 }
 0x41b   : > { %v2312_v54 = vmax.f32 %v2308_v51, 0.0 }
 0x41c   : > { %v2745_v55 = vpack.c.bf16 %v2314_v53, %v2313_v52 }
 0x41d   : > { %v2740_v16 = vpack.c.bf16 %v2312_v54, %v2311_v48 }
 0x41e   : > { %2747 = vst [vmem:[%s406_s28 + $0x8] sm:$0xff] %v2745_v55  }
 0x41f   : > { %2741 = vst [vmem:[%s406_s28] sm:$0xff] %v2740_v16  }
 0x420 PF: > { %s21_s17 = sadd.s32 1, %s3181_s17  }
 0x421   : > { %p18_p4 = scmp.ge.s32.totalorder %s21_s17, 4  }
 0x423   :  { %20 = sbr.rel (!%p18_p4) target bundleno = 1 (0x1), region = 103 }

</bundles_post_ra>
